<compile_context>
chip_gen: v7x
topology: tpu7x:2x2x1
jax: 0.10.0
libtpu: 0.0.40
codegen_flags: <defaults>
</compile_context>

<pallas_src>
import functools

import jax
import jax.numpy as jnp
from jax.experimental import pallas as pl
from jax.experimental.pallas import tpu as pltpu

EPS = 1e-5  # BatchNorm eps (PyTorch default)


# ---------------------------------------------------------------------------
# Fused decoder kernel.  One grid step == one batch element.  Activations are
# (C, H*W) lane-dense; 3x3 taps are lane rotations + boundary masks.
# ---------------------------------------------------------------------------
def _decoder_kernel(x_ref, w1_ref, s1_ref, t1_ref, w2_ref, s2_ref, t2_ref,
                    wdw_ref, tdw_ref, wf1_ref, sf1_ref, tf1_ref, wf2_ref,
                    o_ref, *, H, W):
    HW = H * W

    # Destination-pixel (row, col) indices along the flattened lane axis.
    pos = jax.lax.broadcasted_iota(jnp.int32, (1, HW), 1)
    if (W & (W - 1)) == 0:                       # power-of-two fast path
        row = pos >> (W.bit_length() - 1)
        col = pos & (W - 1)
    else:
        row = pos // W
        col = pos % W

    mask_cache = {}

    def tap_mask(dh, dw):
        key = (dh, dw)
        if key not in mask_cache:
            conds = []
            if dh > 0:
                conds.append(row < H - dh)
            elif dh < 0:
                conds.append(row >= -dh)
            if dw > 0:
                conds.append(col < W - dw)
            elif dw < 0:
                conds.append(col >= -dw)
            m = None
            for c in conds:
                m = c if m is None else jnp.logical_and(m, c)
            mask_cache[key] = m
        return mask_cache[key]

    def shifted(arr, dh, dw):
        """arr[:, p] -> arr[:, p + dh*W + dw]; 0 where the source pixel is OOB."""
        delta = dh * W + dw
        out = arr
        if delta != 0:
            # roll(x, s)[p] == x[(p - s) % HW]  ->  s = -delta yields x[p + delta]
            out = pltpu.roll(out, (-delta) % HW, axis=1)
        m = tap_mask(dh, dw)
        if m is not None:
            out = jnp.where(m, out, jnp.zeros_like(out))
        return out

    def conv3x3_bn_relu(act, w_ref, s_ref, t_ref):
        """Dense 3x3 (pad=1) + BN + ReLU as ONE (Cout,9Cin)x(9Cin,HW) matmul."""
        taps = []
        for kh in range(3):
            for kw in range(3):
                taps.append(shifted(act, kh - 1, kw - 1).astype(jnp.bfloat16))
        im2col = jnp.concatenate(taps, axis=0)               # (9*Cin, HW) bf16
        acc = jnp.dot(w_ref[...], im2col,
                      preferred_element_type=jnp.float32)    # (Cout, HW) f32
        return jnp.maximum(acc * s_ref[...] + t_ref[...], 0.0)

    # ---- conv1 / conv2 ------------------------------------------------------
    x = x_ref[0]                                             # (Cin, HW) f32
    h1 = conv3x3_bn_relu(x, w1_ref, s1_ref, t1_ref)          # (C1, HW)
    h2 = conv3x3_bn_relu(h1, w2_ref, s2_ref, t2_ref)         # (C2, HW)
    C2 = h2.shape[0]

    # ---- SKConv branches: depthwise dilated 3x3 (BN scale folded into w) ----
    wdw = wdw_ref[...]                                       # (C2, 2*9)
    tdw = tdw_ref[...]                                       # (C2, 2)
    branches = []
    for i in range(2):
        dil = i + 1
        acc = jnp.zeros((C2, HW), jnp.float32)
        for kh in range(3):
            for kw in range(3):
                c = i * 9 + kh * 3 + kw
                acc = acc + wdw[:, c:c + 1] * shifted(
                    h2, (kh - 1) * dil, (kw - 1) * dil)
        branches.append(jnp.maximum(acc + tdw[:, i:i + 1], 0.0))
    o0, o1 = branches

    # ---- SK attention: GAP -> fc1+BN+ReLU -> fc2 -> softmax over branches ---
    u = o0 + o1                                              # (C2, HW)
    s = jnp.sum(u, axis=1, keepdims=True) * (1.0 / HW)       # (C2, 1)
    z = jnp.sum(wf1_ref[...] * s, axis=0, keepdims=True)     # (1, d)
    z = jnp.maximum(z * sf1_ref[...] + tf1_ref[...], 0.0)
    logits = jnp.sum(wf2_ref[...] * z, axis=1, keepdims=True)  # (2*C2, 1)
    l0 = logits[:C2, :]
    l1 = logits[C2:, :]
    mx = jnp.maximum(l0, l1)
    e0 = jnp.exp(l0 - mx)
    e1 = jnp.exp(l1 - mx)
    inv = 1.0 / (e0 + e1)                       # exact softmax (parity)
    v = (e0 * inv) * o0 + (e1 * inv) * o1       # (C2, HW)

    o_ref[0] = v.astype(o_ref.dtype)            # lane-dense store, no transpose


def _fold_bn(bn, bias=None):
    scale = bn["gamma"] / jnp.sqrt(bn["var"] + EPS)
    shift = bn["beta"] - bn["mean"] * scale
    if bias is not None:
        shift = shift + bias * scale
    return scale, shift


def decoder_fused(params, x_nchw):
    """x_nchw: (B, Cin, H, W) float32 -> (B, Cout, H, W) float32."""
    B, Cin, H, W = x_nchw.shape
    HW = H * W
    c1p, c2p, sk = params["conv1"], params["conv2"], params["sk"]
    C1 = c1p["w"].shape[0]
    C2 = c2p["w"].shape[0]
    M = len(sk["branch"])                      # static python int
    assert M == 2, "kernel implements the SKConv M=2 case"
    d = sk["fc1_w"].shape[0]
    assert sk["branch"][0]["w"].shape[1] == 1, "depthwise (groups == channels) only"

    # Dense conv slabs: (Cout, 9*Cin), tap-major columns, bf16 for the MXU.
    w1 = jnp.transpose(c1p["w"], (0, 2, 3, 1)).reshape(C1, 9 * Cin).astype(jnp.bfloat16)
    w2 = jnp.transpose(c2p["w"], (0, 2, 3, 1)).reshape(C2, 9 * C1).astype(jnp.bfloat16)
    s1, t1 = _fold_bn(c1p["bn"], c1p["b"])
    s2, t2 = _fold_bn(c2p["bn"], c2p["b"])
    s1, t1 = s1.reshape(C1, 1), t1.reshape(C1, 1)
    s2, t2 = s2.reshape(C2, 1), t2.reshape(C2, 1)

    # Depthwise dilated branch weights: (C2, 2*9), BN scale folded in.
    wdw_cols, tdw_cols = [], []
    for i in range(M):
        br = sk["branch"][i]
        sc, sh = _fold_bn(br["bn"])
        wdw_cols.append(br["w"].reshape(C2, 9) * sc[:, None])
        tdw_cols.append(sh.reshape(C2, 1))
    wdw = jnp.concatenate(wdw_cols, axis=1).astype(jnp.float32)   # (C2, 18)
    tdw = jnp.concatenate(tdw_cols, axis=1).astype(jnp.float32)   # (C2, 2)

    # SK attention weights (orientations chosen so no in-kernel transposes).
    wf1 = sk["fc1_w"].reshape(d, C2).T.astype(jnp.float32)        # (C2, d)
    sf1, tf1 = _fold_bn(sk["fc1_bn"])
    sf1, tf1 = sf1.reshape(1, d), tf1.reshape(1, d)
    wf2 = sk["fc2_w"].reshape(M * C2, d).astype(jnp.float32)      # (2*C2, d)

    x_flat = x_nchw.reshape(B, Cin, HW)        # NCHW stays NCHW, just flattened

    kern = functools.partial(_decoder_kernel, H=H, W=W)
    out = pl.pallas_call(
        kern,
        out_shape=jax.ShapeDtypeStruct((B, C2, HW), jnp.float32),
        grid=(B,),
        in_specs=[
            pl.BlockSpec((1, Cin, HW), lambda b: (b, 0, 0)),
            pl.BlockSpec((C1, 9 * Cin), lambda b: (0, 0)),
            pl.BlockSpec((C1, 1), lambda b: (0, 0)),
            pl.BlockSpec((C1, 1), lambda b: (0, 0)),
            pl.BlockSpec((C2, 9 * C1), lambda b: (0, 0)),
            pl.BlockSpec((C2, 1), lambda b: (0, 0)),
            pl.BlockSpec((C2, 1), lambda b: (0, 0)),
            pl.BlockSpec((C2, 2 * 9), lambda b: (0, 0)),
            pl.BlockSpec((C2, 2), lambda b: (0, 0)),
            pl.BlockSpec((C2, d), lambda b: (0, 0)),
            pl.BlockSpec((1, d), lambda b: (0, 0)),
            pl.BlockSpec((1, d), lambda b: (0, 0)),
            pl.BlockSpec((2 * C2, d), lambda b: (0, 0)),
        ],
        out_specs=pl.BlockSpec((1, C2, HW), lambda b: (b, 0, 0)),
        compiler_params=pltpu.CompilerParams(dimension_semantics=("parallel",)),
    )(x_flat, w1, s1, t1, w2, s2, t2, wdw, tdw, wf1, sf1, tf1, wf2)

    return out.reshape(B, C2, H, W)


# ---------------------------------------------------------------------------
# Glue: bilinear 2x upsample in NCHW (align_corners=False, matching
# F.upsample(scale_factor=2, mode='bilinear') on current PyTorch).
# TODO(synk): could be fused into the kernel to save one HBM round trip.
# ---------------------------------------------------------------------------
def bilinear_upsample_2x_nchw(x):
    B, C, H, W = x.shape

    def grid_1d(n):
        o = jnp.arange(2 * n, dtype=jnp.float32)
        src = jnp.clip((o + 0.5) * 0.5 - 0.5, 0.0, float(n - 1))
        i0 = jnp.floor(src).astype(jnp.int32)
        i1 = jnp.minimum(i0 + 1, n - 1)
        f = src - i0.astype(jnp.float32)
        return i0, i1, f

    i0, i1, fh = grid_1d(H)
    x = (x[:, :, i0, :] * (1.0 - fh)[None, None, :, None]
         + x[:, :, i1, :] * fh[None, None, :, None])
    j0, j1, fw = grid_1d(W)
    x = (x[:, :, :, j0] * (1.0 - fw)[None, None, None, :]
         + x[:, :, :, j1] * fw[None, None, None, :])
    return x


# ---------------------------------------------------------------------------
# Decoder forward (NCHW in / NCHW out) + deterministic parameter init
# ---------------------------------------------------------------------------
def decoder_forward(params, x, e=None):
    x = bilinear_upsample_2x_nchw(x)
    if e is not None:
        x = jnp.concatenate([x, e], axis=1)
        # TODO(synk): F.dropout2d(p=0.5) with functional default training=True is
        # stochastic; it is not applied here (inference parity only).
    return decoder_fused(params, x)


def init_params(key, in_channels, channels, out_channels, M=2, r=16, L=32):
    d = max(out_channels // r, L)
    keys = iter(jax.random.split(key, 64))

    def nrm(shape, s=0.1):
        return (s * jax.random.normal(next(keys), shape)).astype(jnp.float32)

    def bn_params(c):
        return dict(gamma=1.0 + nrm((c,)), beta=nrm((c,)),
                    mean=nrm((c,)), var=1.0 + jnp.abs(nrm((c,))))

    assert out_channels == 32, \
        "SKConv grouped conv implemented for the depthwise case (groups=32, 1 ch/group)"

    return {
        "conv1": dict(w=nrm((channels, in_channels, 3, 3)), b=nrm((channels,)),
                      bn=bn_params(channels)),
        "conv2": dict(w=nrm((out_channels, channels, 3, 3)), b=nrm((out_channels,)),
                      bn=bn_params(out_channels)),
        "sk": dict(
            branch=[dict(w=nrm((out_channels, 1, 3, 3)), bn=bn_params(out_channels))
                    for _ in range(M)],
            fc1_w=nrm((d, out_channels, 1, 1)),
            fc1_bn=bn_params(d),
            fc2_w=nrm((out_channels * M, d, 1, 1))),
    }


if __name__ == "__main__":
    B, in_channels, channels, out_channels = 2, 16, 32, 32
    H0 = W0 = 8  # upsampled to 16x16 inside the decoder -> HW = 256 lanes

    root = jax.random.PRNGKey(0)
    k_param, k_x = jax.random.split(root)
    params = init_params(k_param, in_channels, channels, out_channels)
    x = jax.random.normal(k_x, (B, in_channels, H0, W0), dtype=jnp.float32)

    fwd = jax.jit(decoder_forward)
    y = jax.block_until_ready(fwd(params, x))

    assert y.shape == (B, out_channels, 2 * H0, 2 * W0), y.shape
    assert bool(jnp.all(jnp.isfinite(y)))
    print("KERNEL_OK")
</pallas_src>

<mosaic_0001>
module attributes {stable_mosaic.version = 11 : i64} {
  func.func @_decoder_kernel(%arg0: i32, %arg1: memref<1x16x256xf32, #tpu.memory_space<vmem>>, %arg2: memref<32x144xbf16, #tpu.memory_space<vmem>>, %arg3: memref<32x1xf32, #tpu.memory_space<vmem>>, %arg4: memref<32x1xf32, #tpu.memory_space<vmem>>, %arg5: memref<32x288xbf16, #tpu.memory_space<vmem>>, %arg6: memref<32x1xf32, #tpu.memory_space<vmem>>, %arg7: memref<32x1xf32, #tpu.memory_space<vmem>>, %arg8: memref<32x18xf32, #tpu.memory_space<vmem>>, %arg9: memref<32x2xf32, #tpu.memory_space<vmem>>, %arg10: memref<32x32xf32, #tpu.memory_space<vmem>>, %arg11: memref<1x32xf32, #tpu.memory_space<vmem>>, %arg12: memref<1x32xf32, #tpu.memory_space<vmem>>, %arg13: memref<64x32xf32, #tpu.memory_space<vmem>>, %arg14: memref<1x32x256xf32, #tpu.memory_space<vmem>>) attributes {dimension_semantics = [#tpu.dimension_semantics<parallel>], iteration_bounds = array<i64: 2>, scalar_prefetch = 0 : i64, scratch_operands = 0 : i64, tpu.core_type = #tpu.core_type<tc>, window_params = [{transform_indices = @transform_0, window_bounds = array<i64: 1, 16, 256>}, {pipeline_mode = #tpu.pipeline_mode<synchronous>, transform_indices = @transform_1, window_bounds = array<i64: 32, 144>}, {pipeline_mode = #tpu.pipeline_mode<synchronous>, transform_indices = @transform_2, window_bounds = array<i64: 32, 1>}, {pipeline_mode = #tpu.pipeline_mode<synchronous>, transform_indices = @transform_3, window_bounds = array<i64: 32, 1>}, {pipeline_mode = #tpu.pipeline_mode<synchronous>, transform_indices = @transform_4, window_bounds = array<i64: 32, 288>}, {pipeline_mode = #tpu.pipeline_mode<synchronous>, transform_indices = @transform_5, window_bounds = array<i64: 32, 1>}, {pipeline_mode = #tpu.pipeline_mode<synchronous>, transform_indices = @transform_6, window_bounds = array<i64: 32, 1>}, {pipeline_mode = #tpu.pipeline_mode<synchronous>, transform_indices = @transform_7, window_bounds = array<i64: 32, 18>}, {pipeline_mode = #tpu.pipeline_mode<synchronous>, transform_indices = @transform_8, window_bounds = array<i64: 32, 2>}, {pipeline_mode = #tpu.pipeline_mode<synchronous>, transform_indices = @transform_9, window_bounds = array<i64: 32, 32>}, {pipeline_mode = #tpu.pipeline_mode<synchronous>, transform_indices = @transform_10, window_bounds = array<i64: 1, 32>}, {pipeline_mode = #tpu.pipeline_mode<synchronous>, transform_indices = @transform_11, window_bounds = array<i64: 1, 32>}, {pipeline_mode = #tpu.pipeline_mode<synchronous>, transform_indices = @transform_12, window_bounds = array<i64: 64, 32>}, {transform_indices = @transform_13, window_bounds = array<i64: 1, 32, 256>}]} {
    %0 = tpu.iota {dimensions = array<i32: 1>} : vector<1x256xi32>
    %c4_i32 = arith.constant 4 : i32
    %1 = vector.broadcast %c4_i32 : i32 to vector<1x256xi32>
    %2 = arith.shrsi %0, %1 : vector<1x256xi32>
    %c15_i32 = arith.constant 15 : i32
    %3 = vector.broadcast %c15_i32 : i32 to vector<1x256xi32>
    %4 = arith.andi %0, %3 : vector<1x256xi32>
    %c0 = arith.constant 0 : index
    %c0_0 = arith.constant 0 : index
    %c0_1 = arith.constant 0 : index
    %5 = vector.load %arg1[%c0, %c0_0, %c0_1] : memref<1x16x256xf32, #tpu.memory_space<vmem>>, vector<1x16x256xf32>
    %6 = vector.shape_cast %5 : vector<1x16x256xf32> to vector<16x256xf32>
    %c17_i32 = arith.constant 17 : i32
    %7 = tpu.dynamic_rotate %6 by %c17_i32 dim 1 : vector<16x256xf32>, i32 -> vector<16x256xf32>
    %c1_i32 = arith.constant 1 : i32
    %8 = vector.broadcast %c1_i32 : i32 to vector<1x256xi32>
    %9 = arith.cmpi sge, %2, %8 : vector<1x256xi32>
    %c1_i32_2 = arith.constant 1 : i32
    %10 = vector.broadcast %c1_i32_2 : i32 to vector<1x256xi32>
    %11 = arith.cmpi sge, %4, %10 : vector<1x256xi32>
    %12 = arith.andi %9, %11 : vector<1x256xi1>
    %cst = arith.constant 0.000000e+00 : f32
    %13 = vector.broadcast %cst : f32 to vector<16x256xf32>
    %14 = vector.shape_cast %12 : vector<1x256xi1> to vector<1x256xi1>
    %15 = vector.broadcast %14 : vector<1x256xi1> to vector<16x256xi1>
    %16 = arith.select %15, %7, %13 : vector<16x256xi1>, vector<16x256xf32>
    %17 = arith.truncf %16 : vector<16x256xf32> to vector<16x256xbf16>
    %c16_i32 = arith.constant 16 : i32
    %18 = tpu.dynamic_rotate %6 by %c16_i32 dim 1 : vector<16x256xf32>, i32 -> vector<16x256xf32>
    %c1_i32_3 = arith.constant 1 : i32
    %19 = vector.broadcast %c1_i32_3 : i32 to vector<1x256xi32>
    %20 = arith.cmpi sge, %2, %19 : vector<1x256xi32>
    %cst_4 = arith.constant 0.000000e+00 : f32
    %21 = vector.broadcast %cst_4 : f32 to vector<16x256xf32>
    %22 = vector.shape_cast %20 : vector<1x256xi1> to vector<1x256xi1>
    %23 = vector.broadcast %22 : vector<1x256xi1> to vector<16x256xi1>
    %24 = arith.select %23, %18, %21 : vector<16x256xi1>, vector<16x256xf32>
    %25 = arith.truncf %24 : vector<16x256xf32> to vector<16x256xbf16>
    %c15_i32_5 = arith.constant 15 : i32
    %26 = tpu.dynamic_rotate %6 by %c15_i32_5 dim 1 : vector<16x256xf32>, i32 -> vector<16x256xf32>
    %c1_i32_6 = arith.constant 1 : i32
    %27 = vector.broadcast %c1_i32_6 : i32 to vector<1x256xi32>
    %28 = arith.cmpi sge, %2, %27 : vector<1x256xi32>
    %c15_i32_7 = arith.constant 15 : i32
    %29 = vector.broadcast %c15_i32_7 : i32 to vector<1x256xi32>
    %30 = arith.cmpi slt, %4, %29 : vector<1x256xi32>
    %31 = arith.andi %28, %30 : vector<1x256xi1>
    %cst_8 = arith.constant 0.000000e+00 : f32
    %32 = vector.broadcast %cst_8 : f32 to vector<16x256xf32>
    %33 = vector.shape_cast %31 : vector<1x256xi1> to vector<1x256xi1>
    %34 = vector.broadcast %33 : vector<1x256xi1> to vector<16x256xi1>
    %35 = arith.select %34, %26, %32 : vector<16x256xi1>, vector<16x256xf32>
    %36 = arith.truncf %35 : vector<16x256xf32> to vector<16x256xbf16>
    %c1_i32_9 = arith.constant 1 : i32
    %37 = tpu.dynamic_rotate %6 by %c1_i32_9 dim 1 : vector<16x256xf32>, i32 -> vector<16x256xf32>
    %c1_i32_10 = arith.constant 1 : i32
    %38 = vector.broadcast %c1_i32_10 : i32 to vector<1x256xi32>
    %39 = arith.cmpi sge, %4, %38 : vector<1x256xi32>
    %cst_11 = arith.constant 0.000000e+00 : f32
    %40 = vector.broadcast %cst_11 : f32 to vector<16x256xf32>
    %41 = vector.shape_cast %39 : vector<1x256xi1> to vector<1x256xi1>
    %42 = vector.broadcast %41 : vector<1x256xi1> to vector<16x256xi1>
    %43 = arith.select %42, %37, %40 : vector<16x256xi1>, vector<16x256xf32>
    %44 = arith.truncf %43 : vector<16x256xf32> to vector<16x256xbf16>
    %45 = arith.truncf %6 : vector<16x256xf32> to vector<16x256xbf16>
    %c255_i32 = arith.constant 255 : i32
    %46 = tpu.dynamic_rotate %6 by %c255_i32 dim 1 : vector<16x256xf32>, i32 -> vector<16x256xf32>
    %c15_i32_12 = arith.constant 15 : i32
    %47 = vector.broadcast %c15_i32_12 : i32 to vector<1x256xi32>
    %48 = arith.cmpi slt, %4, %47 : vector<1x256xi32>
    %cst_13 = arith.constant 0.000000e+00 : f32
    %49 = vector.broadcast %cst_13 : f32 to vector<16x256xf32>
    %50 = vector.shape_cast %48 : vector<1x256xi1> to vector<1x256xi1>
    %51 = vector.broadcast %50 : vector<1x256xi1> to vector<16x256xi1>
    %52 = arith.select %51, %46, %49 : vector<16x256xi1>, vector<16x256xf32>
    %53 = arith.truncf %52 : vector<16x256xf32> to vector<16x256xbf16>
    %c241_i32 = arith.constant 241 : i32
    %54 = tpu.dynamic_rotate %6 by %c241_i32 dim 1 : vector<16x256xf32>, i32 -> vector<16x256xf32>
    %c15_i32_14 = arith.constant 15 : i32
    %55 = vector.broadcast %c15_i32_14 : i32 to vector<1x256xi32>
    %56 = arith.cmpi slt, %2, %55 : vector<1x256xi32>
    %c1_i32_15 = arith.constant 1 : i32
    %57 = vector.broadcast %c1_i32_15 : i32 to vector<1x256xi32>
    %58 = arith.cmpi sge, %4, %57 : vector<1x256xi32>
    %59 = arith.andi %56, %58 : vector<1x256xi1>
    %cst_16 = arith.constant 0.000000e+00 : f32
    %60 = vector.broadcast %cst_16 : f32 to vector<16x256xf32>
    %61 = vector.shape_cast %59 : vector<1x256xi1> to vector<1x256xi1>
    %62 = vector.broadcast %61 : vector<1x256xi1> to vector<16x256xi1>
    %63 = arith.select %62, %54, %60 : vector<16x256xi1>, vector<16x256xf32>
    %64 = arith.truncf %63 : vector<16x256xf32> to vector<16x256xbf16>
    %c240_i32 = arith.constant 240 : i32
    %65 = tpu.dynamic_rotate %6 by %c240_i32 dim 1 : vector<16x256xf32>, i32 -> vector<16x256xf32>
    %c15_i32_17 = arith.constant 15 : i32
    %66 = vector.broadcast %c15_i32_17 : i32 to vector<1x256xi32>
    %67 = arith.cmpi slt, %2, %66 : vector<1x256xi32>
    %cst_18 = arith.constant 0.000000e+00 : f32
    %68 = vector.broadcast %cst_18 : f32 to vector<16x256xf32>
    %69 = vector.shape_cast %67 : vector<1x256xi1> to vector<1x256xi1>
    %70 = vector.broadcast %69 : vector<1x256xi1> to vector<16x256xi1>
    %71 = arith.select %70, %65, %68 : vector<16x256xi1>, vector<16x256xf32>
    %72 = arith.truncf %71 : vector<16x256xf32> to vector<16x256xbf16>
    %c239_i32 = arith.constant 239 : i32
    %73 = tpu.dynamic_rotate %6 by %c239_i32 dim 1 : vector<16x256xf32>, i32 -> vector<16x256xf32>
    %c15_i32_19 = arith.constant 15 : i32
    %74 = vector.broadcast %c15_i32_19 : i32 to vector<1x256xi32>
    %75 = arith.cmpi slt, %2, %74 : vector<1x256xi32>
    %c15_i32_20 = arith.constant 15 : i32
    %76 = vector.broadcast %c15_i32_20 : i32 to vector<1x256xi32>
    %77 = arith.cmpi slt, %4, %76 : vector<1x256xi32>
    %78 = arith.andi %75, %77 : vector<1x256xi1>
    %cst_21 = arith.constant 0.000000e+00 : f32
    %79 = vector.broadcast %cst_21 : f32 to vector<16x256xf32>
    %80 = vector.shape_cast %78 : vector<1x256xi1> to vector<1x256xi1>
    %81 = vector.broadcast %80 : vector<1x256xi1> to vector<16x256xi1>
    %82 = arith.select %81, %73, %79 : vector<16x256xi1>, vector<16x256xf32>
    %83 = arith.truncf %82 : vector<16x256xf32> to vector<16x256xbf16>
    %84 = tpu.concatenate %17, %25, %36, %44, %45, %53, %64, %72, %83 in 0 : vector<16x256xbf16>, vector<16x256xbf16>, vector<16x256xbf16>, vector<16x256xbf16>, vector<16x256xbf16>, vector<16x256xbf16>, vector<16x256xbf16>, vector<16x256xbf16>, vector<16x256xbf16> -> vector<144x256xbf16>
    %c0_22 = arith.constant 0 : index
    %c0_23 = arith.constant 0 : index
    %85 = vector.load %arg2[%c0_22, %c0_23] : memref<32x144xbf16, #tpu.memory_space<vmem>>, vector<32x144xbf16>
    %cst_24 = arith.constant dense<0.000000e+00> : vector<32x256xf32>
    %86 = tpu.matmul %85, %84, %cst_24 {dimension_numbers = #tpu.dot_dimension_numbers<[1], [0], [0], [1], [0, 0, 1, 1], [], []>} : vector<32x144xbf16>, vector<144x256xbf16>, vector<32x256xf32> -> vector<32x256xf32>
    %c0_25 = arith.constant 0 : index
    %c0_26 = arith.constant 0 : index
    %87 = vector.load %arg3[%c0_25, %c0_26] : memref<32x1xf32, #tpu.memory_space<vmem>>, vector<32x1xf32>
    %88 = vector.broadcast %87 : vector<32x1xf32> to vector<32x256xf32>
    %89 = arith.mulf %86, %88 : vector<32x256xf32>
    %c0_27 = arith.constant 0 : index
    %c0_28 = arith.constant 0 : index
    %90 = vector.load %arg4[%c0_27, %c0_28] : memref<32x1xf32, #tpu.memory_space<vmem>>, vector<32x1xf32>
    %91 = vector.broadcast %90 : vector<32x1xf32> to vector<32x256xf32>
    %92 = arith.addf %89, %91 : vector<32x256xf32>
    %cst_29 = arith.constant 0.000000e+00 : f32
    %93 = vector.broadcast %cst_29 : f32 to vector<32x256xf32>
    %94 = arith.maximumf %92, %93 : vector<32x256xf32>
    %c17_i32_30 = arith.constant 17 : i32
    %95 = tpu.dynamic_rotate %94 by %c17_i32_30 dim 1 : vector<32x256xf32>, i32 -> vector<32x256xf32>
    %cst_31 = arith.constant 0.000000e+00 : f32
    %96 = vector.broadcast %cst_31 : f32 to vector<32x256xf32>
    %97 = vector.shape_cast %12 : vector<1x256xi1> to vector<1x256xi1>
    %98 = vector.broadcast %97 : vector<1x256xi1> to vector<32x256xi1>
    %99 = arith.select %98, %95, %96 : vector<32x256xi1>, vector<32x256xf32>
    %100 = arith.truncf %99 : vector<32x256xf32> to vector<32x256xbf16>
    %c16_i32_32 = arith.constant 16 : i32
    %101 = tpu.dynamic_rotate %94 by %c16_i32_32 dim 1 : vector<32x256xf32>, i32 -> vector<32x256xf32>
    %cst_33 = arith.constant 0.000000e+00 : f32
    %102 = vector.broadcast %cst_33 : f32 to vector<32x256xf32>
    %103 = vector.shape_cast %20 : vector<1x256xi1> to vector<1x256xi1>
    %104 = vector.broadcast %103 : vector<1x256xi1> to vector<32x256xi1>
    %105 = arith.select %104, %101, %102 : vector<32x256xi1>, vector<32x256xf32>
    %106 = arith.truncf %105 : vector<32x256xf32> to vector<32x256xbf16>
    %c15_i32_34 = arith.constant 15 : i32
    %107 = tpu.dynamic_rotate %94 by %c15_i32_34 dim 1 : vector<32x256xf32>, i32 -> vector<32x256xf32>
    %cst_35 = arith.constant 0.000000e+00 : f32
    %108 = vector.broadcast %cst_35 : f32 to vector<32x256xf32>
    %109 = vector.shape_cast %31 : vector<1x256xi1> to vector<1x256xi1>
    %110 = vector.broadcast %109 : vector<1x256xi1> to vector<32x256xi1>
    %111 = arith.select %110, %107, %108 : vector<32x256xi1>, vector<32x256xf32>
    %112 = arith.truncf %111 : vector<32x256xf32> to vector<32x256xbf16>
    %c1_i32_36 = arith.constant 1 : i32
    %113 = tpu.dynamic_rotate %94 by %c1_i32_36 dim 1 : vector<32x256xf32>, i32 -> vector<32x256xf32>
    %cst_37 = arith.constant 0.000000e+00 : f32
    %114 = vector.broadcast %cst_37 : f32 to vector<32x256xf32>
    %115 = vector.shape_cast %39 : vector<1x256xi1> to vector<1x256xi1>
    %116 = vector.broadcast %115 : vector<1x256xi1> to vector<32x256xi1>
    %117 = arith.select %116, %113, %114 : vector<32x256xi1>, vector<32x256xf32>
    %118 = arith.truncf %117 : vector<32x256xf32> to vector<32x256xbf16>
    %119 = arith.truncf %94 : vector<32x256xf32> to vector<32x256xbf16>
    %c255_i32_38 = arith.constant 255 : i32
    %120 = tpu.dynamic_rotate %94 by %c255_i32_38 dim 1 : vector<32x256xf32>, i32 -> vector<32x256xf32>
    %cst_39 = arith.constant 0.000000e+00 : f32
    %121 = vector.broadcast %cst_39 : f32 to vector<32x256xf32>
    %122 = vector.shape_cast %48 : vector<1x256xi1> to vector<1x256xi1>
    %123 = vector.broadcast %122 : vector<1x256xi1> to vector<32x256xi1>
    %124 = arith.select %123, %120, %121 : vector<32x256xi1>, vector<32x256xf32>
    %125 = arith.truncf %124 : vector<32x256xf32> to vector<32x256xbf16>
    %c241_i32_40 = arith.constant 241 : i32
    %126 = tpu.dynamic_rotate %94 by %c241_i32_40 dim 1 : vector<32x256xf32>, i32 -> vector<32x256xf32>
    %cst_41 = arith.constant 0.000000e+00 : f32
    %127 = vector.broadcast %cst_41 : f32 to vector<32x256xf32>
    %128 = vector.shape_cast %59 : vector<1x256xi1> to vector<1x256xi1>
    %129 = vector.broadcast %128 : vector<1x256xi1> to vector<32x256xi1>
    %130 = arith.select %129, %126, %127 : vector<32x256xi1>, vector<32x256xf32>
    %131 = arith.truncf %130 : vector<32x256xf32> to vector<32x256xbf16>
    %c240_i32_42 = arith.constant 240 : i32
    %132 = tpu.dynamic_rotate %94 by %c240_i32_42 dim 1 : vector<32x256xf32>, i32 -> vector<32x256xf32>
    %cst_43 = arith.constant 0.000000e+00 : f32
    %133 = vector.broadcast %cst_43 : f32 to vector<32x256xf32>
    %134 = vector.shape_cast %67 : vector<1x256xi1> to vector<1x256xi1>
    %135 = vector.broadcast %134 : vector<1x256xi1> to vector<32x256xi1>
    %136 = arith.select %135, %132, %133 : vector<32x256xi1>, vector<32x256xf32>
    %137 = arith.truncf %136 : vector<32x256xf32> to vector<32x256xbf16>
    %c239_i32_44 = arith.constant 239 : i32
    %138 = tpu.dynamic_rotate %94 by %c239_i32_44 dim 1 : vector<32x256xf32>, i32 -> vector<32x256xf32>
    %cst_45 = arith.constant 0.000000e+00 : f32
    %139 = vector.broadcast %cst_45 : f32 to vector<32x256xf32>
    %140 = vector.shape_cast %78 : vector<1x256xi1> to vector<1x256xi1>
    %141 = vector.broadcast %140 : vector<1x256xi1> to vector<32x256xi1>
    %142 = arith.select %141, %138, %139 : vector<32x256xi1>, vector<32x256xf32>
    %143 = arith.truncf %142 : vector<32x256xf32> to vector<32x256xbf16>
    %144 = tpu.concatenate %100, %106, %112, %118, %119, %125, %131, %137, %143 in 0 : vector<32x256xbf16>, vector<32x256xbf16>, vector<32x256xbf16>, vector<32x256xbf16>, vector<32x256xbf16>, vector<32x256xbf16>, vector<32x256xbf16>, vector<32x256xbf16>, vector<32x256xbf16> -> vector<288x256xbf16>
    %c0_46 = arith.constant 0 : index
    %c0_47 = arith.constant 0 : index
    %145 = vector.load %arg5[%c0_46, %c0_47] : memref<32x288xbf16, #tpu.memory_space<vmem>>, vector<32x288xbf16>
    %cst_48 = arith.constant dense<0.000000e+00> : vector<32x256xf32>
    %146 = tpu.matmul %145, %144, %cst_48 {dimension_numbers = #tpu.dot_dimension_numbers<[1], [0], [0], [1], [0, 0, 1, 1], [], []>} : vector<32x288xbf16>, vector<288x256xbf16>, vector<32x256xf32> -> vector<32x256xf32>
    %c0_49 = arith.constant 0 : index
    %c0_50 = arith.constant 0 : index
    %147 = vector.load %arg6[%c0_49, %c0_50] : memref<32x1xf32, #tpu.memory_space<vmem>>, vector<32x1xf32>
    %148 = vector.broadcast %147 : vector<32x1xf32> to vector<32x256xf32>
    %149 = arith.mulf %146, %148 : vector<32x256xf32>
    %c0_51 = arith.constant 0 : index
    %c0_52 = arith.constant 0 : index
    %150 = vector.load %arg7[%c0_51, %c0_52] : memref<32x1xf32, #tpu.memory_space<vmem>>, vector<32x1xf32>
    %151 = vector.broadcast %150 : vector<32x1xf32> to vector<32x256xf32>
    %152 = arith.addf %149, %151 : vector<32x256xf32>
    %cst_53 = arith.constant 0.000000e+00 : f32
    %153 = vector.broadcast %cst_53 : f32 to vector<32x256xf32>
    %154 = arith.maximumf %152, %153 : vector<32x256xf32>
    %c0_54 = arith.constant 0 : index
    %c0_55 = arith.constant 0 : index
    %155 = vector.load %arg8[%c0_54, %c0_55] : memref<32x18xf32, #tpu.memory_space<vmem>>, vector<32x18xf32>
    %c0_56 = arith.constant 0 : index
    %c0_57 = arith.constant 0 : index
    %156 = vector.load %arg9[%c0_56, %c0_57] : memref<32x2xf32, #tpu.memory_space<vmem>>, vector<32x2xf32>
    %cst_58 = arith.constant 0.000000e+00 : f32
    %157 = vector.broadcast %cst_58 : f32 to vector<32x256xf32>
    %158 = vector.extract_strided_slice %155 {offsets = [0, 0], sizes = [32, 1], strides = [1, 1]} : vector<32x18xf32> to vector<32x1xf32>
    %c17_i32_59 = arith.constant 17 : i32
    %159 = tpu.dynamic_rotate %154 by %c17_i32_59 dim 1 : vector<32x256xf32>, i32 -> vector<32x256xf32>
    %cst_60 = arith.constant 0.000000e+00 : f32
    %160 = vector.broadcast %cst_60 : f32 to vector<32x256xf32>
    %161 = vector.shape_cast %12 : vector<1x256xi1> to vector<1x256xi1>
    %162 = vector.broadcast %161 : vector<1x256xi1> to vector<32x256xi1>
    %163 = arith.select %162, %159, %160 : vector<32x256xi1>, vector<32x256xf32>
    %164 = vector.broadcast %158 : vector<32x1xf32> to vector<32x256xf32>
    %165 = arith.mulf %164, %163 : vector<32x256xf32>
    %166 = arith.addf %157, %165 : vector<32x256xf32>
    %167 = vector.extract_strided_slice %155 {offsets = [0, 1], sizes = [32, 1], strides = [1, 1]} : vector<32x18xf32> to vector<32x1xf32>
    %c16_i32_61 = arith.constant 16 : i32
    %168 = tpu.dynamic_rotate %154 by %c16_i32_61 dim 1 : vector<32x256xf32>, i32 -> vector<32x256xf32>
    %cst_62 = arith.constant 0.000000e+00 : f32
    %169 = vector.broadcast %cst_62 : f32 to vector<32x256xf32>
    %170 = vector.shape_cast %20 : vector<1x256xi1> to vector<1x256xi1>
    %171 = vector.broadcast %170 : vector<1x256xi1> to vector<32x256xi1>
    %172 = arith.select %171, %168, %169 : vector<32x256xi1>, vector<32x256xf32>
    %173 = vector.broadcast %167 : vector<32x1xf32> to vector<32x256xf32>
    %174 = arith.mulf %173, %172 : vector<32x256xf32>
    %175 = arith.addf %166, %174 : vector<32x256xf32>
    %176 = vector.extract_strided_slice %155 {offsets = [0, 2], sizes = [32, 1], strides = [1, 1]} : vector<32x18xf32> to vector<32x1xf32>
    %c15_i32_63 = arith.constant 15 : i32
    %177 = tpu.dynamic_rotate %154 by %c15_i32_63 dim 1 : vector<32x256xf32>, i32 -> vector<32x256xf32>
    %cst_64 = arith.constant 0.000000e+00 : f32
    %178 = vector.broadcast %cst_64 : f32 to vector<32x256xf32>
    %179 = vector.shape_cast %31 : vector<1x256xi1> to vector<1x256xi1>
    %180 = vector.broadcast %179 : vector<1x256xi1> to vector<32x256xi1>
    %181 = arith.select %180, %177, %178 : vector<32x256xi1>, vector<32x256xf32>
    %182 = vector.broadcast %176 : vector<32x1xf32> to vector<32x256xf32>
    %183 = arith.mulf %182, %181 : vector<32x256xf32>
    %184 = arith.addf %175, %183 : vector<32x256xf32>
    %185 = vector.extract_strided_slice %155 {offsets = [0, 3], sizes = [32, 1], strides = [1, 1]} : vector<32x18xf32> to vector<32x1xf32>
    %c1_i32_65 = arith.constant 1 : i32
    %186 = tpu.dynamic_rotate %154 by %c1_i32_65 dim 1 : vector<32x256xf32>, i32 -> vector<32x256xf32>
    %cst_66 = arith.constant 0.000000e+00 : f32
    %187 = vector.broadcast %cst_66 : f32 to vector<32x256xf32>
    %188 = vector.shape_cast %39 : vector<1x256xi1> to vector<1x256xi1>
    %189 = vector.broadcast %188 : vector<1x256xi1> to vector<32x256xi1>
    %190 = arith.select %189, %186, %187 : vector<32x256xi1>, vector<32x256xf32>
    %191 = vector.broadcast %185 : vector<32x1xf32> to vector<32x256xf32>
    %192 = arith.mulf %191, %190 : vector<32x256xf32>
    %193 = arith.addf %184, %192 : vector<32x256xf32>
    %194 = vector.extract_strided_slice %155 {offsets = [0, 4], sizes = [32, 1], strides = [1, 1]} : vector<32x18xf32> to vector<32x1xf32>
    %195 = vector.broadcast %194 : vector<32x1xf32> to vector<32x256xf32>
    %196 = arith.mulf %195, %154 : vector<32x256xf32>
    %197 = arith.addf %193, %196 : vector<32x256xf32>
    %198 = vector.extract_strided_slice %155 {offsets = [0, 5], sizes = [32, 1], strides = [1, 1]} : vector<32x18xf32> to vector<32x1xf32>
    %c255_i32_67 = arith.constant 255 : i32
    %199 = tpu.dynamic_rotate %154 by %c255_i32_67 dim 1 : vector<32x256xf32>, i32 -> vector<32x256xf32>
    %cst_68 = arith.constant 0.000000e+00 : f32
    %200 = vector.broadcast %cst_68 : f32 to vector<32x256xf32>
    %201 = vector.shape_cast %48 : vector<1x256xi1> to vector<1x256xi1>
    %202 = vector.broadcast %201 : vector<1x256xi1> to vector<32x256xi1>
    %203 = arith.select %202, %199, %200 : vector<32x256xi1>, vector<32x256xf32>
    %204 = vector.broadcast %198 : vector<32x1xf32> to vector<32x256xf32>
    %205 = arith.mulf %204, %203 : vector<32x256xf32>
    %206 = arith.addf %197, %205 : vector<32x256xf32>
    %207 = vector.extract_strided_slice %155 {offsets = [0, 6], sizes = [32, 1], strides = [1, 1]} : vector<32x18xf32> to vector<32x1xf32>
    %c241_i32_69 = arith.constant 241 : i32
    %208 = tpu.dynamic_rotate %154 by %c241_i32_69 dim 1 : vector<32x256xf32>, i32 -> vector<32x256xf32>
    %cst_70 = arith.constant 0.000000e+00 : f32
    %209 = vector.broadcast %cst_70 : f32 to vector<32x256xf32>
    %210 = vector.shape_cast %59 : vector<1x256xi1> to vector<1x256xi1>
    %211 = vector.broadcast %210 : vector<1x256xi1> to vector<32x256xi1>
    %212 = arith.select %211, %208, %209 : vector<32x256xi1>, vector<32x256xf32>
    %213 = vector.broadcast %207 : vector<32x1xf32> to vector<32x256xf32>
    %214 = arith.mulf %213, %212 : vector<32x256xf32>
    %215 = arith.addf %206, %214 : vector<32x256xf32>
    %216 = vector.extract_strided_slice %155 {offsets = [0, 7], sizes = [32, 1], strides = [1, 1]} : vector<32x18xf32> to vector<32x1xf32>
    %c240_i32_71 = arith.constant 240 : i32
    %217 = tpu.dynamic_rotate %154 by %c240_i32_71 dim 1 : vector<32x256xf32>, i32 -> vector<32x256xf32>
    %cst_72 = arith.constant 0.000000e+00 : f32
    %218 = vector.broadcast %cst_72 : f32 to vector<32x256xf32>
    %219 = vector.shape_cast %67 : vector<1x256xi1> to vector<1x256xi1>
    %220 = vector.broadcast %219 : vector<1x256xi1> to vector<32x256xi1>
    %221 = arith.select %220, %217, %218 : vector<32x256xi1>, vector<32x256xf32>
    %222 = vector.broadcast %216 : vector<32x1xf32> to vector<32x256xf32>
    %223 = arith.mulf %222, %221 : vector<32x256xf32>
    %224 = arith.addf %215, %223 : vector<32x256xf32>
    %225 = vector.extract_strided_slice %155 {offsets = [0, 8], sizes = [32, 1], strides = [1, 1]} : vector<32x18xf32> to vector<32x1xf32>
    %c239_i32_73 = arith.constant 239 : i32
    %226 = tpu.dynamic_rotate %154 by %c239_i32_73 dim 1 : vector<32x256xf32>, i32 -> vector<32x256xf32>
    %cst_74 = arith.constant 0.000000e+00 : f32
    %227 = vector.broadcast %cst_74 : f32 to vector<32x256xf32>
    %228 = vector.shape_cast %78 : vector<1x256xi1> to vector<1x256xi1>
    %229 = vector.broadcast %228 : vector<1x256xi1> to vector<32x256xi1>
    %230 = arith.select %229, %226, %227 : vector<32x256xi1>, vector<32x256xf32>
    %231 = vector.broadcast %225 : vector<32x1xf32> to vector<32x256xf32>
    %232 = arith.mulf %231, %230 : vector<32x256xf32>
    %233 = arith.addf %224, %232 : vector<32x256xf32>
    %234 = vector.extract_strided_slice %156 {offsets = [0, 0], sizes = [32, 1], strides = [1, 1]} : vector<32x2xf32> to vector<32x1xf32>
    %235 = vector.broadcast %234 : vector<32x1xf32> to vector<32x256xf32>
    %236 = arith.addf %233, %235 : vector<32x256xf32>
    %cst_75 = arith.constant 0.000000e+00 : f32
    %237 = vector.broadcast %cst_75 : f32 to vector<32x256xf32>
    %238 = arith.maximumf %236, %237 : vector<32x256xf32>
    %cst_76 = arith.constant 0.000000e+00 : f32
    %239 = vector.broadcast %cst_76 : f32 to vector<32x256xf32>
    %240 = vector.extract_strided_slice %155 {offsets = [0, 9], sizes = [32, 1], strides = [1, 1]} : vector<32x18xf32> to vector<32x1xf32>
    %c34_i32 = arith.constant 34 : i32
    %241 = tpu.dynamic_rotate %154 by %c34_i32 dim 1 : vector<32x256xf32>, i32 -> vector<32x256xf32>
    %c2_i32 = arith.constant 2 : i32
    %242 = vector.broadcast %c2_i32 : i32 to vector<1x256xi32>
    %243 = arith.cmpi sge, %2, %242 : vector<1x256xi32>
    %c2_i32_77 = arith.constant 2 : i32
    %244 = vector.broadcast %c2_i32_77 : i32 to vector<1x256xi32>
    %245 = arith.cmpi sge, %4, %244 : vector<1x256xi32>
    %246 = arith.andi %243, %245 : vector<1x256xi1>
    %cst_78 = arith.constant 0.000000e+00 : f32
    %247 = vector.broadcast %cst_78 : f32 to vector<32x256xf32>
    %248 = vector.shape_cast %246 : vector<1x256xi1> to vector<1x256xi1>
    %249 = vector.broadcast %248 : vector<1x256xi1> to vector<32x256xi1>
    %250 = arith.select %249, %241, %247 : vector<32x256xi1>, vector<32x256xf32>
    %251 = vector.broadcast %240 : vector<32x1xf32> to vector<32x256xf32>
    %252 = arith.mulf %251, %250 : vector<32x256xf32>
    %253 = arith.addf %239, %252 : vector<32x256xf32>
    %254 = vector.extract_strided_slice %155 {offsets = [0, 10], sizes = [32, 1], strides = [1, 1]} : vector<32x18xf32> to vector<32x1xf32>
    %c32_i32 = arith.constant 32 : i32
    %255 = tpu.dynamic_rotate %154 by %c32_i32 dim 1 : vector<32x256xf32>, i32 -> vector<32x256xf32>
    %c2_i32_79 = arith.constant 2 : i32
    %256 = vector.broadcast %c2_i32_79 : i32 to vector<1x256xi32>
    %257 = arith.cmpi sge, %2, %256 : vector<1x256xi32>
    %cst_80 = arith.constant 0.000000e+00 : f32
    %258 = vector.broadcast %cst_80 : f32 to vector<32x256xf32>
    %259 = vector.shape_cast %257 : vector<1x256xi1> to vector<1x256xi1>
    %260 = vector.broadcast %259 : vector<1x256xi1> to vector<32x256xi1>
    %261 = arith.select %260, %255, %258 : vector<32x256xi1>, vector<32x256xf32>
    %262 = vector.broadcast %254 : vector<32x1xf32> to vector<32x256xf32>
    %263 = arith.mulf %262, %261 : vector<32x256xf32>
    %264 = arith.addf %253, %263 : vector<32x256xf32>
    %265 = vector.extract_strided_slice %155 {offsets = [0, 11], sizes = [32, 1], strides = [1, 1]} : vector<32x18xf32> to vector<32x1xf32>
    %c30_i32 = arith.constant 30 : i32
    %266 = tpu.dynamic_rotate %154 by %c30_i32 dim 1 : vector<32x256xf32>, i32 -> vector<32x256xf32>
    %c2_i32_81 = arith.constant 2 : i32
    %267 = vector.broadcast %c2_i32_81 : i32 to vector<1x256xi32>
    %268 = arith.cmpi sge, %2, %267 : vector<1x256xi32>
    %c14_i32 = arith.constant 14 : i32
    %269 = vector.broadcast %c14_i32 : i32 to vector<1x256xi32>
    %270 = arith.cmpi slt, %4, %269 : vector<1x256xi32>
    %271 = arith.andi %268, %270 : vector<1x256xi1>
    %cst_82 = arith.constant 0.000000e+00 : f32
    %272 = vector.broadcast %cst_82 : f32 to vector<32x256xf32>
    %273 = vector.shape_cast %271 : vector<1x256xi1> to vector<1x256xi1>
    %274 = vector.broadcast %273 : vector<1x256xi1> to vector<32x256xi1>
    %275 = arith.select %274, %266, %272 : vector<32x256xi1>, vector<32x256xf32>
    %276 = vector.broadcast %265 : vector<32x1xf32> to vector<32x256xf32>
    %277 = arith.mulf %276, %275 : vector<32x256xf32>
    %278 = arith.addf %264, %277 : vector<32x256xf32>
    %279 = vector.extract_strided_slice %155 {offsets = [0, 12], sizes = [32, 1], strides = [1, 1]} : vector<32x18xf32> to vector<32x1xf32>
    %c2_i32_83 = arith.constant 2 : i32
    %280 = tpu.dynamic_rotate %154 by %c2_i32_83 dim 1 : vector<32x256xf32>, i32 -> vector<32x256xf32>
    %c2_i32_84 = arith.constant 2 : i32
    %281 = vector.broadcast %c2_i32_84 : i32 to vector<1x256xi32>
    %282 = arith.cmpi sge, %4, %281 : vector<1x256xi32>
    %cst_85 = arith.constant 0.000000e+00 : f32
    %283 = vector.broadcast %cst_85 : f32 to vector<32x256xf32>
    %284 = vector.shape_cast %282 : vector<1x256xi1> to vector<1x256xi1>
    %285 = vector.broadcast %284 : vector<1x256xi1> to vector<32x256xi1>
    %286 = arith.select %285, %280, %283 : vector<32x256xi1>, vector<32x256xf32>
    %287 = vector.broadcast %279 : vector<32x1xf32> to vector<32x256xf32>
    %288 = arith.mulf %287, %286 : vector<32x256xf32>
    %289 = arith.addf %278, %288 : vector<32x256xf32>
    %290 = vector.extract_strided_slice %155 {offsets = [0, 13], sizes = [32, 1], strides = [1, 1]} : vector<32x18xf32> to vector<32x1xf32>
    %291 = vector.broadcast %290 : vector<32x1xf32> to vector<32x256xf32>
    %292 = arith.mulf %291, %154 : vector<32x256xf32>
    %293 = arith.addf %289, %292 : vector<32x256xf32>
    %294 = vector.extract_strided_slice %155 {offsets = [0, 14], sizes = [32, 1], strides = [1, 1]} : vector<32x18xf32> to vector<32x1xf32>
    %c254_i32 = arith.constant 254 : i32
    %295 = tpu.dynamic_rotate %154 by %c254_i32 dim 1 : vector<32x256xf32>, i32 -> vector<32x256xf32>
    %c14_i32_86 = arith.constant 14 : i32
    %296 = vector.broadcast %c14_i32_86 : i32 to vector<1x256xi32>
    %297 = arith.cmpi slt, %4, %296 : vector<1x256xi32>
    %cst_87 = arith.constant 0.000000e+00 : f32
    %298 = vector.broadcast %cst_87 : f32 to vector<32x256xf32>
    %299 = vector.shape_cast %297 : vector<1x256xi1> to vector<1x256xi1>
    %300 = vector.broadcast %299 : vector<1x256xi1> to vector<32x256xi1>
    %301 = arith.select %300, %295, %298 : vector<32x256xi1>, vector<32x256xf32>
    %302 = vector.broadcast %294 : vector<32x1xf32> to vector<32x256xf32>
    %303 = arith.mulf %302, %301 : vector<32x256xf32>
    %304 = arith.addf %293, %303 : vector<32x256xf32>
    %305 = vector.extract_strided_slice %155 {offsets = [0, 15], sizes = [32, 1], strides = [1, 1]} : vector<32x18xf32> to vector<32x1xf32>
    %c226_i32 = arith.constant 226 : i32
    %306 = tpu.dynamic_rotate %154 by %c226_i32 dim 1 : vector<32x256xf32>, i32 -> vector<32x256xf32>
    %c14_i32_88 = arith.constant 14 : i32
    %307 = vector.broadcast %c14_i32_88 : i32 to vector<1x256xi32>
    %308 = arith.cmpi slt, %2, %307 : vector<1x256xi32>
    %c2_i32_89 = arith.constant 2 : i32
    %309 = vector.broadcast %c2_i32_89 : i32 to vector<1x256xi32>
    %310 = arith.cmpi sge, %4, %309 : vector<1x256xi32>
    %311 = arith.andi %308, %310 : vector<1x256xi1>
    %cst_90 = arith.constant 0.000000e+00 : f32
    %312 = vector.broadcast %cst_90 : f32 to vector<32x256xf32>
    %313 = vector.shape_cast %311 : vector<1x256xi1> to vector<1x256xi1>
    %314 = vector.broadcast %313 : vector<1x256xi1> to vector<32x256xi1>
    %315 = arith.select %314, %306, %312 : vector<32x256xi1>, vector<32x256xf32>
    %316 = vector.broadcast %305 : vector<32x1xf32> to vector<32x256xf32>
    %317 = arith.mulf %316, %315 : vector<32x256xf32>
    %318 = arith.addf %304, %317 : vector<32x256xf32>
    %319 = vector.extract_strided_slice %155 {offsets = [0, 16], sizes = [32, 1], strides = [1, 1]} : vector<32x18xf32> to vector<32x1xf32>
    %c224_i32 = arith.constant 224 : i32
    %320 = tpu.dynamic_rotate %154 by %c224_i32 dim 1 : vector<32x256xf32>, i32 -> vector<32x256xf32>
    %c14_i32_91 = arith.constant 14 : i32
    %321 = vector.broadcast %c14_i32_91 : i32 to vector<1x256xi32>
    %322 = arith.cmpi slt, %2, %321 : vector<1x256xi32>
    %cst_92 = arith.constant 0.000000e+00 : f32
    %323 = vector.broadcast %cst_92 : f32 to vector<32x256xf32>
    %324 = vector.shape_cast %322 : vector<1x256xi1> to vector<1x256xi1>
    %325 = vector.broadcast %324 : vector<1x256xi1> to vector<32x256xi1>
    %326 = arith.select %325, %320, %323 : vector<32x256xi1>, vector<32x256xf32>
    %327 = vector.broadcast %319 : vector<32x1xf32> to vector<32x256xf32>
    %328 = arith.mulf %327, %326 : vector<32x256xf32>
    %329 = arith.addf %318, %328 : vector<32x256xf32>
    %330 = vector.extract_strided_slice %155 {offsets = [0, 17], sizes = [32, 1], strides = [1, 1]} : vector<32x18xf32> to vector<32x1xf32>
    %c222_i32 = arith.constant 222 : i32
    %331 = tpu.dynamic_rotate %154 by %c222_i32 dim 1 : vector<32x256xf32>, i32 -> vector<32x256xf32>
    %c14_i32_93 = arith.constant 14 : i32
    %332 = vector.broadcast %c14_i32_93 : i32 to vector<1x256xi32>
    %333 = arith.cmpi slt, %2, %332 : vector<1x256xi32>
    %c14_i32_94 = arith.constant 14 : i32
    %334 = vector.broadcast %c14_i32_94 : i32 to vector<1x256xi32>
    %335 = arith.cmpi slt, %4, %334 : vector<1x256xi32>
    %336 = arith.andi %333, %335 : vector<1x256xi1>
    %cst_95 = arith.constant 0.000000e+00 : f32
    %337 = vector.broadcast %cst_95 : f32 to vector<32x256xf32>
    %338 = vector.shape_cast %336 : vector<1x256xi1> to vector<1x256xi1>
    %339 = vector.broadcast %338 : vector<1x256xi1> to vector<32x256xi1>
    %340 = arith.select %339, %331, %337 : vector<32x256xi1>, vector<32x256xf32>
    %341 = vector.broadcast %330 : vector<32x1xf32> to vector<32x256xf32>
    %342 = arith.mulf %341, %340 : vector<32x256xf32>
    %343 = arith.addf %329, %342 : vector<32x256xf32>
    %344 = vector.extract_strided_slice %156 {offsets = [0, 1], sizes = [32, 1], strides = [1, 1]} : vector<32x2xf32> to vector<32x1xf32>
    %345 = vector.broadcast %344 : vector<32x1xf32> to vector<32x256xf32>
    %346 = arith.addf %343, %345 : vector<32x256xf32>
    %cst_96 = arith.constant 0.000000e+00 : f32
    %347 = vector.broadcast %cst_96 : f32 to vector<32x256xf32>
    %348 = arith.maximumf %346, %347 : vector<32x256xf32>
    %349 = arith.addf %238, %348 : vector<32x256xf32>
    %cst_97 = arith.constant dense<0.000000e+00> : vector<32xf32>
    %350 = vector.multi_reduction <add>, %349, %cst_97 [1] : vector<32x256xf32> to vector<32xf32>
    %351 = vector.shape_cast %350 : vector<32xf32> to vector<32x1xf32>
    %cst_98 = arith.constant 3.906250e-03 : f32
    %352 = vector.broadcast %cst_98 : f32 to vector<32x1xf32>
    %353 = arith.mulf %351, %352 : vector<32x1xf32>
    %c0_99 = arith.constant 0 : index
    %c0_100 = arith.constant 0 : index
    %354 = vector.load %arg10[%c0_99, %c0_100] : memref<32x32xf32, #tpu.memory_space<vmem>>, vector<32x32xf32>
    %355 = vector.broadcast %353 : vector<32x1xf32> to vector<32x32xf32>
    %356 = arith.mulf %354, %355 : vector<32x32xf32>
    %cst_101 = arith.constant dense<0.000000e+00> : vector<32xf32>
    %357 = vector.multi_reduction <add>, %356, %cst_101 [0] : vector<32x32xf32> to vector<32xf32>
    %358 = vector.shape_cast %357 : vector<32xf32> to vector<1x32xf32>
    %c0_102 = arith.constant 0 : index
    %c0_103 = arith.constant 0 : index
    %359 = vector.load %arg11[%c0_102, %c0_103] : memref<1x32xf32, #tpu.memory_space<vmem>>, vector<1x32xf32>
    %360 = arith.mulf %358, %359 : vector<1x32xf32>
    %c0_104 = arith.constant 0 : index
    %c0_105 = arith.constant 0 : index
    %361 = vector.load %arg12[%c0_104, %c0_105] : memref<1x32xf32, #tpu.memory_space<vmem>>, vector<1x32xf32>
    %362 = arith.addf %360, %361 : vector<1x32xf32>
    %cst_106 = arith.constant 0.000000e+00 : f32
    %363 = vector.broadcast %cst_106 : f32 to vector<1x32xf32>
    %364 = arith.maximumf %362, %363 : vector<1x32xf32>
    %c0_107 = arith.constant 0 : index
    %c0_108 = arith.constant 0 : index
    %365 = vector.load %arg13[%c0_107, %c0_108] : memref<64x32xf32, #tpu.memory_space<vmem>>, vector<64x32xf32>
    %366 = vector.broadcast %364 : vector<1x32xf32> to vector<64x32xf32>
    %367 = arith.mulf %365, %366 : vector<64x32xf32>
    %cst_109 = arith.constant dense<0.000000e+00> : vector<64xf32>
    %368 = vector.multi_reduction <add>, %367, %cst_109 [1] : vector<64x32xf32> to vector<64xf32>
    %369 = vector.shape_cast %368 : vector<64xf32> to vector<64x1xf32>
    %370 = vector.extract_strided_slice %369 {offsets = [0, 0], sizes = [32, 1], strides = [1, 1]} : vector<64x1xf32> to vector<32x1xf32>
    %371 = vector.extract_strided_slice %369 {offsets = [32, 0], sizes = [32, 1], strides = [1, 1]} : vector<64x1xf32> to vector<32x1xf32>
    %372 = arith.maximumf %370, %371 : vector<32x1xf32>
    %373 = arith.subf %370, %372 : vector<32x1xf32>
    %374 = math.exp %373 : vector<32x1xf32>
    %375 = arith.subf %371, %372 : vector<32x1xf32>
    %376 = math.exp %375 : vector<32x1xf32>
    %377 = arith.addf %374, %376 : vector<32x1xf32>
    %cst_110 = arith.constant 1.000000e+00 : f32
    %378 = vector.broadcast %cst_110 : f32 to vector<32x1xf32>
    %379 = arith.divf %378, %377 : vector<32x1xf32>
    %380 = arith.mulf %374, %379 : vector<32x1xf32>
    %381 = vector.broadcast %380 : vector<32x1xf32> to vector<32x256xf32>
    %382 = arith.mulf %381, %238 : vector<32x256xf32>
    %383 = arith.mulf %376, %379 : vector<32x1xf32>
    %384 = vector.broadcast %383 : vector<32x1xf32> to vector<32x256xf32>
    %385 = arith.mulf %384, %348 : vector<32x256xf32>
    %386 = arith.addf %382, %385 : vector<32x256xf32>
    %c0_111 = arith.constant 0 : index
    %c0_112 = arith.constant 0 : index
    %c0_113 = arith.constant 0 : index
    %387 = vector.load %arg14[%c0_111, %c0_112, %c0_113] : memref<1x32x256xf32, #tpu.memory_space<vmem>>, vector<1x32x256xf32>
    %388 = vector.shape_cast %387 : vector<1x32x256xf32> to vector<32x256xf32>
    %389 = vector.shape_cast %386 : vector<32x256xf32> to vector<1x32x256xf32>
    tpu.vector_store %arg14[%c0_111, %c0_112, %c0_113], %389 {strides = array<i32>} : memref<1x32x256xf32, #tpu.memory_space<vmem>>, vector<1x32x256xf32>,
    return
  }
  func.func @transform_0(%arg0: i32) -> (i32, i32, i32) {
    %c0_i32 = arith.constant 0 : i32
    %c0_i32_0 = arith.constant 0 : i32
    %c0_i32_1 = arith.constant 0 : i32
    return %arg0, %c0_i32, %c0_i32_0 : i32, i32, i32
  }
  func.func @transform_1(%arg0: i32) -> (i32, i32) {
    %c0_i32 = arith.constant 0 : i32
    %c0_i32_0 = arith.constant 0 : i32
    %c0_i32_1 = arith.constant 0 : i32
    return %c0_i32, %c0_i32_0 : i32, i32
  }
  func.func @transform_2(%arg0: i32) -> (i32, i32) {
    %c0_i32 = arith.constant 0 : i32
    %c0_i32_0 = arith.constant 0 : i32
    %c0_i32_1 = arith.constant 0 : i32
    return %c0_i32, %c0_i32_0 : i32, i32
  }
  func.func @transform_3(%arg0: i32) -> (i32, i32) {
    %c0_i32 = arith.constant 0 : i32
    %c0_i32_0 = arith.constant 0 : i32
    %c0_i32_1 = arith.constant 0 : i32
    return %c0_i32, %c0_i32_0 : i32, i32
  }
  func.func @transform_4(%arg0: i32) -> (i32, i32) {
    %c0_i32 = arith.constant 0 : i32
    %c0_i32_0 = arith.constant 0 : i32
    %c0_i32_1 = arith.constant 0 : i32
    return %c0_i32, %c0_i32_0 : i32, i32
  }
  func.func @transform_5(%arg0: i32) -> (i32, i32) {
    %c0_i32 = arith.constant 0 : i32
    %c0_i32_0 = arith.constant 0 : i32
    %c0_i32_1 = arith.constant 0 : i32
    return %c0_i32, %c0_i32_0 : i32, i32
  }
  func.func @transform_6(%arg0: i32) -> (i32, i32) {
    %c0_i32 = arith.constant 0 : i32
    %c0_i32_0 = arith.constant 0 : i32
    %c0_i32_1 = arith.constant 0 : i32
    return %c0_i32, %c0_i32_0 : i32, i32
  }
  func.func @transform_7(%arg0: i32) -> (i32, i32) {
    %c0_i32 = arith.constant 0 : i32
    %c0_i32_0 = arith.constant 0 : i32
    %c0_i32_1 = arith.constant 0 : i32
    return %c0_i32, %c0_i32_0 : i32, i32
  }
  func.func @transform_8(%arg0: i32) -> (i32, i32) {
    %c0_i32 = arith.constant 0 : i32
    %c0_i32_0 = arith.constant 0 : i32
    %c0_i32_1 = arith.constant 0 : i32
    return %c0_i32, %c0_i32_0 : i32, i32
  }
  func.func @transform_9(%arg0: i32) -> (i32, i32) {
    %c0_i32 = arith.constant 0 : i32
    %c0_i32_0 = arith.constant 0 : i32
    %c0_i32_1 = arith.constant 0 : i32
    return %c0_i32, %c0_i32_0 : i32, i32
  }
  func.func @transform_10(%arg0: i32) -> (i32, i32) {
    %c0_i32 = arith.constant 0 : i32
    %c0_i32_0 = arith.constant 0 : i32
    %c0_i32_1 = arith.constant 0 : i32
    return %c0_i32, %c0_i32_0 : i32, i32
  }
  func.func @transform_11(%arg0: i32) -> (i32, i32) {
    %c0_i32 = arith.constant 0 : i32
    %c0_i32_0 = arith.constant 0 : i32
    %c0_i32_1 = arith.constant 0 : i32
    return %c0_i32, %c0_i32_0 : i32, i32
  }
  func.func @transform_12(%arg0: i32) -> (i32, i32) {
    %c0_i32 = arith.constant 0 : i32
    %c0_i32_0 = arith.constant 0 : i32
    %c0_i32_1 = arith.constant 0 : i32
    return %c0_i32, %c0_i32_0 : i32, i32
  }
  func.func @transform_13(%arg0: i32) -> (i32, i32, i32) {
    %c0_i32 = arith.constant 0 : i32
    %c0_i32_0 = arith.constant 0 : i32
    %c0_i32_1 = arith.constant 0 : i32
    return %arg0, %c0_i32, %c0_i32_0 : i32, i32, i32
  }
}

</mosaic_0001>

<bundles_post_ra>
// kernel: decoder_forward.1
= control target key start
LH: loop header
LB: loop body
LE: loop exit
PB: predicated region body
PF: predicated region fallthrough
CT: control target
= control target key end

     0   :  { %s3434_s25 = smov 0   ;;  %s6120_s0 = inlined_call_operand.vmem [shape: f32[2,16,256], index: 0, kind: input, shape index: {}]   ;;  %s6121_s1 = inlined_call_operand.vmem [shape: bf16[32,144], index: 1, kind: input, shape index: {}]   ;;  %s6122_s2 = inlined_call_operand.vmem [shape: f32[32,1], index: 2, kind: input, shape index: {}]   ;;  %s6123_s3 = inlined_call_operand.vmem [shape: f32[32,1], index: 3, kind: input, shape index: {}]   ;;  %s6124_s4 = inlined_call_operand.vmem [shape: bf16[32,288], index: 4, kind: input, shape index: {}]   ;;  %s6125_s5 = inlined_call_operand.vmem [shape: f32[32,1], index: 5, kind: input, shape index: {}]   ;;  %s6126_s6 = inlined_call_operand.vmem [shape: f32[32,1], index: 6, kind: input, shape index: {}]   ;;  %s6127_s7 = inlined_call_operand.vmem [shape: f32[32,18], index: 7, kind: input, shape index: {}]   ;;  %s6128_s8 = inlined_call_operand.vmem [shape: f32[32,2], index: 8, kind: input, shape index: {}]   ;;  %s6129_s9 = inlined_call_operand.vmem [shape: f32[32,32], index: 9, kind: input, shape index: {}]   ;;  %s6130_s10 = inlined_call_operand.vmem [shape: f32[1,32], index: 10, kind: input, shape index: {}]   ;;  %s6131_s11 = inlined_call_operand.vmem [shape: f32[1,32], index: 11, kind: input, shape index: {}]   ;;  %s6132_s12 = inlined_call_operand.vmem [shape: f32[64,32], index: 12, kind: input, shape index: {}]   ;;  %s6133_s13 = inlined_call_operand.vmem [shape: f32[2,32,256], index: 13, kind: output, shape index: {}]  }
   0x1 LB: > { %s2777_s26 = sadd.s32 4294967295, %s3328_s25   ;;  %p2781_p0 = scmp.ge.s32.totalorder %s3328_s25, 1  ;;  %s3328_s25 = sphi %s3434_s25, %s23_s25  }
   0x2   : > { %p387_p1 = scmp.lt.s32.totalorder %s3328_s25, 3 }
   0x4   : > { %p388_p2 = pnand %p2781_p0, %p387_p1 }
   0x6   : > { %391 = sbr.rel (%p388_p2) target bundleno = 1634 (0x662), region = 72 }
   0xd   : > { %p431_p3 = scmp.lt.s32.totalorder %s2777_s26, 1  ;;  %s3330_s14 = smov 16   ;;  %v3336_v8 = vmov 2   ;;  %v3484_v9 = vld [vmem:[%s6127_s7] sm:$0xff]  ;;  %vm6140_vm0 = vcmask 130048   ;;  %v3494_v11 = vld [vmem:[%s6127_s7 + $0x18] sm:$0xff]  ;;  %v6168_v35 = vlaneseq }
   0xe   : > { %s3331_s15 = smov 17   ;;  %s3332_s16 = smov 15   ;;  %3080 = vset.pattern.permute.xlu0 %v3336_v8  ;;  %v3282_v10 = vld [vmem:[%s6121_s1 + $0x4] ss:$8 sps:$4 sm:$0xff]   ;;  %v3339_v13 = vmov 3   ;;  %v6169_v15 = vmov 0  }
   0xf   : > { %s6952_s26 = smov (!%p431_p3, %s2777_s26), 1  ;;  %s3333_s17 = smov 1   ;;  %2838 = vmatprep.mubr.msk.bf16.mxu0 %vm6140_vm0, %v3282_v10  ;;  %v3500_v12 = vld [vmem:[%s6127_s7 + $0x8] sm:$0xff]  ;;  %3078 = vset.pattern.permute.xlu1 %v6169_v15  ;;  %v3341_v16 = vmov 4   ;;  %v739_v17 = vld [vmem:[%s6122_s2 + $0x10] sm:$0xff]  ;;  %v769_v18 = vld [vmem:[%s6123_s3] sm:$0xff] }
  0x10   : > { %s2946_s27 = sshll.u32 %s6952_s26, 5  ;;  %s6255_s18 = smov 127   ;;  %v738_v14 = vld [vmem:[%s6122_s2 + $0x8] sm:$0xff]  ;;  %v771_v19 = vld [vmem:[%s6123_s3 + $0x10] sm:$0xff]  ;;  %v3342_v20 = vmov 5   ;;  %v1252_v21 = vld [vmem:[%s6125_s5] sm:$0xff] }
  0x11   : > { %s435_s30 = scalar_lea.vmem %s6120_s0, %s2946_s27  ;;  %s3335_s19 = smov 113   ;;  %v3343_v22 = vmov 6   ;;  %v1254_v23 = vld [vmem:[%s6125_s5 + $0x10] sm:$0xff]  ;;  %v1284_v24 = vld [vmem:[%s6126_s6] sm:$0xff]  ;;  %v3344_v25 = vmov 7   ;;  %v3345_v27 = vmov 8  }
  0x12   : > { %v3448_v0 = vld [vmem:[%s435_s30] sm:$0xff]  ;;  %v3450_v1 = vld [vmem:[%s435_s30 + $0x10] sm:$0xff]  ;;  %v3452_v2 = vld [vmem:[%s435_s30 + $0x8] sm:$0xff]  ;;  %s6251_s20 = smov 112   ;;  %s6257_s21 = smov 111   ;;  %v6170_v31 = vmov 1  }
  0x13   : > { %v3008_v3 = vpack.i.bf16 %v3450_v1, %v3448_v0  ;;  %v3456_v4 = vld [vmem:[%s435_s30 + $0x18] sm:$0xff]  ;;  %v555_v7 = vpack.c.bf16 %v3450_v1, %v3448_v0  ;;  %v1286_v26 = vld [vmem:[%s6126_s6 + $0x10] sm:$0xff]  ;;  %v737_v29 = vld [vmem:[%s6122_s2] sm:$0xff]  ;;  %v3576_v37 = vand.u32 127, %v6168_v35  ;;  %v6361_v51 = vmov 0  ;;  %s3357_s27 = smov 30  }
  0x14   : > { %v3013_v5 = vpack.i.bf16 %v3456_v4, %v3452_v2  ;;  %v556_v6 = vpack.c.bf16 %v3456_v4, %v3452_v2  ;;  %v3545_v28 = vld [vmem:[%s6127_s7 + $0x10] sm:$0xff]  ;;  %v740_v30 = vld [vmem:[%s6122_s2 + $0x18] sm:$0xff]  ;;  %v770_v32 = vld [vmem:[%s6123_s3 + $0x8] sm:$0xff]  ;;  %v6364_v56 = vmov 0  ;;  %v6393_v2 = vmov 0  ;;  %s6554_s28 = smov 112  }
  0x15   : > { %3009 = vrot.lane.b32.xlu1 %v3008_v3, %s3330_s14  ;;  %2999 = vrot.lane.b32.xlu0 %v3008_v3, %s3331_s15  ;;  %v772_v33 = vld [vmem:[%s6123_s3 + $0x18] sm:$0xff]  ;;  %v1253_v34 = vld [vmem:[%s6125_s5 + $0x8] sm:$0xff]  ;;  %v444_v39 = vadd.s32 128, %v3576_v37  ;;  %v3593_v43 = vshra.s32 %v3576_v37, 4  ;;  %v3596_v44 = vand.u32 15, %v3576_v37  ;;  %vm6137_vm5 = vcmp.lt.s32.totalorder %v3576_v37, 16 }
  0x16   : > { %v1255_v36 = vld [vmem:[%s6125_s5 + $0x18] sm:$0xff]  ;;  %v1285_v38 = vld [vmem:[%s6126_s6 + $0x8] sm:$0xff]  ;;  %vm6134_vm6 = vcmp.lt.s32.totalorder %v3576_v37, 17  ;;  %vm6136_vm10 = vcmp.lt.s32.totalorder %v3576_v37, 15  ;;  %vm6139_vm14 = vcmp.lt.s32.totalorder %v3576_v37, 1  ;;  %vm6144_vm0 = vcmp.lt.s32.totalorder %v3576_v37, 127 }
  0x17   : > { %v1287_v40 = vld [vmem:[%s6126_s6 + $0x18] sm:$0xff]  ;;  %v3587_v41 = vshra.s32 %v444_v39, 4  ;;  %v3589_v42 = vand.u32 15, %v444_v39  ;;  %6359 = vst [vmem:[#allocation4_spill] sm:$0xff] %v3593_v43  ;;  %6360 = vst [vmem:[#allocation5_spill] sm:$0xff] %v3596_v44  ;;  %vm6138_vm3 = vcmp.ge.s32.totalorder %v3593_v43, 1 }
  0x18   : > { %vm6143_vm4 = vcmp.ge.s32.totalorder %v3596_v44, 1  ;;  %v3627_v59 = vld [vmem:[%s6128_s8 + $0x8] sm:$0xff]  ;;  %s6253_s29 = smov 2   ;;  %s3359_s30 = smov 32  }
  0x19   : > { %3014 = vrot.lane.b32.xlu1 %v3013_v5, %s3330_s14  ;;  %3004 = vrot.lane.b32.xlu0 %v3013_v5, %s3331_s15  ;;  %6357 = vst [vmem:[#allocation2_spill] sm:$0xff] %v3587_v41  ;;  %6358 = vst [vmem:[#allocation3_spill] sm:$0xff] %v3589_v42  ;;  %vm6135_vm1 = vcmp.ge.s32.totalorder %v3587_v41, 1  ;;  %vm6142_vm2 = vcmp.ge.s32.totalorder %v3589_v42, 1  ;;  %vm6153_vm11 = vcmp.lt.s32.totalorder %v3589_v42, 15  ;;  %s3360_s22 = smov 126  }
  0x1a   : > { %vm3610_vm7 = vmand %vm6135_vm1, %vm6142_vm2  ;;  %s6261_s23 = smov 96   ;;  %s6259_s24 = smov 98  }
  0x1b   : > { %v6362_v51 = vsel %vm3610_vm7, 4294967295, %v6361_v51  ;;  %vm3618_vm8 = vmand %vm6138_vm3, %vm6143_vm4 }
  0x1c   : > { %6363 = vst [vmem:[#allocation6_spill] sm:$0xff] %v6362_v51  ;;  %v6365_v56 = vsel %vm3618_vm8, 4294967295, %v6364_v56  ;;  %vm3637_vm9 = vmpackc.low %vm3610_vm7, %vm3610_vm7  ;;  %vm6392_vm7 = vcmp.lt.s32.totalorder %v3587_v41, 15 }
  0x1d   : > { %3024 = vrot.lane.b32.xlu1 %v3013_v5, %s3332_s16  ;;  %3019 = vrot.lane.b32.xlu0 %v3008_v3, %s3332_s16  ;;  %6366 = vst [vmem:[#allocation7_spill] sm:$0xff] %v6365_v56  ;;  %vm3654_vm12 = vmpackc.low %vm3618_vm8, %vm3618_vm8 }
  0x1e   : > { %vm3661_vm13 = vmpackc.low %vm6135_vm1, %vm6135_vm1 }
  0x1f   : > { %vm3671_vm15 = vmand %vm6135_vm1, %vm6153_vm11 }
  0x20   : > { %vm3696_vm1 = vmpackc.low %vm6138_vm3, %vm6138_vm3 }
  0x21   : > { %3034 = vrot.lane.b32.xlu1 %v3013_v5, %s3333_s17  ;;  %3029 = vrot.lane.b32.xlu0 %v3008_v3, %s3333_s17 }
  0x25   : > { %3044 = vrot.lane.b32.xlu1 %v3013_v5, %s6255_s18  ;;  %3039 = vrot.lane.b32.xlu0 %v3008_v3, %s6255_s18 }
  0x29   : > { %3054 = vrot.lane.b32.xlu1 %v3013_v5, %s3335_s19  ;;  %3049 = vrot.lane.b32.xlu0 %v3008_v3, %s3335_s19 }
  0x2d   : > { %3064 = vrot.lane.b32.xlu1 %v3013_v5, %s6251_s20  ;;  %3059 = vrot.lane.b32.xlu0 %v3008_v3, %s6251_s20 }
  0x31   : > { %3074 = vrot.lane.b32.xlu1 %v3013_v5, %s6257_s21  ;;  %3069 = vrot.lane.b32.xlu0 %v3008_v3, %s6257_s21 }
  0x35   : > { %1497 = vperm.xlu0 %3080, %v3484_v9   ;;  %748 = vperm.xlu1 %3078, %v738_v14  }
  0x39   : > { %1509 = vperm.xlu0 %3080, %v3494_v11   ;;  %753 = vperm.xlu1 %3078, %v739_v17  }
  0x3d   : > { %3083 = vset.pattern.permute.xlu0 %v3339_v13  ;;  %775 = vperm.xlu1 %3078, %v769_v18  }
  0x3e   : > { %1565 = vperm.xlu0 %3083, %v3500_v12  }
  0x41   : > { %785 = vperm.xlu1 %3078, %v771_v19  }
  0x42   : > { %3084 = vset.pattern.permute.xlu0 %v3341_v16 }
  0x43   : > { %1593 = vperm.xlu0 %3084, %v3484_v9  }
  0x45   : > { %1258 = vperm.xlu1 %3078, %v1252_v21  }
  0x47   : > { %1605 = vperm.xlu0 %3084, %v3494_v11  }
  0x49   : > { %1268 = vperm.xlu1 %3078, %v1254_v23  }
  0x4b   : > { %3087 = vset.pattern.permute.xlu0 %v3342_v20 }
  0x4c   : > { %1661 = vperm.xlu0 %3087, %v3500_v12  }
  0x4d   : > { %1290 = vperm.xlu1 %3078, %v1284_v24  }
  0x50   : > { %3088 = vset.pattern.permute.xlu0 %v3343_v22 }
  0x51   : > { %1721 = vperm.xlu0 %3088, %v3484_v9   ;;  %1300 = vperm.xlu1 %3078, %v1286_v26   ;;  %v6373_v26 = vmov 0 }
  0x52   : > { %v6374_v26 = vsel %vm3671_vm15, 4294967295, %v6373_v26 }
  0x53   : > { %6375 = vst [vmem:[#allocation8_spill] sm:$0xff] %v6374_v26 }
  0x55   : > { %1733 = vperm.xlu0 %3088, %v3494_v11   ;;  %1366 = vperm.xlu1 %3078, %v3484_v9  }
  0x59   : > { %3091 = vset.pattern.permute.xlu0 %v3344_v25  ;;  %1376 = vperm.xlu1 %3078, %v3545_v28  }
  0x5a   : > { %1789 = vperm.xlu0 %3091, %v3500_v12  }
  0x5d   : > { %3079 = vset.pattern.permute.xlu1 %v6170_v31 }
  0x5e   : > { %3092 = vset.pattern.permute.xlu0 %v3345_v27  ;;  %1433 = vperm.xlu1 %3079, %v3484_v9  }
  0x5f   : > { %1849 = vperm.xlu0 %3092, %v3484_v9  }
  0x62   : > { %1441 = vperm.xlu1 %3079, %v3545_v28  }
  0x63   : > { %1861 = vperm.xlu0 %3092, %v3494_v11  }
  0x66   : > { %1445 = vperm.xlu1 %3079, %v3494_v11  }
  0x67   : > { %3094 = vset.pattern.permute.xlu0 %v6169_v15 }
  0x68   : > { %743 = vperm.xlu0 %3094, %v737_v29  }
  0x6a   : > { %3081 = vset.pattern.permute.xlu1 %v3336_v8 }
  0x6b   : > { %1501 = vperm.xlu1 %3081, %v3500_v12  }
  0x6c   : > { %758 = vperm.xlu0 %3094, %v740_v30  }
  0x6f   : > { %1505 = vperm.xlu1 %3081, %v3545_v28  }
  0x70   : > { %780 = vperm.xlu0 %3094, %v770_v32  }
  0x73   : > { %3082 = vset.pattern.permute.xlu1 %v3339_v13 }
  0x74   : > { %790 = vperm.xlu0 %3094, %v772_v33   ;;  %1561 = vperm.xlu1 %3082, %v3484_v9  }
  0x78   : > { %1263 = vperm.xlu0 %3094, %v1253_v34   ;;  %1569 = vperm.xlu1 %3082, %v3545_v28  }
  0x7c   : > { %1273 = vperm.xlu0 %3094, %v1255_v36   ;;  %1573 = vperm.xlu1 %3082, %v3494_v11  }
  0x80   : > { %1295 = vperm.xlu0 %3094, %v1285_v38   ;;  %3085 = vset.pattern.permute.xlu1 %v3341_v16 }
  0x81   : > { %1597 = vperm.xlu1 %3085, %v3500_v12  }
  0x84   : > { %1305 = vperm.xlu0 %3094, %v1287_v40  }
  0x85   : > { %1601 = vperm.xlu1 %3085, %v3545_v28  }
  0x87   : > { %v3010_v45 = vpop.permute.xlu1 %3009  ;;  %v3000_v46 = vpop.permute.xlu0 %2999 }
  0x88   : > { %1371 = vperm.xlu0 %3094, %v3500_v12   ;;  %v3012_v47 = vunpack.i.h.bf16 %v3010_v45  ;;  %v3011_v48 = vunpack.i.l.bf16 %v3010_v45  ;;  %v3002_v57 = vunpack.i.h.bf16 %v3000_v46  ;;  %v3001_v58 = vunpack.i.l.bf16 %v3000_v46 }
  0x89   : > { %3086 = vset.pattern.permute.xlu1 %v3342_v20 }
  0x8a   : > { %1657 = vperm.xlu1 %3086, %v3484_v9  }
  0x8b   : > { %v3015_v49 = vpop.permute.xlu1 %3014  ;;  %v3005_v50 = vpop.permute.xlu0 %3004 }
  0x8c   : > { %v3017_v52 = vunpack.i.h.bf16 %v3015_v49  ;;  %v3016_v53 = vunpack.i.l.bf16 %v3015_v49  ;;  %v3007_v54 = vunpack.i.h.bf16 %v3005_v50  ;;  %v3006_v55 = vunpack.i.l.bf16 %v3005_v50  ;;  %1381 = vperm.xlu0 %3094, %v3494_v11  }
  0x8e   : > { %v491_v60 = vsel %vm6137_vm5, %v3011_v48, %v3016_v53  ;;  %v492_v61 = vsel %vm6137_vm5, %v3012_v47, %v3017_v52  ;;  %v462_v63 = vsel %vm6134_vm6, %v3001_v58, %v3006_v55  ;;  %v463_v3 = vsel %vm6134_vm6, %v3002_v57, %v3007_v54  ;;  %1665 = vperm.xlu1 %3086, %v3545_v28  }
  0x8f   : > { %v464_v5 = vsel %vm6134_vm6, %v3006_v55, %v3001_v58  ;;  %v465_v8 = vsel %vm6134_vm6, %v3007_v54, %v3002_v57  ;;  %v3025_v13 = vpop.permute.xlu1 %3024  ;;  %v3020_v14 = vpop.permute.xlu0 %3019  ;;  %v2791_v16 = vpack.c.bf16 %v463_v3, %v462_v63  ;;  %vm6141_vm6 = vcmp.lt.s32.totalorder %v3596_v44, 15 }
  0x90   : > { %v2794_v17 = vpack.c.bf16 %v465_v8, %v464_v5  ;;  %v3027_v18 = vunpack.i.h.bf16 %v3025_v13  ;;  %v3026_v19 = vunpack.i.l.bf16 %v3025_v13  ;;  %1887 = vperm.xlu0 %3094, %v3627_v59   ;;  %v3022_v23 = vunpack.i.h.bf16 %v3020_v14 }
  0x91   : > { %v3021_v24 = vunpack.i.l.bf16 %v3020_v14  ;;  %v493_v29 = vsel %vm6137_vm5, %v3016_v53, %v3011_v48  ;;  %v494_v30 = vsel %vm6137_vm5, %v3017_v52, %v3012_v47  ;;  %2792 = vmatprep.subr.msk.bf16.mxu0 %vm3637_vm9, %v2791_v16  ;;  %v2797_v32 = vpack.c.bf16 %v492_v61, %v491_v60  ;;  %vm3714_vm5 = vmand %vm6138_vm3, %vm6141_vm6 }
  0x92   : > { %2795 = vmatpush1.bf16.msk.msra.mxu0 %vm3654_vm12, %v2794_v17  ;;  %v515_v33 = vsel %vm6136_vm10, %v3022_v23, %v3027_v18  ;;  %v517_v34 = vsel %vm6136_vm10, %v3027_v18, %v3022_v23  ;;  %v6172_v52 = vmov 9   ;;  %v2800_v53 = vpack.c.bf16 %v494_v30, %v493_v29  ;;  %vm3736_vm3 = vmpackc.low %vm3714_vm5, %vm3714_vm5  ;;  %1669 = vperm.xlu1 %3086, %v3494_v11  }
  0x93   : > { %v514_v36 = vsel %vm6136_vm10, %v3021_v24, %v3026_v19  ;;  %v516_v38 = vsel %vm6136_vm10, %v3026_v19, %v3021_v24  ;;  %v3035_v40 = vpop.permute.xlu1 %3034  ;;  %v3030_v45 = vpop.permute.xlu0 %3029  ;;  %2798 = vmatprep.subr.msk.bf16.mxu0 %vm3661_vm13, %v2797_v32  ;;  %vm3705_vm10 = vmpackc.low %vm3671_vm15, %vm3671_vm15  ;;  %v6380_v55 = vmov 0  ;;  %v6173_v19 = vmov 10  }
  0x94   : > { %v3037_v46 = vunpack.i.h.bf16 %v3035_v40  ;;  %v3036_v47 = vunpack.i.l.bf16 %v3035_v40  ;;  %v3032_v48 = vunpack.i.h.bf16 %v3030_v45  ;;  %v3031_v49 = vunpack.i.l.bf16 %v3030_v45  ;;  %3096 = vset.pattern.permute.xlu0 %v6172_v52  ;;  %vm3757_vm6 = vmpackc.low %vm6143_vm4, %vm6143_vm4 }
  0x95   : > { %v2803_v54 = vpack.c.bf16 %v515_v33, %v514_v36  ;;  %v6381_v55 = vsel %vm3714_vm5, 4294967295, %v6380_v55  ;;  %1960 = vperm.xlu0 %3096, %v3484_v9   ;;  %v2806_v20 = vpack.c.bf16 %v517_v34, %v516_v38  ;;  %v6387_v30 = vmov 0 }
  0x96   : > { %6382 = vst [vmem:[#allocation9_spill] sm:$0xff] %v6381_v55  ;;  %v542_v57 = vsel %vm6139_vm14, %v3032_v48, %v3037_v46  ;;  %v541_v58 = vsel %vm6139_vm14, %v3031_v49, %v3036_v47  ;;  %2801 = vmatpush1.bf16.msk.msra.mxu0 %vm3696_vm1, %v2800_v53  ;;  %v544_v60 = vsel %vm6139_vm14, %v3037_v46, %v3032_v48  ;;  %v6388_v30 = vsel %vm3757_vm6, 4294967295, %v6387_v30 }
  0x97   : > { %v543_v61 = vsel %vm6139_vm14, %v3036_v47, %v3031_v49  ;;  %v2809_v63 = vpack.c.bf16 %v542_v57, %v541_v58  ;;  %v3045_v3 = vpop.permute.xlu1 %3044  ;;  %v3040_v5 = vpop.permute.xlu0 %3039  ;;  %2804 = vmatprep.subr.msk.bf16.mxu0 %vm3705_vm10, %v2803_v54  ;;  %vm3743_vm14 = vmpackc.low %vm6142_vm2, %vm6142_vm2  ;;  %vm6154_vm2 = vcmp.lt.s32.totalorder %v3576_v37, 113  ;;  %vm6155_vm4 = vcmp.lt.s32.totalorder %v3576_v37, 112  ;;  %3089 = vset.pattern.permute.xlu1 %v3343_v22 }
  0x98   : > { %v3047_v13 = vunpack.i.h.bf16 %v3045_v3  ;;  %v3046_v14 = vunpack.i.l.bf16 %v3045_v3  ;;  %v3042_v16 = vunpack.i.h.bf16 %v3040_v5  ;;  %v3041_v17 = vunpack.i.l.bf16 %v3040_v5  ;;  %1725 = vperm.xlu1 %3089, %v3500_v12  }
  0x99   : > { %3224 = vset.pattern.permute.xlu0 %v6173_v19  ;;  %v2812_v23 = vpack.c.bf16 %v544_v60, %v543_v61  ;;  %vm6391_vm5 = vcmp.ge.s32.totalorder %v3589_v42, 1 }
  0x9a   : > { %2807 = vmatpush1.bf16.msk.msra.mxu0 %vm3736_vm3, %v2806_v20  ;;  %v569_v32 = vsel %vm6144_vm0, %v3047_v13, %v3042_v16  ;;  %v568_v33 = vsel %vm6144_vm0, %v3046_v14, %v3041_v17  ;;  %v567_v45 = vsel %vm6144_vm0, %v3042_v16, %v3047_v13  ;;  %v566_v46 = vsel %vm6144_vm0, %v3041_v17, %v3046_v14  ;;  %vm3784_vm0 = vmpackc.low %vm6153_vm11, %vm6153_vm11 }
  0x9b   : > { %v3055_v24 = vpop.permute.xlu1 %3054  ;;  %v3050_v29 = vpop.permute.xlu0 %3049  ;;  %2810 = vmatprep.subr.msk.bf16.mxu0 %vm3743_vm14, %v2809_v63  ;;  %v2815_v47 = vpack.c.bf16 %v569_v32, %v568_v33  ;;  %v6389_v20 = vmov 0  ;;  %vm3794_vm8 = vmand %vm6392_vm7, %vm6391_vm5  ;;  %vm6396_vm11 = vcmp.lt.s32.totalorder %v3596_v44, 15  ;;  %v2818_v63 = vpack.c.bf16 %v567_v45, %v566_v46 }
  0x9c   : > { %v3057_v34 = vunpack.i.h.bf16 %v3055_v24  ;;  %v3056_v36 = vunpack.i.l.bf16 %v3055_v24  ;;  %v3052_v38 = vunpack.i.h.bf16 %v3050_v29  ;;  %v3051_v40 = vunpack.i.l.bf16 %v3050_v29  ;;  %vm3807_vm15 = vmpackc.low %vm6396_vm11, %vm6396_vm11  ;;  %1729 = vperm.xlu1 %3089, %v3545_v28  }
  0x9d   : > { %v6390_v20 = vsel %vm3784_vm0, 4294967295, %v6389_v20  ;;  %v6394_v2 = vsel %vm3794_vm8, 4294967295, %v6393_v2  ;;  %vm6399_vm5 = vcmp.ge.s32.totalorder %v3596_v44, 1  ;;  %vm6400_vm7 = vcmp.lt.s32.totalorder %v3593_v43, 15 }
  0x9e   : > { %2813 = vmatpush1.bf16.msk.msra.mxu0 %vm3757_vm6, %v2812_v23  ;;  %v592_v60 = vsel %vm6154_vm2, %v3057_v34, %v3052_v38  ;;  %v591_v61 = vsel %vm6154_vm2, %v3056_v36, %v3051_v40  ;;  %6395 = vst [vmem:[#allocation10_spill] sm:$0xff] %v6394_v2  ;;  %v590_v4 = vsel %vm6154_vm2, %v3052_v38, %v3057_v34  ;;  %vm3824_vm11 = vmand %vm6400_vm7, %vm6399_vm5  ;;  %v6401_v13 = vmov 0 }
  0x9f   : > { %v3065_v48 = vpop.permute.xlu1 %3064  ;;  %v3060_v49 = vpop.permute.xlu0 %3059  ;;  %692 = vmatprep.subr.bf16.mxu0 %v556_v6  ;;  %v6397_v6 = vmov 0  ;;  %v589_v22 = vsel %vm6154_vm2, %v3051_v40, %v3056_v36  ;;  %v6402_v13 = vsel %vm3824_vm11, 4294967295, %v6401_v13  ;;  %vm3831_vm2 = vmpackc.low %vm3794_vm8, %vm3794_vm8  ;;  %v6404_v14 = vmov 0 }
  0xa0   : > { %v3067_v53 = vunpack.i.h.bf16 %v3065_v48  ;;  %v3066_v54 = vunpack.i.l.bf16 %v3065_v48  ;;  %v3062_v57 = vunpack.i.h.bf16 %v3060_v49  ;;  %v3061_v58 = vunpack.i.l.bf16 %v3060_v49  ;;  %6403 = vst [vmem:[#allocation11_spill] sm:$0xff] %v6402_v13  ;;  %vm3841_vm5 = vmpackc.low %vm3824_vm11, %vm3824_vm11  ;;  %3090 = vset.pattern.permute.xlu1 %v3344_v25 }
  0xa1   : > { %v6398_v6 = vsel %vm3807_vm15, 4294967295, %v6397_v6  ;;  %v6405_v14 = vsel %vm3831_vm2, 4294967295, %v6404_v14  ;;  %v2824_v32 = vpack.c.bf16 %v590_v4, %v589_v22  ;;  %vm6408_vm7 = vcmp.lt.s32.totalorder %v3576_v37, 112  ;;  %1785 = vperm.xlu1 %3090, %v3484_v9   ;;  %v3283_v4 = vld [vmem:[%s6121_s1 + $0x14] ss:$8 sps:$4 sm:$0xff]  }
  0xa2   : > { %693 = vmatpush1.bf16.msra.mxu0 %v555_v7  ;;  %v619_v0 = vsel %vm6155_vm4, %v3067_v53, %v3062_v57  ;;  %v618_v1 = vsel %vm6155_vm4, %v3066_v54, %v3061_v58  ;;  %v2821_v7 = vpack.c.bf16 %v592_v60, %v591_v61  ;;  %v617_v33 = vsel %vm6408_vm7, %v3062_v57, %v3067_v53  ;;  %vm6409_vm8 = vmmov %vm6408_vm7  ;;  %v3280_v61 = vld [vmem:[%s6121_s1] ss:$8 sps:$4 sm:$0xff]  }
  0xa3   : > { %v3075_v3 = vpop.permute.xlu1 %3074  ;;  %v3070_v5 = vpop.permute.xlu0 %3069  ;;  %2816 = vmatprep.subr.msk.bf16.mxu0 %vm3784_vm0, %v2815_v47  ;;  %v616_v34 = vsel %vm6409_vm8, %v3061_v58, %v3066_v54  ;;  %vm6410_vm4 = vcmp.lt.s32.totalorder %v3587_v41, 15  ;;  %v6411_v36 = vmov 0  ;;  %v2827_v38 = vpack.c.bf16 %v619_v0, %v618_v1 }
  0xa4   : > { %v3077_v16 = vunpack.i.h.bf16 %v3075_v3  ;;  %v3076_v17 = vunpack.i.l.bf16 %v3075_v3  ;;  %v3072_v23 = vunpack.i.h.bf16 %v3070_v5  ;;  %v3071_v24 = vunpack.i.l.bf16 %v3070_v5  ;;  %vm6416_vm8 = vmmov %vm6410_vm4  ;;  %v3934_v3 = vld [vmem:[%s6128_s8] sm:$0xff]  ;;  %v1331_v5 = vld [vmem:[%s6128_s8 + $0x18] sm:$0xff] }
  0xa5   : > { %vm6413_vm11 = vcmp.lt.s32.totalorder %v3576_v37, 111  ;;  %vm6415_vm7 = vcmp.lt.s32.totalorder %v3589_v42, 15  ;;  %v6417_v46 = vmov 0  ;;  %v6421_v47 = vmov 0  ;;  %1793 = vperm.xlu1 %3090, %v3545_v28  }
  0xa6   : > { %2819 = vmatpush1.bf16.msk.msra.mxu0 %vm3807_vm15, %v2818_v63  ;;  %vm3855_vm15 = vmpackc.low %vm6410_vm4, %vm6410_vm4  ;;  %v642_v40 = vsel %vm6413_vm11, %v3077_v16, %v3072_v23  ;;  %vm6420_vm4 = vcmp.lt.s32.totalorder %v3593_v43, 15  ;;  %v2830_v48 = vpack.c.bf16 %v617_v33, %v616_v34  ;;  %v6427_v25 = vmov 0  ;;  %v3285_v63 = vld [vmem:[%s6121_s1 + $0x10] ss:$8 sps:$4 sm:$0xff]   ;;  %v3320_v43 = vld [vmem:[%s6127_s7 + $0x8] sm:$0xff] }
  0xa7   : > { %2822 = vmatprep.subr.msk.bf16.mxu0 %vm3831_vm2, %v2821_v7  ;;  %v6412_v36 = vsel %vm3855_vm15, 4294967295, %v6411_v36  ;;  %vm6414_vm0 = vmmov %vm6413_vm11 }
  0xa8   : > { %v641_v45 = vsel %vm6414_vm0, %v3076_v17, %v3071_v24  ;;  %vm3867_vm6 = vmand %vm6416_vm8, %vm6415_vm7  ;;  %v640_v49 = vsel %vm6414_vm0, %v3072_v23, %v3077_v16  ;;  %vm6426_vm8 = vcmp.lt.s32.totalorder %v3596_v44, 15 }
  0xa9   : > { %v6418_v46 = vsel %vm3867_vm6, 4294967295, %v6417_v46  ;;  %vm3876_vm2 = vmpackc.low %vm6420_vm4, %vm6420_vm4  ;;  %v2833_v57 = vpack.c.bf16 %v642_v40, %v641_v45  ;;  %1797 = vperm.xlu1 %3090, %v3494_v11  }
  0xaa   : > { %6419 = vst [vmem:[#allocation12_spill] sm:$0xff] %v6418_v46  ;;  %2825 = vmatpush1.bf16.msk.msra.mxu0 %vm3841_vm5, %v2824_v32  ;;  %v6422_v47 = vsel %vm3876_vm2, 4294967295, %v6421_v47  ;;  %vm6423_vm11 = vmmov %vm6414_vm0 }
  0xab   : > { %v639_v53 = vsel %vm6423_vm11, %v3071_v24, %v3076_v17  ;;  %2828 = vmatprep.subr.msk.bf16.mxu0 %vm3855_vm15, %v2827_v38  ;;  %vm3890_vm7 = vmpackc.low %vm3867_vm6, %vm3867_vm6 }
  0xac   : > { %vm3899_vm0 = vmand %vm6420_vm4, %vm6426_vm8  ;;  %v2836_v58 = vpack.c.bf16 %v640_v49, %v639_v53  ;;  %vm6432_vm8 = vcmask 130048   ;;  %vm6479_vm4 = vcmp.lt.s32.totalorder %v3576_v37, 17 }
  0xad   : > { %v6428_v25 = vsel %vm3899_vm0, 4294967295, %v6427_v25  ;;  %vm3910_vm11 = vmpackc.low %vm3899_vm0, %vm3899_vm0  ;;  %3093 = vset.pattern.permute.xlu1 %v3345_v27  ;;  %v3942_v27 = vld [vmem:[%s6128_s8 + $0x10] sm:$0xff] }
  0xae   : > { %6429 = vst [vmem:[#allocation13_spill] sm:$0xff] %v6428_v25  ;;  %2831 = vmatpush1.bf16.msk.msra.mxu0 %vm3876_vm2, %v2830_v48  ;;  %1853 = vperm.xlu1 %3093, %v3500_v12   ;;  %vm6481_vm6 = vmmov %vm6479_vm4 }
  0xaf   : > { %2834 = vmatprep.subr.msk.bf16.mxu0 %vm3890_vm7, %v2833_v57  ;;  %vm6482_vm0 = vmmov %vm6479_vm4 }
  0xb0   : > { %vm6486_vm2 = vmmov %vm6479_vm4 }
  0xb1   : > { %vm6487_vm15 = vmmov %vm6486_vm2 }
  0xb2   : > { %2837 = vmatpush1.bf16.msk.msra.mxu0 %vm3910_vm11, %v2836_v58  ;;  %1857 = vperm.xlu1 %3093, %v3545_v28  }
  0xb4   : > { %v749_v22 = vpop.permute.xlu1 %748  ;;  %v3953_v1 = vpop.permute.xlu0 %1497 }
  0xb5   : > { %717 = vmatmul.mubr.bf16.vlgmr.msra.gmra.mrb[0].mxu0 %v3280_v61  ;;  %6433 = vst [vmem:[#allocation14_spill] sm:$0xff] %v3953_v1 }
  0xb6   : > { %2839 = vmatprep.mubr.msk.bf16.mxu0 %vm6432_vm8, %v3283_v4  ;;  %3095 = vset.pattern.permute.xlu1 %v6169_v15  ;;  %vm6480_vm8 = vmmov %vm6479_vm4 }
  0xb7   : > { %1882 = vperm.xlu1 %3095, %v3934_v3  }
  0xb8   : > { %v754_v0 = vpop.permute.xlu1 %753  ;;  %v3955_v16 = vpop.permute.xlu0 %1509 }
  0xb9   : > { %6434 = vst [vmem:[#allocation15_spill] sm:$0xff] %v3955_v16 }
  0xbb   : > { %1892 = vperm.xlu1 %3095, %v3942_v27  }
  0xbc   : > { %v776_v7 = vpop.permute.xlu1 %775 }
  0xbd   : > { %727 = vmatmul.mubr.bf16.gmra.mrb[4].mxu0 %v3285_v63  ;;  %v3957_v23 = vpop.permute.xlu0 %1565 }
  0xbe   : > { %1231 = vmatprep.mubr.bf16.mxu0 %v6169_v15  ;;  %6435 = vst [vmem:[#allocation16_spill] sm:$0xff] %v3957_v23 }
  0xbf   : > { %1897 = vperm.xlu1 %3095, %v1331_v5  }
  0xc0   : > { %v786_v17 = vpop.permute.xlu1 %785 }
  0xc2   : > { %v3961_v32 = vpop.permute.xlu0 %1593 }
  0xc3   : > { %3097 = vset.pattern.permute.xlu1 %v6172_v52  ;;  %6436 = vst [vmem:[#allocation17_spill] sm:$0xff] %v3961_v32 }
  0xc4   : > { %1964 = vperm.xlu1 %3097, %v3500_v12   ;;  %v3959_v24 = vpop.permute.xlu1 %1258 }
  0xc6   : > { %v3965_v34 = vpop.permute.xlu0 %1605 }
  0xc7   : > { %6437 = vst [vmem:[#allocation18_spill] sm:$0xff] %v3965_v34 }
  0xc8   : > { %3098 = vset.pattern.permute.xlu1 %v6173_v19  ;;  %v3963_v33 = vpop.permute.xlu1 %1268 }
  0xc9   : > { %2029 = vperm.xlu1 %3098, %v3484_v9  }
  0xcb   : > { %v3969_v40 = vpop.permute.xlu0 %1661 }
  0xcc   : > { %v3967_v38 = vpop.permute.xlu1 %1290  ;;  %6438 = vst [vmem:[#allocation19_spill] sm:$0xff] %v3969_v40 }
  0xcd   : > { %3225 = vset.pattern.permute.xlu1 %v6172_v52 }
  0xd0   : > { %v3971_v45 = vpop.permute.xlu1 %1300  ;;  %v3973_v48 = vpop.permute.xlu0 %1721 }
  0xd1   : > { %6439 = vst [vmem:[#allocation20_spill] sm:$0xff] %v3973_v48 }
  0xd4   : > { %v3975_v49 = vpop.permute.xlu1 %1366  ;;  %v3977_v53 = vpop.permute.xlu0 %1733 }
  0xd5   : > { %6440 = vst [vmem:[#allocation21_spill] sm:$0xff] %v3975_v49  ;;  %6441 = vst [vmem:[#allocation22_spill] sm:$0xff] %v3977_v53 }
  0xd8   : > { %v3979_v57 = vpop.permute.xlu1 %1376 }
  0xd9   : > { %6442 = vst [vmem:[#allocation23_spill] sm:$0xff] %v3979_v57  ;;  %v3981_v58 = vpop.permute.xlu0 %1789 }
  0xda   : > { %6443 = vst [vmem:[#allocation24_spill] sm:$0xff] %v3981_v58 }
  0xdd   : > { %v3983_v61 = vpop.permute.xlu1 %1433 }
  0xde   : > { %6444 = vst [vmem:[#allocation25_spill] sm:$0xff] %v3983_v61  ;;  %v3985_v4 = vpop.permute.xlu0 %1849 }
  0xdf   : > { %6445 = vst [vmem:[#allocation26_spill] sm:$0xff] %v3985_v4 }
  0xe1   : > { %v3987_v63 = vpop.permute.xlu1 %1441 }
  0xe2   : > { %6446 = vst [vmem:[#allocation27_spill] sm:$0xff] %v3987_v63  ;;  %v3989_v5 = vpop.permute.xlu0 %1861 }
  0xe3   : > { %6447 = vst [vmem:[#allocation28_spill] sm:$0xff] %v3989_v5 }
  0xe5   : > { %v3991_v35 = vpop.permute.xlu1 %1445 }
  0xe6   : > { %6448 = vst [vmem:[#allocation29_spill] sm:$0xff] %v3991_v35 }
  0xe7   : > { %v744_v15 = vpop.permute.xlu0 %743 }
  0xea   : > { %v3993_v31 = vpop.permute.xlu1 %1501 }
  0xeb   : > { %6449 = vst [vmem:[#allocation30_spill] sm:$0xff] %v3993_v31  ;;  %v759_v52 = vpop.permute.xlu0 %758  ;;  %v3355_v31 = vmov 17  }
  0xee   : > { %v3995_v19 = vpop.permute.xlu1 %1505 }
  0xef   : > { %6450 = vst [vmem:[#allocation31_spill] sm:$0xff] %v3995_v19  ;;  %v781_v49 = vpop.permute.xlu0 %780 }
  0xf3   : > { %v3997_v46 = vpop.permute.xlu1 %1561 }
  0xf4   : > { %6451 = vst [vmem:[#allocation32_spill] sm:$0xff] %v3997_v46 }
 0x188   : > { %v718_v53 = vpop.f32.mrb[0].mxu0 }
 0x189   : > { %v761_v34 = vmul.f32 %v744_v15, %v718_v53  ;;  %v720_v16 = vpop.f32.mrb[1].mxu0 }
 0x18a   : > { %v762_v57 = vmul.f32 %v744_v15, %v720_v16  ;;  %v722_v48 = vpop.f32.mrb[2].mxu0 }
 0x18b   : > { %v793_v32 = vadd.f32 %v776_v7, %v761_v34  ;;  %v763_v1 = vmul.f32 %v749_v22, %v722_v48  ;;  %v724_v4 = vpop.f32.mrb[3].mxu0 }
 0x18c   : > { %v794_v63 = vadd.f32 %v776_v7, %v762_v57  ;;  %v764_v61 = vmul.f32 %v749_v22, %v724_v4  ;;  %v4000_v22 = vpop.permute.xlu1 %1569 }
 0x18d   : > { %v795_v5 = vadd.f32 %v781_v49, %v763_v1  ;;  %v801_v25 = vmax.f32 %v793_v32, 0.0  ;;  %6452 = vst [vmem:[#allocation33_spill] sm:$0xff] %v4000_v22  ;;  %v791_v1 = vpop.permute.xlu0 %790  ;;  %v3352_v22 = vmov 14  }
 0x18e   : > { %v796_v35 = vadd.f32 %v781_v49, %v764_v61  ;;  %v802_v40 = vmax.f32 %v794_v63, 0.0 }
 0x18f   : > { %v803_v58 = vmax.f32 %v795_v5, 0.0 }
 0x190   : > { %v804_v2 = vmax.f32 %v796_v35, 0.0  ;;  %v728_v19 = vpop.f32.mrb[4].mxu0 }
 0x191   : > { %v765_v13 = vmul.f32 %v754_v0, %v728_v19  ;;  %v730_v53 = vpop.f32.mrb[5].mxu0  ;;  %v3099_v23 = vpack.i.bf16 %v803_v58, %v801_v25  ;;  %v4005_v5 = vpack.c.bf16 %v803_v58, %v801_v25 }
 0x192   : > { %v766_v15 = vmul.f32 %v754_v0, %v730_v53  ;;  %v732_v16 = vpop.f32.mrb[6].mxu0  ;;  %v3139_v32 = vpack.i.bf16 %v804_v2, %v802_v40  ;;  %v4003_v19 = vpack.c.bf16 %v804_v2, %v802_v40 }
 0x193   : > { %v797_v34 = vadd.f32 %v786_v17, %v765_v13  ;;  %v767_v48 = vmul.f32 %v759_v52, %v732_v16  ;;  %3100 = vrot.lane.b32.xlu1 %v3099_v23, %s3331_s15  ;;  %v734_v7 = vpop.f32.mrb[7].mxu0  ;;  %v4007_v16 = vpop.permute.xlu1 %1573 }
 0x194   : > { %v798_v57 = vadd.f32 %v786_v17, %v766_v15  ;;  %v768_v49 = vmul.f32 %v759_v52, %v734_v7  ;;  %6453 = vst [vmem:[#allocation34_spill] sm:$0xff] %v4007_v16 }
 0x195   : > { %v799_v61 = vadd.f32 %v791_v1, %v767_v48  ;;  %v805_v4 = vmax.f32 %v797_v34, 0.0 }
 0x196   : > { %v800_v35 = vadd.f32 %v791_v1, %v768_v49  ;;  %v806_v0 = vmax.f32 %v798_v57, 0.0  ;;  %v3349_v57 = vmov 11  }
 0x197   : > { %v807_v63 = vmax.f32 %v799_v61, 0.0  ;;  %3105 = vrot.lane.b32.xlu1 %v3099_v23, %s3330_s14  ;;  %v4019_v2 = vpop.permute.xlu1 %1597  ;;  %v6464_v61 = vmov 10  }
 0x198   : > { %v808_v13 = vmax.f32 %v800_v35, 0.0  ;;  %6454 = vst [vmem:[#allocation35_spill] sm:$0xff] %v4019_v2  ;;  %v4077_v35 = vpop.permute.xlu0 %1263 }
 0x199   : > { %v3179_v53 = vpack.i.bf16 %v807_v63, %v805_v4  ;;  %v4015_v15 = vpack.c.bf16 %v807_v63, %v805_v4  ;;  %v3350_v4 = vmov 12  }
 0x19a   : > { %v4011_v52 = vpack.i.bf16 %v808_v13, %v806_v0  ;;  %v4013_v17 = vpack.c.bf16 %v808_v13, %v806_v0  ;;  %v6467_v0 = vmov 9  }
 0x19b   : > { %3110 = vrot.lane.b32.xlu1 %v3099_v23, %s3332_s16  ;;  %3180 = vrot.lane.b32.xlu0 %v3179_v53, %s3331_s15  ;;  %v4023_v25 = vpop.permute.xlu1 %1601 }
 0x19c   : > { %6455 = vst [vmem:[#allocation36_spill] sm:$0xff] %v4023_v25  ;;  %v4086_v13 = vpop.permute.xlu0 %1273 }
 0x19d   : > { %6468 = vst [vmem:[#allocation47_spill] sm:$0xff] %v4086_v13 }
 0x19f   : > { %3115 = vrot.lane.b32.xlu1 %v3099_v23, %s3333_s17  ;;  %3185 = vrot.lane.b32.xlu0 %v3179_v53, %s3330_s14  ;;  %v4029_v40 = vpop.permute.xlu1 %1657 }
 0x1a0   : > { %6456 = vst [vmem:[#allocation37_spill] sm:$0xff] %v4029_v40  ;;  %v3353_v40 = vmov 15  }
 0x1a3   : > { %3120 = vrot.lane.b32.xlu1 %v3099_v23, %s6255_s18  ;;  %3190 = vrot.lane.b32.xlu0 %v3179_v53, %s3332_s16  ;;  %v4033_v58 = vpop.permute.xlu1 %1665 }
 0x1a4   : > { %6457 = vst [vmem:[#allocation38_spill] sm:$0xff] %v4033_v58 }
 0x1a7   : > { %3125 = vrot.lane.b32.xlu1 %v3099_v23, %s3335_s19  ;;  %3195 = vrot.lane.b32.xlu0 %v3179_v53, %s3333_s17  ;;  %v4039_v34 = vpop.permute.xlu1 %1669 }
 0x1a8   : > { %6458 = vst [vmem:[#allocation39_spill] sm:$0xff] %v4039_v34 }
 0x1ab   : > { %3130 = vrot.lane.b32.xlu1 %v3099_v23, %s6251_s20  ;;  %3200 = vrot.lane.b32.xlu0 %v3179_v53, %s6255_s18 }
 0x1af   : > { %3135 = vrot.lane.b32.xlu1 %v3099_v23, %s6257_s21  ;;  %3205 = vrot.lane.b32.xlu0 %v3179_v53, %s3335_s19  ;;  %v4044_v23 = vpop.permute.xlu1 %1725 }
 0x1b0   : > { %6459 = vst [vmem:[#allocation40_spill] sm:$0xff] %v4044_v23 }
 0x1b3   : > { %3140 = vrot.lane.b32.xlu1 %v3139_v32, %s3331_s15  ;;  %3210 = vrot.lane.b32.xlu0 %v3179_v53, %s6251_s20  ;;  %v4051_v48 = vpop.permute.xlu1 %1729 }
 0x1b4   : > { %6460 = vst [vmem:[#allocation41_spill] sm:$0xff] %v4051_v48  ;;  %v3351_v48 = vmov 13  }
 0x1b7   : > { %3145 = vrot.lane.b32.xlu1 %v3139_v32, %s3330_s14  ;;  %3215 = vrot.lane.b32.xlu0 %v3179_v53, %s6257_s21  ;;  %v4056_v7 = vpop.permute.xlu1 %1785 }
 0x1b8   : > { %6461 = vst [vmem:[#allocation42_spill] sm:$0xff] %v4056_v7 }
 0x1bb   : > { %3150 = vrot.lane.b32.xlu1 %v3139_v32, %s3332_s16  ;;  %3220 = vrot.lane.b32.xlu0 %v4011_v52, %s3331_s15  ;;  %v4063_v1 = vpop.permute.xlu1 %1793 }
 0x1bc   : > { %6462 = vst [vmem:[#allocation43_spill] sm:$0xff] %v4063_v1 }
 0x1bf   : > { %3155 = vrot.lane.b32.xlu1 %v3139_v32, %s3333_s17  ;;  %2033 = vperm.xlu0 %3224, %v3500_v12   ;;  %v4067_v49 = vpop.permute.xlu1 %1797 }
 0x1c0   : > { %6463 = vst [vmem:[#allocation44_spill] sm:$0xff] %v4067_v49 }
 0x1c3   : > { %3160 = vrot.lane.b32.xlu1 %v3139_v32, %s6255_s18  ;;  %3230 = vrot.lane.b32.xlu0 %v4011_v52, %s3330_s14 }
 0x1c7   : > { %3165 = vrot.lane.b32.xlu1 %v3139_v32, %s3335_s19  ;;  %3235 = vrot.lane.b32.xlu0 %v4011_v52, %s3332_s16 }
 0x1cb   : > { %3170 = vrot.lane.b32.xlu1 %v3139_v32, %s6251_s20  ;;  %2041 = vperm.xlu0 %3224, %v3494_v11  }
 0x1cf   : > { %3175 = vrot.lane.b32.xlu1 %v3139_v32, %s6257_s21  ;;  %3240 = vrot.lane.b32.xlu0 %v4011_v52, %s3333_s17  ;;  %v4074_v32 = vpop.permute.xlu1 %1853 }
 0x1d0   : > { %3244 = vset.pattern.permute.xlu0 %v3349_v57  ;;  %6465 = vst [vmem:[#allocation45_spill] sm:$0xff] %v4074_v32 }
 0x1d3   : > { %2102 = vperm.xlu0 %3244, %v3484_v9   ;;  %1968 = vperm.xlu1 %3225, %v3545_v28   ;;  %v4080_v63 = vpop.permute.xlu1 %1857 }
 0x1d4   : > { %6466 = vst [vmem:[#allocation46_spill] sm:$0xff] %v4080_v63 }
 0x1d7   : > { %2114 = vperm.xlu0 %3244, %v3494_v11   ;;  %3226 = vset.pattern.permute.xlu1 %v6464_v61  ;;  %v4090_v53 = vpop.permute.xlu1 %1882  ;;  %v4093_v61 = vpop.permute.xlu0 %1295 }
 0x1d8   : > { %2037 = vperm.xlu1 %3226, %v3545_v28   ;;  %6469 = vst [vmem:[#allocation48_spill] sm:$0xff] %v4090_v53 }
 0x1db   : > { %3248 = vrot.lane.b32.xlu0 %v4011_v52, %s6255_s18 }
 0x1dc   : > { %3252 = vset.pattern.permute.xlu0 %v3350_v4  ;;  %3227 = vset.pattern.permute.xlu1 %v3349_v57 }
 0x1dd   : > { %2106 = vperm.xlu1 %3227, %v3500_v12  }
 0x1df   : > { %2175 = vperm.xlu0 %3252, %v3500_v12  }
 0x1e1   : > { %3228 = vset.pattern.permute.xlu1 %v6467_v0  ;;  %v4098_v0 = vpop.permute.xlu1 %1892 }
 0x1e2   : > { %1972 = vperm.xlu1 %3228, %v3494_v11   ;;  %6470 = vst [vmem:[#allocation49_spill] sm:$0xff] %v4098_v0 }
 0x1e3   : > { %3255 = vrot.lane.b32.xlu0 %v4011_v52, %s3335_s19 }
 0x1e5   : > { %v4104_v49 = vpop.permute.xlu1 %1897 }
 0x1e6   : > { %3245 = vset.pattern.permute.xlu1 %v3349_v57  ;;  %v4102_v57 = vpop.permute.xlu0 %1305  ;;  %6472 = vst [vmem:[#allocation51_spill] sm:$0xff] %v4104_v49 }
 0x1e7   : > { %3260 = vrot.lane.b32.xlu0 %v4011_v52, %s6251_s20  ;;  %2110 = vperm.xlu1 %3245, %v3545_v28   ;;  %6471 = vst [vmem:[#allocation50_spill] sm:$0xff] %v4102_v57  ;;  %s3356_s20 = smov 34  }
 0x1e9   : > { %v4108_v16 = vpop.permute.xlu1 %1964 }
 0x1ea   : > { %v4106_v34 = vpop.permute.xlu0 %1371  ;;  %6474 = vst [vmem:[#allocation53_spill] sm:$0xff] %v4108_v16 }
 0x1eb   : > { %3265 = vrot.lane.b32.xlu0 %v4011_v52, %s6257_s21  ;;  %3246 = vset.pattern.permute.xlu1 %v3350_v4  ;;  %6473 = vst [vmem:[#allocation52_spill] sm:$0xff] %v4106_v34  ;;  %v3289_v52 = vld [vmem:[%s6124_s4 + $0x4] ss:$12 sps:$4 sm:$0xff]  }
 0x1ec   : > { %2171 = vperm.xlu1 %3246, %v3484_v9   ;;  %1178 = vmatprep.mubr.bf16.mxu1 %v3289_v52 }
 0x1ed   : > { %v4115_v0 = vpop.permute.xlu1 %2029 }
 0x1ee   : > { %v4113_v4 = vpop.permute.xlu0 %1381  ;;  %6476 = vst [vmem:[#allocation55_spill] sm:$0xff] %v4115_v0 }
 0x1ef   : > { %2183 = vperm.xlu0 %3252, %v3494_v11   ;;  %6475 = vst [vmem:[#allocation54_spill] sm:$0xff] %v4113_v4 }
 0x1f0   : > { %2179 = vperm.xlu1 %3246, %v3545_v28  }
 0x1f2   : > { %v4117_v63 = vpop.permute.xlu0 %1887 }
 0x1f3   : > { %6477 = vst [vmem:[#allocation56_spill] sm:$0xff] %v4117_v63  ;;  %3269 = vset.pattern.permute.xlu0 %v3351_v48 }
 0x1f4   : > { %3253 = vset.pattern.permute.xlu1 %v3351_v48  ;;  %2207 = vperm.xlu0 %3269, %v3500_v12  }
 0x1f5   : > { %2203 = vperm.xlu1 %3253, %v3484_v9  }
 0x1f6   : > { %v4119_v49 = vpop.permute.xlu0 %1960 }
 0x1f7   : > { %6478 = vst [vmem:[#allocation57_spill] sm:$0xff] %v4119_v49 }
 0x1f8   : > { %2215 = vperm.xlu0 %3269, %v3494_v11  }
 0x1f9   : > { %2211 = vperm.xlu1 %3253, %v3545_v28  }
 0x1fc   : > { %3271 = vset.pattern.permute.xlu0 %v3352_v22 }
 0x1fd   : > { %3270 = vset.pattern.permute.xlu1 %v3352_v22  ;;  %2276 = vperm.xlu0 %3271, %v3500_v12  }
 0x1fe   : > { %2272 = vperm.xlu1 %3270, %v3484_v9  }
 0x201   : > { %2284 = vperm.xlu0 %3271, %v3494_v11  }
 0x202   : > { %2280 = vperm.xlu1 %3270, %v3545_v28  }
 0x205   : > { %v3101_v1 = vpop.permute.xlu1 %3100  ;;  %3273 = vset.pattern.permute.xlu0 %v3353_v40 }
 0x206   : > { %3272 = vset.pattern.permute.xlu1 %v3353_v40  ;;  %2349 = vperm.xlu0 %3273, %v3500_v12   ;;  %v3354_v40 = vmov 16   ;;  %v3103_v26 = vunpack.i.h.bf16 %v3101_v1  ;;  %v3102_v55 = vunpack.i.l.bf16 %v3101_v1 }
 0x207   : > { %2345 = vperm.xlu1 %3272, %v3484_v9  }
 0x209   : > { %v4123_v58 = vpop.permute.xlu1 %3105 }
 0x20a   : > { %2357 = vperm.xlu0 %3273, %v3494_v11  }
 0x20b   : > { %2353 = vperm.xlu1 %3272, %v3545_v28  }
 0x20d   : > { %v4127_v52 = vpop.permute.xlu1 %3110  ;;  %v4129_v4 = vpop.permute.xlu0 %3180 }
 0x20e   : > { %3276 = vset.pattern.permute.xlu0 %v3355_v31  ;;  %v3113_v10 = vunpack.i.h.bf16 %v4127_v52 }
 0x20f   : > { %3274 = vset.pattern.permute.xlu1 %v3354_v40  ;;  %2489 = vperm.xlu0 %3276, %v3500_v12  }
 0x210   : > { %2414 = vperm.xlu1 %3274, %v3484_v9  }
 0x211   : > { %v4133_v48 = vpop.permute.xlu1 %3115  ;;  %v4135_v53 = vpop.permute.xlu0 %3185 }
 0x213   : > { %3277 = vset.pattern.permute.xlu0 %v3354_v40 }
 0x214   : > { %2422 = vperm.xlu1 %3274, %v3545_v28   ;;  %2418 = vperm.xlu0 %3277, %v3500_v12   ;;  %v3318_v12 = vld [vmem:[%s6127_s7] sm:$0xff] }
 0x215   : > { %v4139_v25 = vpop.permute.xlu1 %3120  ;;  %v4141_v7 = vpop.permute.xlu0 %3190 }
 0x218   : > { %3275 = vset.pattern.permute.xlu1 %v3355_v31  ;;  %v3319_v31 = vld [vmem:[%s6127_s7 + $0x18] sm:$0xff] }
 0x219   : > { %v4143_v22 = vpop.permute.xlu1 %3125  ;;  %v4145_v46 = vpop.permute.xlu0 %3195  ;;  %2485 = vperm.xlu1 %3275, %v3318_v12   ;;  %2426 = vperm.xlu0 %3277, %v3319_v31  }
 0x21d   : > { %v4149_v63 = vpop.permute.xlu1 %3130  ;;  %v4151_v32 = vpop.permute.xlu0 %3200  ;;  %2493 = vperm.xlu1 %3275, %v3545_v28   ;;  %v6488_v28 = vmov 1  }
 0x21e   : > { %3278 = vset.pattern.permute.xlu0 %v6488_v28 }
 0x21f   : > { %1437 = vperm.xlu0 %3278, %v3320_v43  }
 0x221   : > { %v4155_v16 = vpop.permute.xlu1 %3135  ;;  %v4157_v23 = vpop.permute.xlu0 %3205  ;;  %2497 = vperm.xlu1 %3275, %v3319_v31  }
 0x223   : > { %2517 = vperm.xlu0 %3278, %v3934_v3   ;;  %v3112_v3 = vunpack.i.l.bf16 %v4127_v52 }
 0x225   : > { %v3141_v2 = vpop.permute.xlu1 %3140  ;;  %v4161_v34 = vpop.permute.xlu0 %3210  ;;  %3279 = vset.pattern.permute.xlu1 %v6488_v28 }
 0x226   : > { %v3143_v51 = vunpack.i.h.bf16 %v3141_v2  ;;  %v3142_v56 = vunpack.i.l.bf16 %v3141_v2  ;;  %2521 = vperm.xlu1 %3279, %v3627_v59   ;;  %v3138_v59 = vunpack.i.h.bf16 %v4155_v16 }
 0x228   : > { %v825_v11 = vsel %vm6479_vm4, %v3102_v55, %v3142_v56  ;;  %v826_v9 = vsel %vm6480_vm8, %v3103_v26, %v3143_v51  ;;  %v829_v49 = vsel %vm6481_vm6, %v3142_v56, %v3102_v55  ;;  %v830_v57 = vsel %vm6482_vm0, %v3143_v51, %v3103_v26  ;;  %vm6485_vm8 = vmmov %vm6479_vm4 }
 0x229   : > { %v3146_v1 = vpop.permute.xlu1 %3145  ;;  %v4173_v0 = vpop.permute.xlu0 %3215  ;;  %v2847_v2 = vpack.c.bf16 %v826_v9, %v825_v11  ;;  %v2850_v13 = vpack.c.bf16 %v830_v57, %v829_v49  ;;  %v3108_v26 = vunpack.i.h.bf16 %v4123_v58  ;;  %v3107_v55 = vunpack.i.l.bf16 %v4123_v58 }
 0x22a   : > { %v3148_v40 = vunpack.i.h.bf16 %v3146_v1  ;;  %v3147_v42 = vunpack.i.l.bf16 %v3146_v1  ;;  %v3183_v11 = vunpack.i.h.bf16 %v4129_v4  ;;  %v3182_v9 = vunpack.i.l.bf16 %v4129_v4  ;;  %2525 = vperm.xlu1 %3279, %v3942_v27  }
 0x22b   : > { %2848 = vmatprep.subr.msk.bf16.mxu1 %vm3637_vm9, %v2847_v2  ;;  %vm6483_vm6 = vcmp.lt.s32.totalorder %v3576_v37, 16 }
 0x22c   : > { %2851 = vmatpush1.bf16.msk.msra.mxu1 %vm3654_vm12, %v2850_v13  ;;  %v862_v13 = vsel %vm6483_vm6, %v3108_v26, %v3148_v40  ;;  %vm6484_vm0 = vmmov %vm6483_vm6 }
 0x22d   : > { %v4182_v51 = vpop.permute.xlu1 %3150  ;;  %v3221_v56 = vpop.permute.xlu0 %3220  ;;  %v861_v1 = vsel %vm6484_vm0, %v3107_v55, %v3147_v42  ;;  %vm6489_vm6 = vmmov %vm6484_vm0 }
 0x22e   : > { %v3223_v49 = vunpack.i.h.bf16 %v3221_v56  ;;  %v3222_v57 = vunpack.i.l.bf16 %v3221_v56  ;;  %v3153_v62 = vunpack.i.h.bf16 %v4182_v51 }
 0x230   : > { %v828_v2 = vsel %vm6479_vm4, %v3183_v11, %v3223_v49  ;;  %v832_v58 = vsel %vm6485_vm8, %v3223_v49, %v3183_v11  ;;  %v827_v12 = vsel %vm6486_vm2, %v3182_v9, %v3222_v57  ;;  %v831_v4 = vsel %vm6487_vm15, %v3222_v57, %v3182_v9  ;;  %vm6490_vm2 = vmmov %vm6484_vm0 }
 0x231   : > { %v4204_v56 = vpop.permute.xlu1 %3155  ;;  %v2853_v41 = vpack.c.bf16 %v828_v2, %v827_v12  ;;  %v2856_v44 = vpack.c.bf16 %v832_v58, %v831_v4  ;;  %v866_v49 = vsel %vm6489_vm6, %v3148_v40, %v3108_v26  ;;  %v865_v11 = vsel %vm6490_vm2, %v3147_v42, %v3107_v55  ;;  %vm6497_vm8 = vmmov %vm6490_vm2 }
 0x232   : > { %v2859_v57 = vpack.c.bf16 %v862_v13, %v861_v1  ;;  %v2862_v43 = vpack.c.bf16 %v866_v49, %v865_v11  ;;  %v3188_v40 = vunpack.i.h.bf16 %v4135_v53  ;;  %v3137_v26 = vunpack.i.l.bf16 %v4155_v16  ;;  %vm6498_vm6 = vmmov %vm6490_vm2 }
 0x233   : > { %2854 = vmatprep.subr.msk.bf16.mxu1 %vm3637_vm9, %v2853_v41  ;;  %v3152_v55 = vunpack.i.l.bf16 %v4182_v51  ;;  %v3187_v2 = vunpack.i.l.bf16 %v4135_v53  ;;  %vm6492_vm9 = vcmp.lt.s32.totalorder %v3576_v37, 15 }
 0x234   : > { %2857 = vmatpush1.bf16.msk.msra.mxu1 %vm3654_vm12, %v2856_v44  ;;  %v898_v58 = vsel %vm6492_vm9, %v3113_v10, %v3153_v62  ;;  %vm6493_vm12 = vcmp.lt.s32.totalorder %v3576_v37, 111 }
 0x235   : > { %v4218_v9 = vpop.permute.xlu1 %3160  ;;  %2860 = vmatprep.subr.msk.bf16.mxu1 %vm3661_vm13, %v2859_v57  ;;  %vm6494_vm15 = vmmov %vm6493_vm12 }
 0x236   : > { %vm6495_vm0 = vmmov %vm6493_vm12 }
 0x237   : > { %vm6496_vm4 = vmmov %vm6495_vm0 }
 0x238   : > { %2863 = vmatpush1.bf16.msk.msra.mxu1 %vm3696_vm1, %v2862_v43  ;;  %v897_v43 = vsel %vm6492_vm9, %v3112_v3, %v3152_v55 }
 0x239   : > { %v4227_v41 = vpop.permute.xlu1 %3165 }
 0x23d   : > { %v4230_v42 = vpop.permute.xlu1 %3170 }
 0x23e   : > { %v4232_v44 = vpop.permute.xlu0 %2033 }
 0x23f   : > { %6491 = vst [vmem:[#allocation58_spill] sm:$0xff] %v4232_v44  ;;  %v3192_v44 = vunpack.i.l.bf16 %v4141_v7 }
 0x241   : > { %v3176_v31 = vpop.permute.xlu1 %3175 }
 0x242   : > { %v3178_v27 = vunpack.i.h.bf16 %v3176_v31  ;;  %v3177_v13 = vunpack.i.l.bf16 %v3176_v31  ;;  %v3231_v1 = vpop.permute.xlu0 %3230 }
 0x243   : > { %v3233_v12 = vunpack.i.h.bf16 %v3231_v1  ;;  %v3232_v4 = vunpack.i.l.bf16 %v3231_v1 }
 0x244   : > { %v1082_v52 = vsel %vm6493_vm12, %v3138_v59, %v3178_v27  ;;  %v1086_v28 = vsel %vm6494_vm15, %v3178_v27, %v3138_v59  ;;  %v1081_v16 = vsel %vm6495_vm0, %v3137_v26, %v3177_v13  ;;  %v1085_v51 = vsel %vm6496_vm4, %v3177_v13, %v3137_v26  ;;  %vm6499_vm12 = vmmov %vm6490_vm2 }
 0x245   : > { %v2934_v49 = vpack.c.bf16 %v1082_v52, %v1081_v16  ;;  %v864_v53 = vsel %vm6497_vm8, %v3188_v40, %v3233_v12  ;;  %v868_v11 = vsel %vm6498_vm6, %v3233_v12, %v3188_v40  ;;  %v863_v57 = vsel %vm6490_vm2, %v3187_v2, %v3232_v4  ;;  %vm6500_vm15 = vmmov %vm6492_vm9 }
 0x246   : > { %v867_v59 = vsel %vm6499_vm12, %v3232_v4, %v3187_v2  ;;  %v3236_v31 = vpop.permute.xlu0 %3235  ;;  %v2931_v27 = vpack.c.bf16 %v1086_v28, %v1085_v51  ;;  %v2865_v1 = vpack.c.bf16 %v864_v53, %v863_v57  ;;  %v3193_v16 = vunpack.i.h.bf16 %v4141_v7  ;;  %vm6501_vm0 = vmmov %vm6492_vm9 }
 0x247   : > { %v3238_v26 = vunpack.i.h.bf16 %v3236_v31  ;;  %v3237_v13 = vunpack.i.l.bf16 %v3236_v31  ;;  %v2868_v52 = vpack.c.bf16 %v868_v11, %v867_v59  ;;  %v902_v40 = vsel %vm6500_vm15, %v3153_v62, %v3113_v10  ;;  %vm6502_vm4 = vmmov %vm6501_vm0 }
 0x248   : > { %2932 = vmatprep.subr.msk.bf16.mxu0 %vm3890_vm7, %v2931_v27  ;;  %2866 = vmatprep.subr.msk.bf16.mxu1 %vm3661_vm13, %v2865_v1  ;;  %v901_v2 = vsel %vm6501_vm0, %v3152_v55, %v3112_v3  ;;  %v2871_v12 = vpack.c.bf16 %v898_v58, %v897_v43  ;;  %v3158_v4 = vunpack.i.h.bf16 %v4204_v56  ;;  %v3157_v7 = vunpack.i.l.bf16 %v4204_v56  ;;  %vm6503_vm8 = vmmov %vm6501_vm0 }
 0x249   : > { %2935 = vmatpush1.bf16.msk.msra.mxu0 %vm3910_vm11, %v2934_v49  ;;  %v900_v28 = vsel %vm6502_vm4, %v3193_v16, %v3238_v26  ;;  %v899_v21 = vsel %vm6503_vm8, %v3192_v44, %v3237_v13  ;;  %2869 = vmatpush1.bf16.msk.msra.mxu1 %vm3696_vm1, %v2868_v52  ;;  %v3118_v10 = vunpack.i.h.bf16 %v4133_v48  ;;  %v3117_v3 = vunpack.i.l.bf16 %v4133_v48  ;;  %vm6505_vm13 = vmmov %vm6501_vm0 }
 0x24a   : > { %v4282_v62 = vpop.permute.xlu0 %2041  ;;  %2872 = vmatprep.subr.msk.bf16.mxu1 %vm3705_vm10, %v2871_v12  ;;  %v2874_v55 = vpack.c.bf16 %v902_v40, %v901_v2  ;;  %v904_v56 = vsel %vm6505_vm13, %v3238_v26, %v3193_v16  ;;  %vm6506_vm6 = vmmov %vm6501_vm0  ;;  %v2877_v51 = vpack.c.bf16 %v900_v28, %v899_v21  ;;  %vm6507_vm2 = vcmp.lt.s32.totalorder %v3576_v37, 1 }
 0x24b   : > { %6504 = vst [vmem:[#allocation59_spill] sm:$0xff] %v4282_v62  ;;  %v903_v58 = vsel %vm6506_vm6, %v3237_v13, %v3192_v44  ;;  %v934_v39 = vsel %vm6507_vm2, %v3118_v10, %v3158_v4  ;;  %vm6508_vm1 = vmmov %vm6507_vm2  ;;  %v3198_v57 = vunpack.i.h.bf16 %v4145_v46  ;;  %v3197_v44 = vunpack.i.l.bf16 %v4145_v46 }
 0x24c   : > { %v933_v49 = vsel %vm6508_vm1, %v3117_v3, %v3157_v7  ;;  %v2880_v43 = vpack.c.bf16 %v904_v56, %v903_v58  ;;  %vm6509_vm9 = vmmov %vm6508_vm1  ;;  %vm6515_vm8 = vnez %v6388_v30  ;;  %v3163_v2 = vunpack.i.h.bf16 %v4218_v9 }
 0x24d   : > { %2875 = vmatpush1.bf16.msk.msra.mxu1 %vm3736_vm3, %v2874_v55  ;;  %v938_v59 = vsel %vm6509_vm9, %v3158_v4, %v3118_v10  ;;  %vm6510_vm12 = vmmov %vm6508_vm1  ;;  %v2883_v27 = vpack.c.bf16 %v934_v39, %v933_v49  ;;  %v3162_v12 = vunpack.i.l.bf16 %v4218_v9  ;;  %v3122_v28 = vunpack.i.l.bf16 %v4139_v25 }
 0x24e   : > { %v3241_v53 = vpop.permute.xlu0 %3240  ;;  %2878 = vmatprep.subr.msk.bf16.mxu1 %vm3705_vm10, %v2877_v51  ;;  %v937_v31 = vsel %vm6510_vm12, %v3157_v7, %v3117_v3  ;;  %vm6511_vm15 = vmmov %vm6508_vm1  ;;  %v3123_v7 = vunpack.i.h.bf16 %v4139_v25  ;;  %v3203_v30 = vunpack.i.h.bf16 %v4151_v32  ;;  %v3168_v58 = vunpack.i.h.bf16 %v4227_v41 }
 0x24f   : > { %v3243_v11 = vunpack.i.h.bf16 %v3241_v53  ;;  %v3242_v48 = vunpack.i.l.bf16 %v3241_v53  ;;  %vm6512_vm0 = vmmov %vm6508_vm1  ;;  %v2886_v46 = vpack.c.bf16 %v938_v59, %v937_v31  ;;  %v3167_v51 = vunpack.i.l.bf16 %v4227_v41 }
 0x250   : > { %vm6513_vm10 = vmmov %vm6512_vm0  ;;  %vm6523_vm9 = vnez %v6390_v20  ;;  %v3128_v39 = vunpack.i.h.bf16 %v4143_v22  ;;  %v3127_v49 = vunpack.i.l.bf16 %v4143_v22  ;;  %v3208_v59 = vunpack.i.h.bf16 %v4157_v23 }
 0x251   : > { %v936_v1 = vsel %vm6511_vm15, %v3198_v57, %v3243_v11  ;;  %v935_v26 = vsel %vm6512_vm0, %v3197_v44, %v3242_v48  ;;  %2881 = vmatpush1.bf16.msk.msra.mxu1 %vm3736_vm3, %v2880_v43  ;;  %v940_v13 = vsel %vm6513_vm10, %v3243_v11, %v3198_v57  ;;  %vm6514_vm4 = vmmov %vm6512_vm0  ;;  %vm6517_vm3 = vcmp.lt.s32.totalorder %v3576_v37, 127 }
 0x252   : > { %v4312_v50 = vpop.permute.xlu0 %2102  ;;  %2884 = vmatprep.subr.msk.bf16.mxu1 %vm3743_vm14, %v2883_v27  ;;  %v939_v52 = vsel %vm6514_vm4, %v3242_v48, %v3197_v44  ;;  %v2889_v16 = vpack.c.bf16 %v936_v1, %v935_v26  ;;  %v978_v21 = vsel %vm6517_vm3, %v3163_v2, %v3123_v7  ;;  %vm6519_vm13 = vmmov %vm6517_vm3  ;;  %vm6526_vm0 = vcmp.lt.s32.totalorder %v3576_v37, 113 }
 0x253   : > { %v2892_v8 = vpack.c.bf16 %v940_v13, %v939_v52  ;;  %v974_v25 = vsel %vm6519_vm13, %v3123_v7, %v3163_v2  ;;  %vm6520_vm6 = vmmov %vm6517_vm3  ;;  %vm6528_vm4 = vnez %v6398_v6  ;;  %v3207_v31 = vunpack.i.l.bf16 %v4157_v23 }
 0x254   : > { %v973_v55 = vsel %vm6520_vm6, %v3122_v28, %v3162_v12  ;;  %vm6521_vm2 = vmmov %vm6517_vm3  ;;  %v3173_v27 = vunpack.i.h.bf16 %v4230_v42  ;;  %v3133_v52 = vunpack.i.h.bf16 %v4149_v63  ;;  %v3132_v20 = vunpack.i.l.bf16 %v4149_v63 }
 0x255   : > { %2887 = vmatpush1.bf16.msk.msra.mxu1 %vm6515_vm8, %v2886_v46  ;;  %vm6522_vm1 = vmmov %vm6521_vm2  ;;  %v2898_v41 = vpack.c.bf16 %v974_v25, %v973_v55  ;;  %v3172_v46 = vunpack.i.l.bf16 %v4230_v42  ;;  %v3218_v2 = vunpack.i.h.bf16 %v4173_v0  ;;  %vm6533_vm6 = vcmp.lt.s32.totalorder %v3576_v37, 112 }
 0x256   : > { %v4322_v40 = vpop.permute.xlu0 %2114  ;;  %2890 = vmatprep.subr.msk.bf16.mxu1 %vm3743_vm14, %v2889_v16  ;;  %vm6518_vm14 = vmmov %vm6517_vm3 }
 0x257   : > { %6516 = vst [vmem:[#allocation60_spill] sm:$0xff] %v4322_v40  ;;  %v977_v18 = vsel %vm6518_vm14, %v3162_v12, %v3122_v28  ;;  %vm6524_vm12 = vmmov %vm6522_vm1  ;;  %v3217_v12 = vunpack.i.l.bf16 %v4173_v0  ;;  %v6595_v40 = vld [vmem:[#allocation3_spill] sm:$0xff] }
 0x258   : > { %v2895_v56 = vpack.c.bf16 %v978_v21, %v977_v18  ;;  %vm6525_vm15 = vmmov %vm6522_vm1 }
 0x259   : > { %2893 = vmatpush1.bf16.msk.msra.mxu1 %vm6515_vm8, %v2892_v8  ;;  %vm6527_vm10 = vmmov %vm6526_vm0 }
 0x25a   : > { %v3249_v4 = vpop.permute.xlu0 %3248  ;;  %1162 = vmatprep.subr.bf16.mxu1 %v4003_v19  ;;  %v3202_v19 = vunpack.i.l.bf16 %v4151_v32  ;;  %v1013_v43 = vsel %vm6527_vm10, %v3167_v51, %v3127_v49  ;;  %vm6529_vm8 = vmmov %vm6526_vm0 }
 0x25b   : > { %v3251_v10 = vunpack.i.h.bf16 %v3249_v4  ;;  %v3250_v3 = vunpack.i.l.bf16 %v3249_v4  ;;  %v1010_v1 = vsel %vm6529_vm8, %v3128_v39, %v3168_v58  ;;  %vm6530_vm3 = vmmov %vm6526_vm0  ;;  %v1050_v4 = vsel %vm6533_vm6, %v3173_v27, %v3133_v52 }
 0x25c   : > { %v1009_v26 = vsel %vm6530_vm3, %v3127_v49, %v3167_v51  ;;  %vm6531_vm14 = vmmov %vm6526_vm0  ;;  %v3213_v51 = vunpack.i.h.bf16 %v4161_v34 }
 0x25d   : > { %1163 = vmatpush1.bf16.msra.mxu1 %v4005_v5  ;;  %v980_v5 = vsel %vm6521_vm2, %v3251_v10, %v3203_v30  ;;  %v976_v53 = vsel %vm6524_vm12, %v3203_v30, %v3251_v10  ;;  %v975_v11 = vsel %vm6525_vm15, %v3202_v19, %v3250_v3  ;;  %vm6532_vm13 = vmmov %vm6526_vm0  ;;  %vm6534_vm2 = vnez %v6405_v14 }
 0x25e   : > { %v4338_v9 = vpop.permute.xlu0 %2175  ;;  %1164 = vmatprep.subr.bf16.mxu1 %v4013_v17  ;;  %v979_v17 = vsel %vm6522_vm1, %v3250_v3, %v3202_v19  ;;  %v2904_v13 = vpack.c.bf16 %v976_v53, %v975_v11  ;;  %v2910_v21 = vpack.c.bf16 %v1010_v1, %v1009_v26  ;;  %vm6535_vm1 = vmmov %vm6533_vm6  ;;  %vm6538_vm15 = vcmp.lt.s32.totalorder %v3576_v37, 111 }
 0x25f   : > { %v2901_v44 = vpack.c.bf16 %v980_v5, %v979_v17  ;;  %v1049_v63 = vsel %vm6535_vm1, %v3172_v46, %v3132_v20  ;;  %vm6537_vm12 = vmmov %vm6526_vm0  ;;  %v3212_v5 = vunpack.i.l.bf16 %v4161_v34  ;;  %vm6546_vm6 = vnez %v6412_v36  ;;  %v3292_v36 = vld [vmem:[%s6124_s4 + $0x18] ss:$12 sps:$4 sm:$0xff]  }
 0x260   : > { %vm6542_vm8 = vmmov %vm6535_vm1  ;;  %v2919_v14 = vpack.c.bf16 %v1050_v4, %v1049_v63 }
 0x261   : > { %1165 = vmatpush1.bf16.msra.mxu1 %v4015_v15  ;;  %v1014_v15 = vsel %vm6526_vm0, %v3168_v58, %v3128_v39  ;;  %v1046_v39 = vsel %vm6542_vm8, %v3133_v52, %v3173_v27  ;;  %vm6543_vm3 = vmmov %vm6535_vm1 }
 0x262   : > { %v3256_v32 = vpop.permute.xlu0 %3255  ;;  %2896 = vmatprep.subr.msk.bf16.mxu1 %vm6523_vm9, %v2895_v56  ;;  %v2907_v8 = vpack.c.bf16 %v1014_v15, %v1013_v43  ;;  %v1045_v49 = vsel %vm6543_vm3, %v3132_v20, %v3172_v46  ;;  %v3290_v15 = vld [vmem:[%s6124_s4 + $0x1c] ss:$12 sps:$4 sm:$0xff]   ;;  %vm6304_vm3 = vcmp.lt.s32.totalorder %v6595_v40, 14 }
 0x263   : > { %v3258_v48 = vunpack.i.h.bf16 %v3256_v32  ;;  %v3257_v57 = vunpack.i.l.bf16 %v3256_v32  ;;  %v3286_v32 = vld [vmem:[%s6124_s4 + $0x8] ss:$12 sps:$4 sm:$0xff]   ;;  %v2922_v53 = vpack.c.bf16 %v1046_v39, %v1045_v49 }
 0x265   : > { %2899 = vmatpush1.bf16.msk.msra.mxu1 %vm6528_vm4, %v2898_v41  ;;  %v1016_v16 = vsel %vm6531_vm14, %v3258_v48, %v3208_v59  ;;  %v1015_v23 = vsel %vm6532_vm13, %v3257_v57, %v3207_v31  ;;  %v1011_v6 = vsel %vm6537_vm12, %v3207_v31, %v3257_v57  ;;  %vm6296_vm14 = vcmask 261120   ;;  %vm6544_vm13 = vmmov %vm6535_vm1  ;;  %v3293_v57 = vld [vmem:[%s6124_s4 + $0x20] ss:$12 sps:$4 sm:$0xff]  }
 0x266   : > { %v3261_v22 = vpop.permute.xlu0 %3260  ;;  %2902 = vmatprep.subr.msk.bf16.mxu1 %vm6523_vm9, %v2901_v44  ;;  %vm6536_vm9 = vmmov %vm6526_vm0  ;;  %v2913_v0 = vpack.c.bf16 %v1016_v16, %v1015_v23  ;;  %v3287_v44 = vld [vmem:[%s6124_s4] ss:$12 sps:$4 sm:$0xff]  }
 0x267   : > { %v1012_v18 = vsel %vm6536_vm9, %v3208_v59, %v3258_v48  ;;  %vm6539_vm0 = vmmov %vm6538_vm15  ;;  %v3263_v25 = vunpack.i.h.bf16 %v3261_v22  ;;  %v3262_v55 = vunpack.i.l.bf16 %v3261_v22  ;;  %v6549_v48 = vmov 0  }
 0x268   : > { %vm6540_vm10 = vmmov %vm6539_vm0  ;;  %v2916_v17 = vpack.c.bf16 %v1012_v18, %v1011_v6  ;;  %v4470_v6 = vpop.permute.xlu1 %1968 }
 0x269   : > { %2905 = vmatpush1.bf16.msk.msra.mxu1 %vm6528_vm4, %v2904_v13  ;;  %vm6541_vm4 = vmmov %vm6539_vm0  ;;  %v1052_v54 = vsel %vm6544_vm13, %v3263_v25, %v3213_v51  ;;  %6552 = vst [vmem:[#allocation62_spill] sm:$0xff] %v4470_v6 }
 0x26a   : > { %v3266_v42 = vpop.permute.xlu0 %3265  ;;  %2908 = vmatprep.subr.msk.bf16.mxu1 %vm6534_vm2, %v2907_v8 }
 0x26b   : > { %v3268_v7 = vunpack.i.h.bf16 %v3266_v42  ;;  %v3267_v28 = vunpack.i.l.bf16 %v3266_v42 }
 0x26d   : > { %v1084_v10 = vsel %vm6538_vm15, %v3218_v2, %v3268_v7  ;;  %v1088_v3 = vsel %vm6539_vm0, %v3268_v7, %v3218_v2  ;;  %v1083_v30 = vsel %vm6540_vm10, %v3217_v12, %v3267_v28  ;;  %v1087_v19 = vsel %vm6541_vm4, %v3267_v28, %v3217_v12  ;;  %2911 = vmatpush1.bf16.msk.msra.mxu1 %vm3841_vm5, %v2910_v21 }
 0x26e   : > { %v2940_v56 = vpack.c.bf16 %v1084_v10, %v1083_v30  ;;  %v2937_v58 = vpack.c.bf16 %v1088_v3, %v1087_v19  ;;  %2914 = vmatprep.subr.msk.bf16.mxu1 %vm6534_vm2, %v2913_v0  ;;  %vm6547_vm2 = vmmov %vm6535_vm1  ;;  %v4480_v30 = vpop.permute.xlu1 %2037  ;;  %vm6312_vm15 = vcmp.ge.s32.totalorder %v6595_v40, 2  ;;  %vm6322_vm0 = vcmp.lt.s32.totalorder %v3576_v37, 32 }
 0x26f   : > { %v1048_v60 = vsel %vm6547_vm2, %v3213_v51, %v3263_v25  ;;  %6553 = vst [vmem:[#allocation63_spill] sm:$0xff] %v4480_v30  ;;  %vm6321_vm10 = vcmp.lt.s32.totalorder %v3576_v37, 34 }
 0x270   : > { %2938 = vmatprep.subr.msk.bf16.mxu0 %vm3890_vm7, %v2937_v58  ;;  %vm6545_vm7 = vmmov %vm6535_vm1 }
 0x271   : > { %2941 = vmatpush1.bf16.msk.msra.mxu0 %vm3910_vm11, %v2940_v56  ;;  %v1051_v34 = vsel %vm6545_vm7, %v3262_v55, %v3212_v5  ;;  %2917 = vmatpush1.bf16.msk.msra.mxu1 %vm3841_vm5, %v2916_v17  ;;  %vm6548_vm11 = vmmov %vm6535_vm1  ;;  %vm6550_vm1 = vnez %v6422_v47  ;;  %v4538_v17 = vpop.permute.xlu0 %2183  ;;  %vm6298_vm7 = vcmp.lt.s32.totalorder %v3576_v37, 30 }
 0x272   : > { %2920 = vmatprep.subr.msk.bf16.mxu1 %vm6546_vm6, %v2919_v14  ;;  %v1047_v41 = vsel %vm6548_vm11, %v3212_v5, %v3262_v55  ;;  %v2925_v11 = vpack.c.bf16 %v1052_v54, %v1051_v34  ;;  %v4490_v19 = vpop.permute.xlu1 %2106  ;;  %6559 = vst [vmem:[#allocation68_spill] sm:$0xff] %v4538_v17  ;;  %v6594_v17 = vld [vmem:[#allocation2_spill] sm:$0xff]  ;;  %vm6297_vm11 = vcmp.lt.s32.totalorder %v3576_v37, 2 }
 0x273   : > { %v2928_v29 = vpack.c.bf16 %v1048_v60, %v1047_v41  ;;  %vm6299_vm12 = vcmp.ge.s32.totalorder %v6594_v17, 2 }
 0x274   : > { %2942 = vmatmul.mubr.msk.bf16.vlgmr.msra.gmra.mrb[8].mxu0 %vm6296_vm14, %v3286_v32  ;;  %vm4785_vm13 = vmand %vm6299_vm12, %vm6312_vm15 }
 0x275   : > { %1241 = vmatprep.mubr.bf16.mxu0 %v6549_v48  ;;  %2923 = vmatpush1.bf16.msk.msra.mxu1 %vm6550_vm1, %v2922_v53  ;;  %v4547_v49 = vpop.permute.xlu0 %2207  ;;  %vm4820_vm2 = vmand %vm6299_vm12, %vm6304_vm3 }
 0x276   : > { %2926 = vmatprep.subr.msk.bf16.mxu1 %vm6546_vm6, %v2925_v11  ;;  %v4496_v25 = vpop.permute.xlu1 %1972 }
 0x277   : > { %6555 = vst [vmem:[#allocation64_spill] sm:$0xff] %v4496_v25 }
 0x279   : > { %2929 = vmatpush1.bf16.msk.msra.mxu1 %vm6550_vm1, %v2928_v29  ;;  %v4556_v34 = vpop.permute.xlu0 %2215  ;;  %vm6300_vm1 = vcmp.lt.s32.totalorder %v3576_v37, 126 }
 0x27a   : > { %v4507_v56 = vpop.permute.xlu1 %2110  ;;  %6561 = vst [vmem:[#allocation70_spill] sm:$0xff] %v4556_v34  ;;  %v6593_v34 = vld [vmem:[#allocation5_spill] sm:$0xff] }
 0x27b   : > { %6556 = vst [vmem:[#allocation65_spill] sm:$0xff] %v4507_v56  ;;  %vm6314_vm9 = vcmp.ge.s32.totalorder %v6593_v34, 2  ;;  %vm6305_vm4 = vcmp.lt.s32.totalorder %v6593_v34, 14 }
 0x27c   : > { %2943 = vmatmul.mubr.msk.bf16.gmra.mrb[12].mxu0 %vm6296_vm14, %v3293_v57  ;;  %1179 = vmatmul.mubr.bf16.vlgmr.msra.gmra.mrb[0].mxu1 %v3287_v44 }
 0x27d   : > { %1188 = vmatprep.mubr.bf16.mxu1 %v3290_v15  ;;  %v4570_v41 = vpop.permute.xlu0 %2276 }
 0x27e   : > { %v4516_v51 = vpop.permute.xlu1 %2171 }
 0x281   : > { %v4578_v48 = vpop.permute.xlu0 %2284 }
 0x282   : > { %6564 = vst [vmem:[#allocation72_spill] sm:$0xff] %v4578_v48  ;;  %v6592_v48 = vld [vmem:[#allocation4_spill] sm:$0xff] }
 0x283   : > { %vm6315_vm5 = vcmp.ge.s32.totalorder %v6592_v48, 2  ;;  %vm6302_vm14 = vcmp.lt.s32.totalorder %v6592_v48, 14 }
 0x284   : > { %1189 = vmatmul.mubr.bf16.gmra.mrb[4].mxu1 %v3292_v36  ;;  %vm4776_vm8 = vmand %vm6315_vm5, %vm6314_vm9 }
 0x285   : > { %v4590_v57 = vpop.permute.xlu0 %2349  ;;  %vm4806_vm6 = vmand %vm6315_vm5, %vm6305_vm4 }
 0x289   : > { %v4598_v15 = vpop.permute.xlu0 %2357 }
 0x28a   : > { %6567 = vst [vmem:[#allocation75_spill] sm:$0xff] %v4598_v15 }
 0x347   : > { %v1233_v43 = vpop.f32.mrb[8].mxu0 }
 0x348   : > { %v1235_v22 = vpop.f32.mrb[9].mxu0 }
 0x349   : > { %v1237_v59 = vpop.f32.mrb[10].mxu0 }
 0x34a   : > { %v1239_v31 = vpop.f32.mrb[11].mxu0 }
 0x34f   : > { %v1243_v27 = vpop.f32.mrb[12].mxu0  ;;  %v1180_v47 = vpop.f32.mrb[0].mxu1 }
 0x350   : > { %v1245_v1 = vpop.f32.mrb[13].mxu0  ;;  %v1234_v26 = vadd.f32 %v1233_v43, %v1180_v47  ;;  %v1182_v46 = vpop.f32.mrb[1].mxu1 }
 0x351   : > { %v1247_v13 = vpop.f32.mrb[14].mxu0  ;;  %v1236_v52 = vadd.f32 %v1235_v22, %v1182_v46  ;;  %v1184_v16 = vpop.f32.mrb[2].mxu1 }
 0x352   : > { %v1249_v23 = vpop.f32.mrb[15].mxu0  ;;  %v1276_v8 = vmul.f32 %v3959_v24, %v1234_v26  ;;  %v1238_v20 = vadd.f32 %v1237_v59, %v1184_v16  ;;  %v1186_v2 = vpop.f32.mrb[3].mxu1 }
 0x353   : > { %v4457_v12 = vadd.f32 %v1239_v31, %v1186_v2  ;;  %v1277_v55 = vmul.f32 %v3959_v24, %v1236_v52  ;;  %v4610_v43 = vpop.permute.xlu0 %2489 }
 0x354   : > { %v1308_v42 = vadd.f32 %v3967_v38, %v1276_v8  ;;  %v1278_v39 = vmul.f32 %v4077_v35, %v1238_v20 }
 0x355   : > { %v1309_v58 = vadd.f32 %v3967_v38, %v1277_v55  ;;  %v4526_v38 = vpop.permute.xlu1 %2179  ;;  %v1279_v22 = vmul.f32 %v4077_v35, %v4457_v12 }
 0x356   : > { %v4460_v4 = vmax.f32 %v1308_v42, 0.0  ;;  %6558 = vst [vmem:[#allocation67_spill] sm:$0xff] %v4526_v38  ;;  %v1310_v54 = vadd.f32 %v4093_v61, %v1278_v39 }
 0x357   : > { %v1190_v7 = vpop.f32.mrb[4].mxu1  ;;  %v4514_v24 = vmax.f32 %v1309_v58, 0.0  ;;  %v1311_v31 = vadd.f32 %v4093_v61, %v1279_v22 }
 0x358   : > { %6551 = vst [vmem:[#allocation61_spill] sm:$0xff] %v4460_v4  ;;  %v4462_v28 = vadd.f32 %v1243_v27, %v1190_v7  ;;  %1464 = vrot.lane.b32.xlu0 %v4460_v4, %s3332_s16  ;;  %1332 = vrot.lane.b32.xlu1 %v4460_v4, %s3331_s15  ;;  %v1192_v21 = vpop.f32.mrb[5].mxu1  ;;  %v4562_v53 = vmax.f32 %v1310_v54, 0.0  ;;  %v4621_v27 = vpop.permute.xlu0 %2418 }
 0x359   : > { %v4468_v63 = vadd.f32 %v1245_v1, %v1192_v21  ;;  %v1194_v18 = vpop.f32.mrb[6].mxu1  ;;  %6557 = vst [vmem:[#allocation66_spill] sm:$0xff] %v4514_v24  ;;  %v4532_v5 = vpop.permute.xlu1 %2203  ;;  %v4627_v47 = vmax.f32 %v1311_v31, 0.0 }
 0x35a   : > { %v4472_v0 = vadd.f32 %v1247_v13, %v1194_v18  ;;  %v1196_v10 = vpop.f32.mrb[7].mxu1  ;;  %v1280_v16 = vmul.f32 %v3963_v33, %v4462_v28 }
 0x35b   : > { %v4474_v3 = vadd.f32 %v1249_v23, %v1196_v10  ;;  %v1281_v31 = vmul.f32 %v3963_v33, %v4468_v63 }
 0x35c   : > { %1688 = vrot.lane.b32.xlu0 %v4460_v4, %s3335_s19  ;;  %1400 = vrot.lane.b32.xlu1 %v4460_v4, %s3330_s14  ;;  %v4635_v1 = vpop.permute.xlu0 %2426  ;;  %v1312_v20 = vadd.f32 %v3971_v45, %v1280_v16 }
 0x35d   : > { %v4540_v32 = vpop.permute.xlu1 %2211  ;;  %6572 = vst [vmem:[#allocation79_spill] sm:$0xff] %v4635_v1 }
 0x35e   : > { %6560 = vst [vmem:[#allocation69_spill] sm:$0xff] %v4540_v32  ;;  %v4682_v42 = vmax.f32 %v1312_v20, 0.0 }
 0x360   : > { %1816 = vrot.lane.b32.xlu0 %v4460_v4, %s6257_s21  ;;  %1528 = vrot.lane.b32.xlu1 %v4460_v4, %s3333_s17  ;;  %v4643_v26 = vpop.permute.xlu0 %1437  ;;  %6579 = vst [vmem:[#allocation85_spill] sm:$0xff] %v4682_v42 }
 0x361   : > { %v4553_v14 = vpop.permute.xlu1 %2272 }
 0x364   : > { %1916 = vrot.lane.b32.xlu0 %v4460_v4, %s3356_s20  ;;  %1624 = vrot.lane.b32.xlu1 %v4460_v4, %s6255_s18  ;;  %v4655_v13 = vpop.permute.xlu0 %2517 }
 0x365   : > { %v4564_v60 = vpop.permute.xlu1 %2280  ;;  %6576 = vst [vmem:[#allocation82_spill] sm:$0xff] %v4655_v13 }
 0x366   : > { %6563 = vst [vmem:[#allocation71_spill] sm:$0xff] %v4564_v60 }
 0x368   : > { %2060 = vrot.lane.b32.xlu0 %v4460_v4, %s3357_s27  ;;  %1752 = vrot.lane.b32.xlu1 %v4460_v4, %s6554_s28 }
 0x369   : > { %v4576_v11 = vpop.permute.xlu1 %2345 }
 0x36c   : > { %2133 = vrot.lane.b32.xlu0 %v4460_v4, %s6253_s29  ;;  %1991 = vrot.lane.b32.xlu1 %v4460_v4, %s3359_s30  ;;  %s6278_s29 = smov 94  }
 0x36d   : > { %v4584_v29 = vpop.permute.xlu1 %2353 }
 0x36e   : > { %6565 = vst [vmem:[#allocation73_spill] sm:$0xff] %v4584_v29  ;;  %v6599_v29 = vmov 0 }
 0x36f   : > { %v6600_v29 = vsel %vm4785_vm13, 4294967295, %v6599_v29 }
 0x370   : > { %2234 = vrot.lane.b32.xlu0 %v4460_v4, %s3360_s22  ;;  %2376 = vrot.lane.b32.xlu1 %v4460_v4, %s6261_s23  ;;  %6601 = vst [vmem:[#allocation5_spill] sm:$0xff] %v6600_v29 }
 0x371   : > { %v4596_v44 = vpop.permute.xlu1 %2414 }
 0x372   : > { %6566 = vst [vmem:[#allocation74_spill] sm:$0xff] %v4596_v44  ;;  %v6609_v44 = vld [vmem:[#allocation55_spill] sm:$0xff] }
 0x374   : > { %2303 = vrot.lane.b32.xlu0 %v4460_v4, %s6259_s24  ;;  %2445 = vrot.lane.b32.xlu1 %v4460_v4, %s6278_s29 }
 0x375   : > { %v4604_v36 = vpop.permute.xlu1 %2422 }
 0x376   : > { %6569 = vst [vmem:[#allocation76_spill] sm:$0xff] %v4604_v36  ;;  %v6597_v36 = vmov 0 }
 0x377   : > { %v6598_v36 = vsel %vm4776_vm8, 4294967295, %v6597_v36 }
 0x378   : > { %1472 = vrot.lane.b32.xlu0 %v4514_v24, %s3332_s16  ;;  %1340 = vrot.lane.b32.xlu1 %v4514_v24, %s3331_s15 }
 0x379   : > { %v4614_v59 = vpop.permute.xlu1 %2485 }
 0x37a   : > { %6570 = vst [vmem:[#allocation77_spill] sm:$0xff] %v4614_v59 }
 0x37c   : > { %1696 = vrot.lane.b32.xlu0 %v4514_v24, %s3335_s19  ;;  %1408 = vrot.lane.b32.xlu1 %v4514_v24, %s3330_s14 }
 0x37d   : > { %v4629_v35 = vpop.permute.xlu1 %2493 }
 0x37e   : > { %6571 = vst [vmem:[#allocation78_spill] sm:$0xff] %v4629_v35 }
 0x380   : > { %1824 = vrot.lane.b32.xlu0 %v4514_v24, %s6257_s21  ;;  %1536 = vrot.lane.b32.xlu1 %v4514_v24, %s3333_s17 }
 0x381   : > { %v4637_v61 = vpop.permute.xlu1 %2497 }
 0x382   : > { %6573 = vst [vmem:[#allocation80_spill] sm:$0xff] %v4637_v61  ;;  %v1313_v61 = vadd.f32 %v3971_v45, %v1281_v31 }
 0x384   : > { %1924 = vrot.lane.b32.xlu0 %v4514_v24, %s3356_s20  ;;  %1632 = vrot.lane.b32.xlu1 %v4514_v24, %s6255_s18  ;;  %s6562_s18 = smov 2   ;;  %v4739_v33 = vmax.f32 %v1313_v61, 0.0 }
 0x385   : > { %v4645_v46 = vpop.permute.xlu1 %2521 }
 0x386   : > { %6574 = vst [vmem:[#allocation81_spill] sm:$0xff] %v4645_v46  ;;  %6587 = vst [vmem:[#allocation92_spill] sm:$0xff] %v4739_v33 }
 0x388   : > { %1999 = vrot.lane.b32.xlu0 %v4514_v24, %s3359_s30  ;;  %1760 = vrot.lane.b32.xlu1 %v4514_v24, %s6554_s28 }
 0x389   : > { %v4657_v52 = vpop.permute.xlu1 %2525 }
 0x38a   : > { %6577 = vst [vmem:[#allocation83_spill] sm:$0xff] %v4657_v52 }
 0x38c   : > { %2068 = vrot.lane.b32.xlu0 %v4514_v24, %s3357_s27  ;;  %2384 = vrot.lane.b32.xlu1 %v4514_v24, %s6261_s23 }
 0x390   : > { %2141 = vrot.lane.b32.xlu0 %v4514_v24, %s6562_s18  ;;  %2453 = vrot.lane.b32.xlu1 %v4514_v24, %s6278_s29 }
 0x394   : > { %2242 = vrot.lane.b32.xlu0 %v4514_v24, %s3360_s22  ;;  %1466 = vrot.lane.b32.xlu1 %v4562_v53, %s3332_s16 }
 0x398   : > { %2311 = vrot.lane.b32.xlu0 %v4514_v24, %s6259_s24  ;;  %1690 = vrot.lane.b32.xlu1 %v4562_v53, %s3335_s19 }
 0x39c   : > { %1818 = vrot.lane.b32.xlu1 %v4562_v53, %s6257_s21  ;;  %1334 = vrot.lane.b32.xlu0 %v4562_v53, %s3331_s15  ;;  %s6568_s21 = smov 127  }
 0x3a0   : > { %1918 = vrot.lane.b32.xlu1 %v4562_v53, %s3356_s20  ;;  %1402 = vrot.lane.b32.xlu0 %v4562_v53, %s3330_s14 }
 0x3a4   : > { %1993 = vrot.lane.b32.xlu1 %v4562_v53, %s3359_s30  ;;  %1530 = vrot.lane.b32.xlu0 %v4562_v53, %s3333_s17 }
 0x3a8   : > { %2062 = vrot.lane.b32.xlu1 %v4562_v53, %s3357_s27  ;;  %1626 = vrot.lane.b32.xlu0 %v4562_v53, %s6568_s21 }
 0x3ac   : > { %2135 = vrot.lane.b32.xlu1 %v4562_v53, %s6562_s18  ;;  %1754 = vrot.lane.b32.xlu0 %v4562_v53, %s6554_s28 }
 0x3b0   : > { %2236 = vrot.lane.b32.xlu1 %v4562_v53, %s3360_s22  ;;  %2378 = vrot.lane.b32.xlu0 %v4562_v53, %s6261_s23 }
 0x3b4   : > { %2305 = vrot.lane.b32.xlu1 %v4562_v53, %s6259_s24  ;;  %2447 = vrot.lane.b32.xlu0 %v4562_v53, %s6278_s29  ;;  %s6575_s24 = smov 111  }
 0x3b8   : > { %1474 = vrot.lane.b32.xlu1 %v4627_v47, %s3332_s16  ;;  %1342 = vrot.lane.b32.xlu0 %v4627_v47, %s3331_s15 }
 0x3bc   : > { %1698 = vrot.lane.b32.xlu1 %v4627_v47, %s3335_s19  ;;  %1410 = vrot.lane.b32.xlu0 %v4627_v47, %s3330_s14 }
 0x3c0   : > { %1826 = vrot.lane.b32.xlu1 %v4627_v47, %s6575_s24  ;;  %1538 = vrot.lane.b32.xlu0 %v4627_v47, %s3333_s17 }
 0x3c4   : > { %1926 = vrot.lane.b32.xlu1 %v4627_v47, %s3356_s20  ;;  %1634 = vrot.lane.b32.xlu0 %v4627_v47, %s6568_s21 }
 0x3c8   : > { %2001 = vrot.lane.b32.xlu1 %v4627_v47, %s3359_s30  ;;  %1762 = vrot.lane.b32.xlu0 %v4627_v47, %s6554_s28 }
 0x3ca   : > { %v4665_v23 = vpop.permute.xlu0 %1464  ;;  %v4667_v8 = vpop.permute.xlu1 %1332 }
 0x3cc   : > { %2070 = vrot.lane.b32.xlu1 %v4627_v47, %s3357_s27  ;;  %2386 = vrot.lane.b32.xlu0 %v4627_v47, %s6261_s23  ;;  %s6583_s23 = smov 98  }
 0x3ce   : > { %v4674_v2 = vpop.permute.xlu0 %1688  ;;  %v4676_v12 = vpop.permute.xlu1 %1400 }
 0x3cf   : > { %6578 = vst [vmem:[#allocation84_spill] sm:$0xff] %v4674_v2 }
 0x3d0   : > { %2143 = vrot.lane.b32.xlu1 %v4627_v47, %s6562_s18  ;;  %2455 = vrot.lane.b32.xlu0 %v4627_v47, %s6278_s29 }
 0x3d2   : > { %v4684_v7 = vpop.permute.xlu0 %1816  ;;  %v4686_v28 = vpop.permute.xlu1 %1528 }
 0x3d3   : > { %6580 = vst [vmem:[#allocation86_spill] sm:$0xff] %v4684_v7  ;;  %6581 = vst [vmem:[#allocation87_spill] sm:$0xff] %v4686_v28 }
 0x3d4   : > { %2244 = vrot.lane.b32.xlu1 %v4627_v47, %s3360_s22  ;;  %1468 = vrot.lane.b32.xlu0 %v4682_v42, %s3332_s16 }
 0x3d6   : > { %v1917_v21 = vpop.permute.xlu0 %1916  ;;  %v4692_v18 = vpop.permute.xlu1 %1624 }
 0x3d7   : > { %6582 = vst [vmem:[#allocation88_spill] sm:$0xff] %v4692_v18  ;;  %v6637_v18 = vld [vmem:[#allocation52_spill] sm:$0xff] }
 0x3d8   : > { %2313 = vrot.lane.b32.xlu1 %v4627_v47, %s6583_s23  ;;  %1692 = vrot.lane.b32.xlu0 %v4682_v42, %s3335_s19 }
 0x3da   : > { %v4698_v10 = vpop.permute.xlu0 %2060  ;;  %v4700_v55 = vpop.permute.xlu1 %1752 }
 0x3db   : > { %6584 = vst [vmem:[#allocation89_spill] sm:$0xff] %v4700_v55  ;;  %v2219_v55 = vmul.f32 %v4532_v5, %v4514_v24  ;;  %v6631_v24 = vld [vmem:[#allocation9_spill] sm:$0xff] }
 0x3dc   : > { %1820 = vrot.lane.b32.xlu0 %v4682_v42, %s6575_s24  ;;  %1336 = vrot.lane.b32.xlu1 %v4682_v42, %s3331_s15 }
 0x3de   : > { %v4706_v58 = vpop.permute.xlu0 %2133  ;;  %v1992_v39 = vpop.permute.xlu1 %1991 }
 0x3e0   : > { %1920 = vrot.lane.b32.xlu0 %v4682_v42, %s3356_s20  ;;  %1404 = vrot.lane.b32.xlu1 %v4682_v42, %s3330_s14 }
 0x3e2   : > { %v4712_v54 = vpop.permute.xlu0 %2234  ;;  %v4714_v22 = vpop.permute.xlu1 %2376 }
 0x3e3   : > { %6585 = vst [vmem:[#allocation90_spill] sm:$0xff] %v4714_v22 }
 0x3e4   : > { %2064 = vrot.lane.b32.xlu0 %v4682_v42, %s3357_s27  ;;  %1532 = vrot.lane.b32.xlu1 %v4682_v42, %s3333_s17 }
 0x3e6   : > { %v4722_v16 = vpop.permute.xlu0 %2303  ;;  %v4724_v20 = vpop.permute.xlu1 %2445 }
 0x3e7   : > { %6586 = vst [vmem:[#allocation91_spill] sm:$0xff] %v4724_v20 }
 0x3e8   : > { %2137 = vrot.lane.b32.xlu0 %v4682_v42, %s6562_s18  ;;  %1628 = vrot.lane.b32.xlu1 %v4682_v42, %s6568_s21 }
 0x3ea   : > { %v4731_v1 = vpop.permute.xlu0 %1472  ;;  %v4733_v52 = vpop.permute.xlu1 %1340 }
 0x3ec   : > { %2449 = vrot.lane.b32.xlu0 %v4682_v42, %s6278_s29  ;;  %1756 = vrot.lane.b32.xlu1 %v4682_v42, %s6554_s28  ;;  %s6602_s29 = smov 96  }
 0x3ee   : > { %v4741_v63 = vpop.permute.xlu0 %1696  ;;  %v4743_v15 = vpop.permute.xlu1 %1408 }
 0x3ef   : > { %6588 = vst [vmem:[#allocation93_spill] sm:$0xff] %v4741_v63 }
 0x3f0   : > { %1995 = vrot.lane.b32.xlu1 %v4682_v42, %s3359_s30  ;;  %1476 = vrot.lane.b32.xlu0 %v4739_v33, %s3332_s16 }
 0x3f2   : > { %v4749_v45 = vpop.permute.xlu0 %1824  ;;  %v4751_v31 = vpop.permute.xlu1 %1536 }
 0x3f3   : > { %6589 = vst [vmem:[#allocation94_spill] sm:$0xff] %v4749_v45  ;;  %6590 = vst [vmem:[#allocation95_spill] sm:$0xff] %v4751_v31  ;;  %v6612_v45 = vld [vmem:[#allocation57_spill] sm:$0xff] }
 0x3f4   : > { %2238 = vrot.lane.b32.xlu1 %v4682_v42, %s3360_s22  ;;  %1700 = vrot.lane.b32.xlu0 %v4739_v33, %s3335_s19 }
 0x3f6   : > { %v1925_v61 = vpop.permute.xlu0 %1924  ;;  %v4757_v35 = vpop.permute.xlu1 %1632 }
 0x3f7   : > { %6591 = vst [vmem:[#allocation96_spill] sm:$0xff] %v4757_v35  ;;  %v1933_v38 = vsel %vm6321_vm10, %v1917_v21, %v1925_v61  ;;  %v1937_v56 = vsel %vm6321_vm10, %v1925_v61, %v1917_v21  ;;  %v6606_v61 = vmov 0  ;;  %vm6648_vm10 = vcmp.lt.s32.totalorder %v3576_v37, 113 }
 0x3f8   : > { %2307 = vrot.lane.b32.xlu1 %v4682_v42, %s6583_s23  ;;  %1828 = vrot.lane.b32.xlu0 %v4739_v33, %s6575_s24  ;;  %v6607_v61 = vsel %vm4820_vm2, 4294967295, %v6606_v61 }
 0x3fa   : > { %v2000_v25 = vpop.permute.xlu0 %1999  ;;  %v4769_v62 = vpop.permute.xlu1 %1760 }
 0x3fb   : > { %6596 = vst [vmem:[#allocation4_spill] sm:$0xff] %v4769_v62  ;;  %v2008_v60 = vsel %vm6322_vm0, %v1992_v39, %v2000_v25  ;;  %v2012_v32 = vsel %vm6322_vm0, %v2000_v25, %v1992_v39  ;;  %v6603_v25 = vmov 0  ;;  %v6605_v39 = vld [vmem:[#allocation47_spill] sm:$0xff]  ;;  %v6627_v62 = vld [vmem:[#allocation6_spill] sm:$0xff] }
 0x3fc   : > { %2380 = vrot.lane.b32.xlu1 %v4682_v42, %s6602_s29  ;;  %1928 = vrot.lane.b32.xlu0 %v4739_v33, %s3356_s20  ;;  %v6604_v25 = vsel %vm4806_vm6, 4294967295, %v6603_v25  ;;  %v1282_v30 = vmul.f32 %v6605_v39, %v4472_v0  ;;  %v2020_v6 = vsel %vm6315_vm5, %v2012_v32, 0.0  ;;  %v2021_v21 = vsel %vm6299_vm12, %v2008_v60, 0.0  ;;  %vm4894_vm12 = vmand %vm6302_vm14, %vm6314_vm9 }
 0x3fd   : > { %v1951_v0 = vsel %vm4776_vm8, %v1937_v56, 0.0  ;;  %v1952_v32 = vsel %vm4785_vm13, %v1933_v38, 0.0  ;;  %v2044_v20 = vmul.f32 %v6609_v44, %v2020_v6  ;;  %v2045_v22 = vmul.f32 %v6609_v44, %v2021_v21 }
 0x3fe   : > { %v2069_v13 = vpop.permute.xlu0 %2068  ;;  %v4824_v42 = vpop.permute.xlu1 %2384  ;;  %v1975_v6 = vmul.f32 %v6612_v45, %v1951_v0  ;;  %v1976_v44 = vmul.f32 %v6612_v45, %v1952_v32  ;;  %vm6636_vm5 = vcmp.ge.s32.totalorder %v6594_v17, 1 }
 0x3ff   : > { %6608 = vst [vmem:[#allocation2_spill] sm:$0xff] %v4824_v42  ;;  %v2077_v60 = vsel %vm6298_vm7, %v4698_v10, %v2069_v13  ;;  %v2081_v59 = vsel %vm6298_vm7, %v2069_v13, %v4698_v10  ;;  %v6610_v42 = vld [vmem:[#allocation50_spill] sm:$0xff]  ;;  %vm6303_vm7 = vcmp.lt.s32.totalorder %v3576_v37, 98 }
 0x400   : > { %1344 = vrot.lane.b32.xlu1 %v4739_v33, %s3331_s15  ;;  %v2093_v56 = vsel %vm4806_vm6, %v2081_v59, 0.0  ;;  %v2094_v38 = vsel %vm4820_vm2, %v2077_v60, 0.0  ;;  %2315 = vrot.lane.b32.xlu0 %v4739_v33, %s6583_s23  ;;  %v1314_v7 = vadd.f32 %v6610_v42, %v1282_v30  ;;  %v2218_v60 = vmul.f32 %v4532_v5, %v4460_v4 }
 0x401   : > { %v2117_v21 = vmul.f32 %v4312_v50, %v2093_v56  ;;  %v2118_v59 = vmul.f32 %v4312_v50, %v2094_v38  ;;  %v2052_v30 = vadd.f32 %v2044_v20, %v1975_v6 }
 0x402   : > { %v2142_v13 = vpop.permute.xlu0 %2141  ;;  %v4848_v10 = vpop.permute.xlu1 %2453  ;;  %v4869_v0 = vmax.f32 %v1314_v7, 0.0 }
 0x403   : > { %6611 = vst [vmem:[#allocation3_spill] sm:$0xff] %v4848_v10  ;;  %v2053_v10 = vadd.f32 %v2045_v22, %v1976_v44  ;;  %v2150_v45 = vsel %vm6297_vm11, %v4706_v58, %v2142_v13  ;;  %v2154_v50 = vsel %vm6297_vm11, %v2142_v13, %v4706_v58  ;;  %v2125_v56 = vadd.f32 %v2117_v21, %v2052_v30 }
 0x404   : > { %1412 = vrot.lane.b32.xlu1 %v4739_v33, %s3330_s14  ;;  %2388 = vrot.lane.b32.xlu0 %v4739_v33, %s6602_s29  ;;  %6613 = vst [vmem:[#allocation47_spill] sm:$0xff] %v4869_v0  ;;  %v2162_v5 = vsel %vm6314_vm9, %v2154_v50, 0.0  ;;  %v2163_v22 = vsel %vm6312_vm15, %v2150_v45, 0.0  ;;  %vm6301_vm11 = vcmp.lt.s32.totalorder %v6594_v17, 14  ;;  %vm6635_vm9 = vcmp.ge.s32.totalorder %v6592_v48, 1 }
 0x405   : > { %v2126_v38 = vadd.f32 %v2118_v59, %v2053_v10  ;;  %v2186_v58 = vmul.f32 %v4516_v51, %v2162_v5  ;;  %v2187_v13 = vmul.f32 %v4516_v51, %v2163_v22  ;;  %v6616_v59 = vmov 0 }
 0x406   : > { %v2243_v20 = vpop.permute.xlu0 %2242  ;;  %v4876_v32 = vpop.permute.xlu1 %1466 }
 0x407   : > { %v2251_v7 = vsel %vm6300_vm1, %v4712_v54, %v2243_v20  ;;  %v2255_v6 = vsel %vm6300_vm1, %v2243_v20, %v4712_v54  ;;  %v2194_v10 = vadd.f32 %v2186_v58, %v2125_v56  ;;  %v2195_v44 = vadd.f32 %v2187_v13, %v2126_v38  ;;  %vm4908_vm1 = vmand %vm6301_vm11, %vm6312_vm15 }
 0x408   : > { %1540 = vrot.lane.b32.xlu1 %v4739_v33, %s3333_s17  ;;  %v2263_v21 = vsel %vm6305_vm4, %v2251_v7, 0.0  ;;  %v2264_v54 = vsel %vm6304_vm3, %v2255_v6, 0.0  ;;  %1338 = vrot.lane.b32.xlu0 %v4869_v0, %s3331_s15  ;;  %v6617_v59 = vsel %vm4908_vm1, 4294967295, %v6616_v59  ;;  %vm6621_vm11 = vcmp.lt.s32.totalorder %v3576_v37, 17 }
 0x409   : > { %v2287_v30 = vmul.f32 %v4553_v14, %v2263_v21  ;;  %v2288_v45 = vmul.f32 %v4553_v14, %v2264_v54  ;;  %v2226_v22 = vadd.f32 %v2218_v60, %v2194_v10  ;;  %v2227_v20 = vadd.f32 %v2219_v55, %v2195_v44  ;;  %vm6622_vm14 = vmmov %vm6621_vm11 }
 0x40a   : > { %v2312_v50 = vpop.permute.xlu0 %2311  ;;  %v4914_v5 = vpop.permute.xlu1 %1690  ;;  %vm6632_vm15 = vnez %v6631_v24 }
 0x40b   : > { %v2320_v56 = vsel %vm6303_vm7, %v4722_v16, %v2312_v50  ;;  %v2324_v38 = vsel %vm6303_vm7, %v2312_v50, %v4722_v16  ;;  %v2295_v14 = vadd.f32 %v2287_v30, %v2226_v22  ;;  %v2296_v60 = vadd.f32 %v2288_v45, %v2227_v20 }
 0x40c   : > { %v2336_v58 = vsel %vm4894_vm12, %v2320_v56, 0.0  ;;  %v2337_v13 = vsel %vm4908_vm1, %v2324_v38, 0.0  ;;  %1636 = vrot.lane.b32.xlu1 %v4739_v33, %s6568_s21  ;;  %1406 = vrot.lane.b32.xlu0 %v4869_v0, %s3330_s14  ;;  %v1283_v45 = vmul.f32 %v6605_v39, %v4474_v3  ;;  %vm6623_vm7 = vcmp.lt.s32.totalorder %v3576_v37, 15 }
 0x40d   : > { %v2360_v55 = vmul.f32 %v4576_v11, %v2336_v58  ;;  %v2361_v7 = vmul.f32 %v4576_v11, %v2337_v13  ;;  %vm6624_vm3 = vmmov %vm6623_vm7 }
 0x40e   : > { %v4932_v6 = vpop.permute.xlu1 %1818  ;;  %v1335_v16 = vpop.permute.xlu0 %1334  ;;  %v1315_v20 = vadd.f32 %v6610_v42, %v1283_v45 }
 0x40f   : > { %v4934_v10 = vadd.f32 %v2360_v55, %v2295_v14  ;;  %v4936_v44 = vadd.f32 %v2361_v7, %v2296_v60 }
 0x410   : > { %1764 = vrot.lane.b32.xlu1 %v4739_v33, %s6554_s28  ;;  %1534 = vrot.lane.b32.xlu0 %v4869_v0, %s3333_s17  ;;  %v4969_v39 = vmax.f32 %v1315_v20, 0.0 }
 0x411   : > { %6618 = vst [vmem:[#allocation55_spill] sm:$0xff] %v4934_v10  ;;  %6619 = vst [vmem:[#allocation50_spill] sm:$0xff] %v4936_v44  ;;  %v6625_v44 = vld [vmem:[#allocation7_spill] sm:$0xff] }
 0x412   : > { %v4942_v21 = vpop.permute.xlu1 %1918  ;;  %v1403_v54 = vpop.permute.xlu0 %1402  ;;  %6620 = vst [vmem:[#allocation57_spill] sm:$0xff] %v4969_v39  ;;  %vm6626_vm4 = vnez %v6625_v44 }
 0x414   : > { %2003 = vrot.lane.b32.xlu1 %v4739_v33, %s3359_s30  ;;  %1630 = vrot.lane.b32.xlu0 %v4869_v0, %s6568_s21 }
 0x416   : > { %v4948_v11 = vpop.permute.xlu1 %1993  ;;  %v1531_v30 = vpop.permute.xlu0 %1530 }
 0x418   : > { %2072 = vrot.lane.b32.xlu1 %v4739_v33, %s3357_s27  ;;  %1758 = vrot.lane.b32.xlu0 %v4869_v0, %s6554_s28 }
 0x41a   : > { %v4956_v50 = vpop.permute.xlu1 %2062  ;;  %v4958_v22 = vpop.permute.xlu0 %1626 }
 0x41c   : > { %2145 = vrot.lane.b32.xlu1 %v4739_v33, %s6562_s18  ;;  %2382 = vrot.lane.b32.xlu0 %v4869_v0, %s6602_s29 }
 0x41e   : > { %v4965_v56 = vpop.permute.xlu1 %2135  ;;  %v4967_v3 = vpop.permute.xlu0 %1754 }
 0x420   : > { %2246 = vrot.lane.b32.xlu1 %v4739_v33, %s3360_s22  ;;  %1346 = vrot.lane.b32.xlu0 %v4969_v39, %s3331_s15  ;;  %s2947_s15 = sshll.u32 %s6952_s26, 6 }
 0x421   : > { %s6083_s26 = scalar_lea.vmem %s6133_s13, %s2947_s15 }
 0x422   : > { %v4975_v38 = vpop.permute.xlu1 %2236  ;;  %v4977_v42 = vpop.permute.xlu0 %2378 }
 0x424   : > { %1470 = vrot.lane.b32.xlu1 %v4869_v0, %s3332_s16  ;;  %1414 = vrot.lane.b32.xlu0 %v4969_v39, %s3330_s14 }
 0x426   : > { %v4983_v58 = vpop.permute.xlu1 %2305  ;;  %v4985_v13 = vpop.permute.xlu0 %2447 }
 0x428   : > { %1694 = vrot.lane.b32.xlu1 %v4869_v0, %s3335_s19  ;;  %1542 = vrot.lane.b32.xlu0 %v4969_v39, %s3333_s17  ;;  %s6676_s17 = smov 94  }
 0x42a   : > { %v1475_v14 = vpop.permute.xlu1 %1474  ;;  %v1343_v60 = vpop.permute.xlu0 %1342 }
 0x42b   : > { %v1349_v55 = vsel %vm6621_vm11, %v1335_v16, %v1343_v60  ;;  %v1353_v7 = vsel %vm6622_vm14, %v1343_v60, %v1335_v16  ;;  %v1481_v45 = vsel %vm6623_vm7, %v4876_v32, %v1475_v14  ;;  %v1485_v20 = vsel %vm6624_vm3, %v1475_v14, %v4876_v32  ;;  %v6633_v14 = vld [vmem:[#allocation8_spill] sm:$0xff] }
 0x42c   : > { %1822 = vrot.lane.b32.xlu1 %v4869_v0, %s6575_s24  ;;  %1638 = vrot.lane.b32.xlu0 %v4969_v39, %s6568_s21  ;;  %v1358_v10 = vsel %vm6626_vm4, %v1353_v7, 0.0  ;;  %vm6628_vm11 = vnez %v6627_v62  ;;  %vm6629_vm14 = vcmp.lt.s32.totalorder %v3576_v37, 16  ;;  %v1490_v32 = vsel %vm6632_vm15, %v1485_v20, 0.0  ;;  %v6638_v20 = vld [vmem:[#allocation35_spill] sm:$0xff] }
 0x42d   : > { %v1359_v16 = vsel %vm6628_vm11, %v1349_v55, 0.0  ;;  %vm6630_vm7 = vmmov %vm6629_vm14  ;;  %vm6634_vm3 = vnez %v6633_v14  ;;  %v1386_v35 = vmul.f32 %v6637_v18, %v1358_v10  ;;  %v1610_v28 = vmul.f32 %v6638_v20, %v4562_v53  ;;  %v6639_v10 = vld [vmem:[#allocation30_spill] sm:$0xff] }
 0x42e   : > { %v1699_v60 = vpop.permute.xlu1 %1698  ;;  %v1411_v33 = vpop.permute.xlu0 %1410  ;;  %v1491_v4 = vsel %vm6634_vm3, %v1481_v45, 0.0  ;;  %v1387_v46 = vmul.f32 %v6637_v18, %v1359_v16  ;;  %v1514_v31 = vmul.f32 %v6639_v10, %v1490_v32 }
 0x42f   : > { %v1417_v2 = vsel %vm6629_vm14, %v1403_v54, %v1411_v33  ;;  %v1421_v63 = vsel %vm6630_vm7, %v1411_v33, %v1403_v54  ;;  %v1515_v18 = vmul.f32 %v6639_v10, %v1491_v4  ;;  %vm6642_vm14 = vcmp.lt.s32.totalorder %v3576_v37, 17 }
 0x430   : > { %v1426_v7 = vsel %vm6635_vm9, %v1421_v63, 0.0  ;;  %v1427_v55 = vsel %vm6636_vm5, %v1417_v2, 0.0  ;;  %1922 = vrot.lane.b32.xlu1 %v4869_v0, %s3356_s20  ;;  %1766 = vrot.lane.b32.xlu0 %v4969_v39, %s6554_s28  ;;  %v5031_v63 = vmul.f32 %v4547_v49, %v4562_v53  ;;  %vm6640_vm5 = vcmp.lt.s32.totalorder %v3576_v37, 1  ;;  %vm6643_vm7 = vmmov %vm6642_vm14 }
 0x431   : > { %v1450_v33 = vmul.f32 %v4643_v26, %v1426_v7  ;;  %v1451_v54 = vmul.f32 %v4643_v26, %v1427_v55  ;;  %v5041_v26 = vmul.f32 %v4547_v49, %v4627_v47  ;;  %vm6641_vm9 = vmmov %vm6640_vm5  ;;  %v1611_v53 = vmul.f32 %v6638_v20, %v4627_v47  ;;  %v6650_v20 = vld [vmem:[#allocation16_spill] sm:$0xff] }
 0x432   : > { %v5033_v45 = vpop.permute.xlu1 %1826  ;;  %v1539_v2 = vpop.permute.xlu0 %1538  ;;  %v5055_v4 = vsel %vm6642_vm14, %v4667_v8, %v4733_v52  ;;  %v5061_v49 = vsel %vm6643_vm7, %v4733_v52, %v4667_v8  ;;  %vm6646_vm14 = vcmp.ge.s32.totalorder %v6593_v34, 1  ;;  %vm6647_vm7 = vcmp.ge.s32.totalorder %v6595_v40, 1 }
 0x433   : > { %v1458_v16 = vadd.f32 %v1450_v33, %v1386_v35  ;;  %v1459_v7 = vadd.f32 %v1451_v54, %v1387_v46  ;;  %v1545_v55 = vsel %vm6640_vm5, %v1531_v30, %v1539_v2  ;;  %v1549_v14 = vsel %vm6641_vm9, %v1539_v2, %v1531_v30  ;;  %v3321_v30 = vld [vmem:[%s6128_s8 + $0x18] sm:$0xff] }
 0x434   : > { %1997 = vrot.lane.b32.xlu1 %v4869_v0, %s3359_s30  ;;  %2529 = vperm.xlu0 %3278, %v3321_v30   ;;  %vm6644_vm5 = vcmp.lt.s32.totalorder %v3576_v37, 15  ;;  %v1554_v52 = vsel %vm6646_vm14, %v1549_v14, 0.0  ;;  %v1555_v8 = vsel %vm6647_vm7, %v1545_v55, 0.0  ;;  %v1705_v54 = vsel %vm6648_vm10, %v4914_v5, %v1699_v60  ;;  %v6655_v30 = vld [vmem:[#allocation11_spill] sm:$0xff] }
 0x435   : > { %v1522_v35 = vadd.f32 %v1514_v31, %v1458_v16  ;;  %v1523_v46 = vadd.f32 %v1515_v18, %v1459_v7  ;;  %v5070_v47 = vsel %vm6644_vm5, %v4665_v23, %v4731_v1  ;;  %vm6645_vm9 = vmmov %vm6644_vm5  ;;  %v1578_v10 = vmul.f32 %v6650_v20, %v1554_v52  ;;  %v6657_v52 = vld [vmem:[#allocation10_spill] sm:$0xff] }
 0x436   : > { %v5076_v32 = vsel %vm6645_vm9, %v4731_v1, %v4665_v23  ;;  %v1927_v31 = vpop.permute.xlu1 %1926  ;;  %v1635_v33 = vpop.permute.xlu0 %1634  ;;  %vm6649_vm5 = vmmov %vm6648_vm10  ;;  %v1579_v1 = vmul.f32 %v6650_v20, %v1555_v8  ;;  %vm6651_vm9 = vcmp.lt.s32.totalorder %v3576_v37, 127  ;;  %vm6653_vm14 = vcmp.lt.s32.totalorder %v3576_v37, 16 }
 0x437   : > { %v1709_v2 = vsel %vm6649_vm5, %v1699_v60, %v4914_v5  ;;  %v1641_v18 = vsel %vm6651_vm9, %v4958_v22, %v1635_v33  ;;  %vm6652_vm10 = vmmov %vm6651_vm9  ;;  %v1416_v60 = vsel %vm6653_vm14, %v4676_v12, %v4743_v15  ;;  %v1586_v7 = vadd.f32 %v1578_v10, %v1522_v35  ;;  %v6661_v35 = vld [vmem:[#allocation19_spill] sm:$0xff] }
 0x438   : > { %v1645_v5 = vsel %vm6652_vm10, %v1635_v33, %v4958_v22  ;;  %2066 = vrot.lane.b32.xlu1 %v4869_v0, %s3357_s27  ;;  %vm6654_vm7 = vmmov %vm6653_vm14  ;;  %v1587_v55 = vadd.f32 %v1579_v1, %v1523_v46  ;;  %2248 = vrot.lane.b32.xlu0 %v4969_v39, %s3360_s22  ;;  %vm6656_vm5 = vnez %v6655_v30  ;;  %vm6658_vm9 = vnez %v6657_v52 }
 0x439   : > { %v1420_v16 = vsel %vm6654_vm7, %v4743_v15, %v4676_v12  ;;  %v1714_v22 = vsel %vm6656_vm5, %v1705_v54, 0.0  ;;  %v1715_v8 = vsel %vm6658_vm9, %v1709_v2, 0.0  ;;  %vm6659_vm10 = vcmp.lt.s32.totalorder %v6593_v34, 15 }
 0x43a   : > { %v1650_v33 = vsel %vm6659_vm10, %v1641_v18, 0.0  ;;  %vm6660_vm14 = vcmp.lt.s32.totalorder %v6595_v40, 15  ;;  %v2002_v14 = vpop.permute.xlu1 %2001  ;;  %v1763_v23 = vpop.permute.xlu0 %1762  ;;  %v1618_v15 = vadd.f32 %v1610_v28, %v1586_v7  ;;  %v1619_v12 = vadd.f32 %v1611_v53, %v1587_v55  ;;  %v6664_v53 = vld [vmem:[#allocation40_spill] sm:$0xff] }
 0x43b   : > { %v1651_v20 = vsel %vm6660_vm14, %v1645_v5, 0.0  ;;  %v1674_v46 = vmul.f32 %v6661_v35, %v1650_v33  ;;  %v2009_v54 = vsel %vm6322_vm0, %v4948_v11, %v2002_v14  ;;  %v2013_v2 = vsel %vm6322_vm0, %v2002_v14, %v4948_v11 }
 0x43c   : > { %v1675_v10 = vmul.f32 %v6661_v35, %v1651_v20  ;;  %vm6662_vm7 = vcmp.lt.s32.totalorder %v3576_v37, 112  ;;  %2139 = vrot.lane.b32.xlu1 %v4869_v0, %s6562_s18  ;;  %v1738_v18 = vmul.f32 %v6664_v53, %v1714_v22  ;;  %v1739_v5 = vmul.f32 %v6664_v53, %v1715_v8  ;;  %2317 = vrot.lane.b32.xlu0 %v4969_v39, %s6583_s23 }
 0x43d   : > { %v1769_v1 = vsel %vm6662_vm7, %v4967_v3, %v1763_v23  ;;  %vm6663_vm10 = vmmov %vm6662_vm7  ;;  %vm6665_vm14 = vcmp.lt.s32.totalorder %v3576_v37, 34  ;;  %v1682_v14 = vadd.f32 %v1674_v46, %v1618_v15  ;;  %vm6667_vm7 = vcmp.ge.s32.totalorder %v6592_v48, 2 }
 0x43e   : > { %v1773_v28 = vsel %vm6663_vm10, %v1763_v23, %v4967_v3  ;;  %v1934_v7 = vsel %vm6665_vm14, %v4942_v21, %v1927_v31  ;;  %vm6666_vm0 = vmmov %vm6665_vm14  ;;  %v1683_v3 = vadd.f32 %v1675_v10, %v1619_v12  ;;  %v2022_v23 = vsel %vm6667_vm7, %v2013_v2, 0.0  ;;  %v2071_v22 = vpop.permute.xlu1 %2070  ;;  %v2387_v8 = vpop.permute.xlu0 %2386 }
 0x43f   : > { %v1938_v11 = vsel %vm6666_vm0, %v1927_v31, %v4942_v21  ;;  %vm6668_vm10 = vcmp.ge.s32.totalorder %v6594_v17, 2  ;;  %vm6669_vm14 = vcmp.lt.s32.totalorder %v3576_v37, 111  ;;  %vm6671_vm7 = vcmp.lt.s32.totalorder %v6592_v48, 15 }
 0x440   : > { %v2023_v55 = vsel %vm6668_vm10, %v2009_v54, 0.0  ;;  %v5157_v21 = vsel %vm6669_vm14, %v4932_v6, %v5033_v45  ;;  %vm6670_vm0 = vmmov %vm6669_vm14  ;;  %v1778_v33 = vsel %vm6671_vm7, %v1769_v1, 0.0  ;;  %vm6672_vm10 = vcmp.lt.s32.totalorder %v6594_v17, 15  ;;  %2240 = vrot.lane.b32.xlu1 %v4869_v0, %s3360_s22  ;;  %2459 = vrot.lane.b32.xlu0 %v4969_v39, %s6676_s17 }
 0x441   : > { %v5163_v31 = vsel %vm6670_vm0, %v5033_v45, %v4932_v6  ;;  %v1779_v20 = vsel %vm6672_vm10, %v1773_v28, 0.0  ;;  %v1953_v15 = vsel %vm4776_vm8, %v1938_v11, 0.0  ;;  %v1954_v12 = vsel %vm4785_vm13, %v1934_v7, 0.0  ;;  %v6675_v45 = vld [vmem:[#allocation58_spill] sm:$0xff]  ;;  %v6677_v28 = vld [vmem:[#allocation24_spill] sm:$0xff] }
 0x442   : > { %vm6673_vm14 = vcmp.lt.s32.totalorder %v3576_v37, 30  ;;  %v2046_v46 = vmul.f32 %v6675_v45, %v2022_v23  ;;  %v2047_v10 = vmul.f32 %v6675_v45, %v2023_v55  ;;  %v1746_v1 = vadd.f32 %v1738_v18, %v1682_v14  ;;  %v2144_v11 = vpop.permute.xlu1 %2143  ;;  %v6678_v23 = vld [vmem:[#allocation53_spill] sm:$0xff] }
 0x443   : > { %v2078_v35 = vsel %vm6673_vm14, %v4956_v50, %v2071_v22  ;;  %vm6674_vm0 = vmmov %vm6673_vm14  ;;  %v1802_v53 = vmul.f32 %v6677_v28, %v1778_v33  ;;  %v1803_v7 = vmul.f32 %v6677_v28, %v1779_v20  ;;  %v1977_v29 = vmul.f32 %v6678_v23, %v1953_v15 }
 0x444   : > { %v2082_v6 = vsel %vm6674_vm0, %v2071_v22, %v4956_v50  ;;  %v2096_v2 = vsel %vm4820_vm2, %v2078_v35, 0.0  ;;  %v1747_v50 = vadd.f32 %v1739_v5, %v1683_v3  ;;  %v2456_v22 = vpop.permute.xlu0 %2455  ;;  %v1978_v55 = vmul.f32 %v6678_v23, %v1954_v12  ;;  %v6681_v5 = vld [vmem:[#allocation13_spill] sm:$0xff]  ;;  %v6683_v3 = vld [vmem:[#allocation12_spill] sm:$0xff]  ;;  %2309 = vrot.lane.b32.xlu1 %v4869_v0, %s6583_s23 }
 0x445   : > { %v2095_v54 = vsel %vm4806_vm6, %v2082_v6, 0.0  ;;  %v2120_v45 = vmul.f32 %v4490_v19, %v2096_v2  ;;  %vm6679_vm10 = vcmp.ge.s32.totalorder %v6592_v48, 1  ;;  %vm6680_vm14 = vcmp.ge.s32.totalorder %v6594_v17, 1 }
 0x446   : > { %v2119_v6 = vmul.f32 %v4490_v19, %v2095_v54  ;;  %v1424_v35 = vsel %vm6679_vm10, %v1420_v16, 0.0  ;;  %v1425_v18 = vsel %vm6680_vm14, %v1416_v60, 0.0  ;;  %vm6682_vm0 = vnez %v6681_v5  ;;  %v2245_v54 = vpop.permute.xlu1 %2244 }
 0x447   : > { %v1842_v14 = vsel %vm6682_vm0, %v5157_v21, 0.0  ;;  %vm6684_vm7 = vnez %v6683_v3  ;;  %v2054_v20 = vadd.f32 %v2046_v46, %v1977_v29  ;;  %v2055_v15 = vadd.f32 %v2047_v10, %v1978_v55 }
 0x448   : > { %v1843_v33 = vsel %vm6684_vm7, %v5163_v31, 0.0  ;;  %vm6685_vm9 = vcmp.lt.s32.totalorder %v3576_v37, 2  ;;  %v1810_v16 = vadd.f32 %v1802_v53, %v1746_v1  ;;  %v1811_v12 = vadd.f32 %v1803_v7, %v1747_v50  ;;  %v5218_v2 = vpop.permute.xlu0 %1468  ;;  %1478 = vrot.lane.b32.xlu1 %v4969_v39, %s3332_s16 }
 0x449   : > { %v2151_v19 = vsel %vm6685_vm9, %v4965_v56, %v2144_v11  ;;  %vm6686_vm10 = vmmov %vm6685_vm9  ;;  %vm6687_vm14 = vcmp.ge.s32.totalorder %v6593_v34, 2  ;;  %vm6688_vm2 = vcmp.ge.s32.totalorder %v6595_v40, 2  ;;  %v2127_v29 = vadd.f32 %v2119_v6, %v2054_v20 }
 0x44a   : > { %v2155_v60 = vsel %vm6686_vm10, %v2144_v11, %v4965_v56  ;;  %v2165_v31 = vsel %vm6688_vm2, %v2151_v19, 0.0  ;;  %v2128_v46 = vadd.f32 %v2120_v45, %v2055_v15  ;;  %vm6689_vm9 = vcmp.lt.s32.totalorder %v3576_v37, 96  ;;  %v2314_v6 = vpop.permute.xlu1 %2313 }
 0x44b   : > { %v2164_v21 = vsel %vm6687_vm14, %v2155_v60, 0.0  ;;  %v2189_v28 = vmul.f32 %v4338_v9, %v2165_v31  ;;  %v2394_v56 = vsel %vm6689_vm9, %v4977_v42, %v2387_v8  ;;  %vm6690_vm10 = vmmov %vm6689_vm9  ;;  %vm6691_vm2 = vcmp.lt.s32.totalorder %v3576_v37, 126 }
 0x44c   : > { %v2188_v10 = vmul.f32 %v4338_v9, %v2164_v21  ;;  %v2398_v1 = vsel %vm6690_vm10, %v2387_v8, %v4977_v42  ;;  %v2252_v50 = vsel %vm6691_vm2, %v4975_v38, %v2245_v54  ;;  %vm6692_vm14 = vmmov %vm6691_vm2  ;;  %vm6693_vm6 = vcmp.lt.s32.totalorder %v6593_v34, 14  ;;  %v5248_v45 = vpop.permute.xlu0 %1692  ;;  %1702 = vrot.lane.b32.xlu1 %v4969_v39, %s3335_s19 }
 0x44d   : > { %v2256_v53 = vsel %vm6692_vm14, %v2245_v54, %v4975_v38  ;;  %v2197_v7 = vadd.f32 %v2189_v28, %v2128_v46  ;;  %v2265_v11 = vsel %vm6693_vm6, %v2252_v50, 0.0  ;;  %vm6694_vm9 = vcmp.lt.s32.totalorder %v6595_v40, 14  ;;  %v6711_v46 = vld [vmem:[#allocation45_spill] sm:$0xff] }
 0x44e   : > { %v2196_v9 = vadd.f32 %v2188_v10, %v2127_v29  ;;  %v2266_v23 = vsel %vm6694_vm9, %v2256_v53, 0.0  ;;  %vm6695_vm10 = vcmp.lt.s32.totalorder %v3576_v37, 94  ;;  %v2289_v38 = vmul.f32 %v4570_v41, %v2265_v11  ;;  %v5294_v53 = vpop.permute.xlu1 %1336 }
 0x44f   : > { %v2463_v42 = vsel %vm6695_vm10, %v4985_v13, %v2456_v22  ;;  %vm6696_vm2 = vmmov %vm6695_vm10  ;;  %v2290_v55 = vmul.f32 %v4570_v41, %v2266_v23  ;;  %v2229_v15 = vadd.f32 %v5041_v26, %v2197_v7  ;;  %vm6697_vm6 = vcmp.lt.s32.totalorder %v3576_v37, 98  ;;  %v6712_v23 = vld [vmem:[#allocation25_spill] sm:$0xff] }
 0x450   : > { %v2467_v8 = vsel %vm6696_vm2, %v2456_v22, %v4985_v13  ;;  %v2228_v20 = vadd.f32 %v5031_v63, %v2196_v9  ;;  %v2321_v19 = vsel %vm6697_vm6, %v4983_v58, %v2314_v6  ;;  %vm6698_vm14 = vmmov %vm6697_vm6  ;;  %vm6699_vm9 = vcmp.lt.s32.totalorder %v6593_v34, 14  ;;  %v5292_v50 = vpop.permute.xlu0 %1820  ;;  %1830 = vrot.lane.b32.xlu1 %v4969_v39, %s6575_s24 }
 0x451   : > { %v2325_v60 = vsel %vm6698_vm14, %v2314_v6, %v4983_v58  ;;  %vm6700_vm10 = vcmp.lt.s32.totalorder %v6592_v48, 14  ;;  %v6701_v41 = vmov 0  ;;  %vm6705_vm8 = vcmp.lt.s32.totalorder %v6594_v17, 14 }
 0x452   : > { %vm5262_vm2 = vmand %vm6700_vm10, %vm6699_vm9  ;;  %v2408_v63 = vsel %vm6705_vm8, %v2398_v1, 0.0  ;;  %v2338_v26 = vsel %vm4894_vm12, %v2321_v19, 0.0  ;;  %v2339_v58 = vsel %vm4908_vm1, %v2325_v60, 0.0  ;;  %vm6706_vm6 = vcmp.lt.s32.totalorder %v6595_v40, 14  ;;  %v6715_v19 = vld [vmem:[#allocation21_spill] sm:$0xff] }
 0x453   : > { %v6702_v41 = vsel %vm5262_vm2, 4294967295, %v6701_v41  ;;  %vm6704_vm13 = vmmov %vm6700_vm10  ;;  %v6708_v22 = vmov 0  ;;  %v2297_v21 = vadd.f32 %v2289_v38, %v2228_v20  ;;  %v2298_v31 = vadd.f32 %v2290_v55, %v2229_v15 }
 0x454   : > { %6703 = vst [vmem:[#allocation7_spill] sm:$0xff] %v6702_v41  ;;  %v2407_v13 = vsel %vm6704_vm13, %v2394_v56, 0.0  ;;  %vm6707_vm14 = vmmov %vm6705_vm8  ;;  %v2362_v54 = vmul.f32 %v4590_v57, %v2338_v26  ;;  %v2363_v29 = vmul.f32 %v4590_v57, %v2339_v58  ;;  %v1866_v10 = vmul.f32 %v6711_v46, %v1842_v14  ;;  %v6717_v26 = vld [vmem:[#allocation95_spill] sm:$0xff]  ;;  %1930 = vrot.lane.b32.xlu1 %v4969_v39, %s3356_s20 }
 0x455   : > { %vm5280_vm9 = vmand %vm6707_vm14, %vm6706_vm6  ;;  %v1867_v28 = vmul.f32 %v6711_v46, %v1843_v33  ;;  %v2478_v56 = vsel %vm5262_vm2, %v2463_v42, 0.0  ;;  %v2431_v9 = vmul.f32 %v4621_v27, %v2407_v13  ;;  %v2432_v7 = vmul.f32 %v4621_v27, %v2408_v63  ;;  %v6724_v46 = vld [vmem:[#allocation81_spill] sm:$0xff]  ;;  %v6790_v41 = vld [vmem:[#allocation27_spill] sm:$0xff] }
 0x456   : > { %v6709_v22 = vsel %vm5280_vm9, 4294967295, %v6708_v22  ;;  %v2479_v1 = vsel %vm5280_vm9, %v2467_v8, 0.0  ;;  %v2370_v11 = vadd.f32 %v2362_v54, %v2297_v21  ;;  %v2371_v57 = vadd.f32 %v2363_v29, %v2298_v31  ;;  %v6721_v21 = vld [vmem:[#allocation56_spill] sm:$0xff] }
 0x457   : > { %6710 = vst [vmem:[#allocation6_spill] sm:$0xff] %v6709_v22  ;;  %v1448_v14 = vmul.f32 %v6712_v23, %v1424_v35  ;;  %v1449_v33 = vmul.f32 %v6712_v23, %v1425_v18  ;;  %v1874_v38 = vadd.f32 %v1866_v10, %v1810_v16  ;;  %v1875_v55 = vadd.f32 %v1867_v28, %v1811_v12  ;;  %v5310_v18 = vpop.permute.xlu0 %1920  ;;  %v5312_v16 = vpop.permute.xlu1 %1404 }
 0x458   : > { %v2502_v42 = vmul.f32 %v4610_v43, %v2478_v56  ;;  %v2503_v8 = vmul.f32 %v4610_v43, %v2479_v1  ;;  %v2439_v6 = vadd.f32 %v2431_v9, %v2370_v11  ;;  %v2440_v20 = vadd.f32 %v2432_v7, %v2371_v57  ;;  %v6727_v56 = vld [vmem:[#allocation14_spill] sm:$0xff]  ;;  %2005 = vrot.lane.b32.xlu1 %v4969_v39, %s3359_s30 }
 0x459   : > { %v1488_v27 = vsel %vm6632_vm15, %v5076_v32, 0.0  ;;  %v1489_v35 = vsel %vm6634_vm3, %v5070_v47, 0.0  ;;  %v6714_v12 = vsel %vm6626_vm4, %v5061_v49, 0.0  ;;  %v6716_v60 = vsel %vm6628_vm11, %v5055_v4, 0.0  ;;  %v6718_v47 = vld [vmem:[#allocation87_spill] sm:$0xff] }
 0x45a   : > { %v1384_v43 = vmul.f32 %v6715_v19, %v6714_v12  ;;  %v1385_v32 = vmul.f32 %v6715_v19, %v6716_v60  ;;  %v2510_v13 = vadd.f32 %v2502_v42, %v2439_v6  ;;  %v2511_v63 = vadd.f32 %v2503_v8, %v2440_v20  ;;  %v6730_v6 = vld [vmem:[#allocation32_spill] sm:$0xff] }
 0x45b   : > { %vm6719_vm8 = vcmp.lt.s32.totalorder %v3576_v37, 1  ;;  %v5335_v31 = vadd.f32 %v6721_v21, %v1874_v38  ;;  %v5338_v4 = vadd.f32 %v6721_v21, %v1875_v55  ;;  %v1512_v1 = vmul.f32 %v6727_v56, %v1488_v27  ;;  %v5348_v7 = vpop.permute.xlu0 %2064  ;;  %v5350_v11 = vpop.permute.xlu1 %1532  ;;  %v6731_v60 = vld [vmem:[#allocation96_spill] sm:$0xff]  ;;  %v6913_v51 = vld [vmem:[#allocation7_spill] sm:$0xff] }
 0x45c   : > { %v1544_v58 = vsel %vm6719_vm8, %v6718_v47, %v6717_v26  ;;  %vm6720_vm13 = vmmov %vm6719_vm8  ;;  %v1456_v54 = vadd.f32 %v1448_v14, %v1384_v43  ;;  %v1457_v29 = vadd.f32 %v1449_v33, %v1385_v32  ;;  %v5341_v10 = vadd.f32 %v6724_v46, %v2510_v13  ;;  %v6732_v32 = vld [vmem:[#allocation88_spill] sm:$0xff]  ;;  %2074 = vrot.lane.b32.xlu1 %v4969_v39, %s3357_s27 }
 0x45d   : > { %v1548_v49 = vsel %vm6720_vm13, %v6717_v26, %v6718_v47  ;;  %6722 = vst [vmem:[#allocation52_spill] sm:$0xff] %v5335_v31  ;;  %6723 = vst [vmem:[#allocation35_spill] sm:$0xff] %v5338_v4  ;;  %v5344_v28 = vadd.f32 %v6724_v46, %v2511_v63  ;;  %v1513_v9 = vmul.f32 %v6727_v56, %v1489_v35  ;;  %vm6728_vm10 = vcmp.ge.s32.totalorder %v6593_v34, 1  ;;  %v6738_v46 = vld [vmem:[#allocation61_spill] sm:$0xff] }
 0x45e   : > { %6725 = vst [vmem:[#allocation30_spill] sm:$0xff] %v5341_v10  ;;  %v1552_v57 = vsel %vm6728_vm10, %v1548_v49, 0.0  ;;  %vm6729_vm6 = vcmp.ge.s32.totalorder %v6595_v40, 1  ;;  %v6334_v14 = vmax.f32 %v5341_v10, 0.0  ;;  %v6336_v38 = vmax.f32 %v5335_v31, 0.0  ;;  %v6739_v56 = vld [vmem:[#allocation17_spill] sm:$0xff] }
 0x45f   : > { %6726 = vst [vmem:[#allocation16_spill] sm:$0xff] %v5344_v28  ;;  %v1553_v23 = vsel %vm6729_vm6, %v1544_v58, 0.0  ;;  %v6333_v33 = vmax.f32 %v5344_v28, 0.0  ;;  %v6335_v55 = vmax.f32 %v5338_v4, 0.0  ;;  %v1520_v42 = vadd.f32 %v1512_v1, %v1456_v54  ;;  %v5364_v35 = vpop.permute.xlu0 %2137  ;;  %v5366_v12 = vpop.permute.xlu1 %1628  ;;  %v6781_v10 = vld [vmem:[#allocation36_spill] sm:$0xff] }
 0x460   : > { %v1521_v8 = vadd.f32 %v1513_v9, %v1457_v29  ;;  %v1576_v20 = vmul.f32 %v6730_v6, %v1552_v57  ;;  %v1577_v27 = vmul.f32 %v6730_v6, %v1553_v23  ;;  %v2550_v19 = vadd.f32 %v6334_v14, %v6336_v38  ;;  %v6740_v9 = vld [vmem:[#allocation66_spill] sm:$0xff]  ;;  %2147 = vrot.lane.b32.xlu1 %v4969_v39, %s6562_s18  ;;  %v6741_v23 = vld [vmem:[#allocation93_spill] sm:$0xff] }
 0x461   : > { %v2551_v43 = vadd.f32 %v6333_v33, %v6335_v55  ;;  %vm6733_vm14 = vcmp.lt.s32.totalorder %v3576_v37, 127  ;;  %vm6736_vm13 = vcmp.lt.s32.totalorder %v6593_v34, 15  ;;  %vm6737_vm10 = vcmp.lt.s32.totalorder %v6595_v40, 15  ;;  %v6771_v38 = vld [vmem:[#allocation26_spill] sm:$0xff] }
 0x462   : > { %v1640_v13 = vsel %vm6733_vm14, %v6732_v32, %v6731_v60  ;;  %vm6734_vm8 = vmmov %vm6733_vm14  ;;  %v1584_v26 = vadd.f32 %v1576_v20, %v1520_v42  ;;  %v1585_v47 = vadd.f32 %v1577_v27, %v1521_v8  ;;  %v1608_v1 = vmul.f32 %v6739_v56, %v6738_v46  ;;  %v6742_v42 = vld [vmem:[#allocation84_spill] sm:$0xff] }
 0x463   : > { %v1644_v63 = vsel %vm6734_vm8, %v6731_v60, %v6732_v32  ;;  %v5386_v58 = vpop.permute.xlu0 %2449  ;;  %v5388_v49 = vpop.permute.xlu1 %1756  ;;  %v2559_v21 = vadd.f32 %v2551_v43, %v2550_v19  ;;  %v1648_v54 = vsel %vm6736_vm13, %v1640_v13, 0.0  ;;  %v1609_v57 = vmul.f32 %v6739_v56, %v6740_v9  ;;  %v6745_v19 = vld [vmem:[#allocation37_spill] sm:$0xff]  ;;  %v6748_v56 = vld [vmem:[#allocation4_spill] sm:$0xff] }
 0x464   : > { %6735 = vst [vmem:[#allocation11_spill] sm:$0xff] %v5386_v58  ;;  %v1649_v29 = vsel %vm6737_vm10, %v1644_v63, 0.0  ;;  %vm6743_vm6 = vcmp.lt.s32.totalorder %v3576_v37, 113  ;;  %v1616_v20 = vadd.f32 %v1608_v1, %v1584_v26  ;;  %v1672_v43 = vmul.f32 %v6745_v19, %v1648_v54  ;;  %v6746_v63 = vld [vmem:[#allocation92_spill] sm:$0xff]  ;;  %v6749_v9 = vld [vmem:[#allocation89_spill] sm:$0xff] }
 0x465   : > { %2560 = vadd.xlane.f32.xlu0 %v2559_v21  ;;  %v1704_v8 = vsel %vm6743_vm6, %v6742_v42, %v6741_v23  ;;  %vm6744_vm14 = vmmov %vm6743_vm6  ;;  %v1617_v27 = vadd.f32 %v1609_v57, %v1585_v47  ;;  %v1673_v60 = vmul.f32 %v6745_v19, %v1649_v29  ;;  %2457 = vrot.lane.b32.xlu1 %v6746_v63, %s6676_s17  ;;  %vm6750_vm13 = vcmp.lt.s32.totalorder %v3576_v37, 112 }
 0x466   : > { %v1708_v6 = vsel %vm6744_vm14, %v6741_v23, %v6742_v42  ;;  %v1712_v21 = vsel %vm6656_vm5, %v1704_v8, 0.0  ;;  %vm6747_vm8 = vnez %v6657_v52  ;;  %v1768_v26 = vsel %vm6750_vm13, %v6749_v9, %v6748_v56  ;;  %vm6751_vm10 = vmmov %vm6750_vm13  ;;  %v6753_v8 = vld [vmem:[#allocation20_spill] sm:$0xff] }
 0x467   : > { %v5410_v32 = vpop.permute.xlu1 %1995  ;;  %v1477_v13 = vpop.permute.xlu0 %1476  ;;  %v1713_v46 = vsel %vm6747_vm8, %v1708_v6, 0.0  ;;  %v1772_v47 = vsel %vm6751_vm10, %v6748_v56, %v6749_v9  ;;  %v1680_v54 = vadd.f32 %v1672_v43, %v1616_v20  ;;  %v1681_v29 = vadd.f32 %v1673_v60, %v1617_v27  ;;  %vm6752_vm14 = vmmov %vm6743_vm6  ;;  %v6756_v43 = vld [vmem:[#allocation94_spill] sm:$0xff] }
 0x468   : > { %v1736_v6 = vmul.f32 %v6753_v8, %v1712_v21  ;;  %v1737_v19 = vmul.f32 %v6753_v8, %v1713_v46  ;;  %vm6754_vm13 = vcmp.lt.s32.totalorder %v6592_v48, 15  ;;  %vm6755_vm10 = vcmp.lt.s32.totalorder %v6594_v17, 15  ;;  %v6757_v60 = vld [vmem:[#allocation86_spill] sm:$0xff] }
 0x469   : > { %v1776_v20 = vsel %vm6754_vm13, %v1768_v26, 0.0  ;;  %v1777_v27 = vsel %vm6755_vm10, %v1772_v47, 0.0  ;;  %2390 = vrot.lane.b32.xlu1 %v4969_v39, %s6602_s29 }
 0x46a   : > { %v1744_v21 = vadd.f32 %v1736_v6, %v1680_v54  ;;  %v1745_v46 = vadd.f32 %v1737_v19, %v1681_v29  ;;  %v6763_v6 = vld [vmem:[#allocation2_spill] sm:$0xff] }
 0x46b   : > { %v5426_v1 = vpop.permute.xlu1 %2238  ;;  %v1701_v57 = vpop.permute.xlu0 %1700  ;;  %v6764_v19 = vld [vmem:[#allocation90_spill] sm:$0xff] }
 0x46c   : > { %v5431_v23 = vsel %vm6743_vm6, %v5248_v45, %v1701_v57  ;;  %v5436_v42 = vsel %vm6752_vm14, %v1701_v57, %v5248_v45  ;;  %vm6758_vm6 = vcmp.lt.s32.totalorder %v3576_v37, 111  ;;  %v6760_v57 = vld [vmem:[#allocation42_spill] sm:$0xff] }
 0x46d   : > { %v1832_v56 = vsel %vm6758_vm6, %v6757_v60, %v6756_v43  ;;  %vm6759_vm14 = vmmov %vm6758_vm6  ;;  %v1800_v47 = vmul.f32 %v6760_v57, %v1776_v20  ;;  %v1801_v8 = vmul.f32 %v6760_v57, %v1777_v27  ;;  %2451 = vrot.lane.b32.xlu1 %v4869_v0, %s6676_s17  ;;  %v6768_v57 = vld [vmem:[#allocation91_spill] sm:$0xff] }
 0x46e   : > { %v1836_v45 = vsel %vm6759_vm14, %v6756_v43, %v6757_v60  ;;  %vm6761_vm13 = vmmov %vm6758_vm6  ;;  %v1840_v54 = vsel %vm6682_vm0, %v1832_v56, 0.0 }
 0x46f   : > { %v5454_v9 = vpop.permute.xlu1 %2307  ;;  %v1829_v26 = vpop.permute.xlu0 %1828  ;;  %vm6762_vm10 = vmmov %vm6758_vm6  ;;  %v1841_v29 = vsel %vm6684_vm7, %v1836_v45, 0.0  ;;  %vm6765_vm6 = vcmp.lt.s32.totalorder %v3576_v37, 96  ;;  %v1808_v43 = vadd.f32 %v1800_v47, %v1744_v21  ;;  %v1809_v60 = vadd.f32 %v1801_v8, %v1745_v46 }
 0x470   : > { %v5461_v33 = vsel %vm6761_vm13, %v5292_v50, %v1829_v26  ;;  %v5466_v14 = vsel %vm6762_vm10, %v1829_v26, %v5292_v50  ;;  %v2393_v20 = vsel %vm6765_vm6, %v6764_v19, %v6763_v6  ;;  %vm6766_vm14 = vmmov %vm6765_vm6  ;;  %v6767_v26 = vld [vmem:[#allocation3_spill] sm:$0xff]  ;;  %vm6769_vm13 = vcmp.lt.s32.totalorder %v3576_v37, 94 }
 0x471   : > { %v2397_v50 = vsel %vm6766_vm14, %v6763_v6, %v6764_v19  ;;  %v2462_v56 = vsel %vm6769_vm13, %v6768_v57, %v6767_v26  ;;  %vm6770_vm10 = vmmov %vm6769_vm13  ;;  %v1864_v28 = vmul.f32 %v6771_v38, %v1840_v54  ;;  %v1865_v6 = vmul.f32 %v6771_v38, %v1841_v29  ;;  %v6776_v29 = vld [vmem:[#allocation74_spill] sm:$0xff] }
 0x472   : > { %v2466_v45 = vsel %vm6770_vm10, %v6767_v26, %v6768_v57  ;;  %vm6772_vm6 = vcmp.lt.s32.totalorder %v6592_v48, 14  ;;  %vm6773_vm14 = vcmp.lt.s32.totalorder %v6594_v17, 14  ;;  %v2476_v47 = vsel %vm5262_vm2, %v2462_v56, 0.0 }
 0x473   : > { %v5482_v27 = vpop.permute.xlu1 %2380  ;;  %v5492_v55 = vpop.permute.xlu0 %1928  ;;  %v2405_v21 = vsel %vm6772_vm6, %v2393_v20, 0.0  ;;  %v2406_v46 = vsel %vm6773_vm14, %v2397_v50, 0.0  ;;  %v2477_v8 = vsel %vm5280_vm9, %v2466_v45, 0.0  ;;  %v1872_v26 = vadd.f32 %v1864_v28, %v1808_v43  ;;  %v6779_v43 = vld [vmem:[#allocation77_spill] sm:$0xff] }
 0x474   : > { %v1873_v57 = vadd.f32 %v1865_v6, %v1809_v60  ;;  %vm6774_vm13 = vcmp.lt.s32.totalorder %v3576_v37, 17  ;;  %v2429_v20 = vmul.f32 %v6776_v29, %v2405_v21  ;;  %v2430_v50 = vmul.f32 %v6776_v29, %v2406_v46  ;;  %v6780_v6 = vld [vmem:[#allocation85_spill] sm:$0xff]  ;;  %v6782_v21 = vld [vmem:[#allocation55_spill] sm:$0xff] }
 0x475   : > { %vm6775_vm10 = vmmov %vm6774_vm13  ;;  %vm6777_vm6 = vcmp.lt.s32.totalorder %v3576_v37, 15  ;;  %v2500_v60 = vmul.f32 %v6779_v43, %v2476_v47  ;;  %v2501_v45 = vmul.f32 %v6779_v43, %v2477_v8  ;;  %v1612_v4 = vmul.f32 %v6781_v10, %v6780_v6 }
 0x476   : > { %v1482_v56 = vsel %vm6777_vm6, %v5218_v2, %v1477_v13  ;;  %vm6778_vm14 = vmmov %vm6777_vm6  ;;  %v2437_v46 = vadd.f32 %v2429_v20, %v6782_v21  ;;  %vm6786_vm6 = vcmp.ge.s32.totalorder %v6592_v48, 1  ;;  %vm6802_vm9 = vcmp.lt.s32.totalorder %v6593_v34, 15 }
 0x477   : > { %v1345_v19 = vpop.permute.xlu1 %1344  ;;  %v1486_v28 = vsel %vm6778_vm14, %v1477_v13, %v5218_v2  ;;  %v5526_v31 = vpop.permute.xlu0 %2315  ;;  %v1493_v8 = vsel %vm6634_vm3, %v1482_v56, 0.0  ;;  %vm6787_vm14 = vcmp.ge.s32.totalorder %v6594_v17, 1  ;;  %v6789_v56 = vld [vmem:[#allocation23_spill] sm:$0xff]  ;;  %vm6803_vm2 = vcmp.lt.s32.totalorder %v6595_v40, 15 }
 0x478   : > { %v1350_v54 = vsel %vm6774_vm13, %v5294_v53, %v1345_v19  ;;  %v1354_v38 = vsel %vm6775_vm10, %v1345_v19, %v5294_v53  ;;  %v1613_v53 = vmul.f32 %v6781_v10, %v6746_v63  ;;  %v6783_v19 = vld [vmem:[#allocation50_spill] sm:$0xff]  ;;  %v1492_v47 = vsel %vm6632_vm15, %v1486_v28, 0.0 }
 0x479   : > { %v2438_v29 = vadd.f32 %v2430_v50, %v6783_v19  ;;  %v1360_v22 = vsel %vm6626_vm4, %v1354_v38, 0.0  ;;  %v1361_v2 = vsel %vm6628_vm11, %v1350_v54, 0.0  ;;  %vm6784_vm13 = vcmp.lt.s32.totalorder %v3576_v37, 16  ;;  %v6788_v50 = vld [vmem:[#allocation48_spill] sm:$0xff] }
 0x47a   : > { %vm6785_vm10 = vmmov %vm6784_vm13  ;;  %v5547_v43 = vadd.f32 %v6788_v50, %v1872_v26  ;;  %v5550_v28 = vadd.f32 %v6788_v50, %v1873_v57  ;;  %v1388_v21 = vmul.f32 %v6789_v56, %v1360_v22  ;;  %v1389_v19 = vmul.f32 %v6789_v56, %v1361_v2  ;;  %v6797_v50 = vld [vmem:[#allocation82_spill] sm:$0xff] }
 0x47b   : > { %v1413_v13 = vpop.permute.xlu1 %1412  ;;  %v2509_v39 = vadd.f32 %v2501_v45, %v2438_v29  ;;  %v5564_v2 = vpop.permute.xlu0 %2388 }
 0x47c   : > { %v1418_v10 = vsel %vm6784_vm13, %v5312_v16, %v1413_v13  ;;  %v1422_v20 = vsel %vm6785_vm10, %v1413_v13, %v5312_v16  ;;  %v2508_v13 = vadd.f32 %v2500_v60, %v2437_v46  ;;  %vm6792_vm13 = vcmp.lt.s32.totalorder %v3576_v37, 1 }
 0x47d   : > { %v1428_v38 = vsel %vm6786_vm6, %v1422_v20, 0.0  ;;  %v1429_v54 = vsel %vm6787_vm14, %v1418_v10, 0.0  ;;  %v6791_v20 = vld [vmem:[#allocation31_spill] sm:$0xff]  ;;  %vm6793_vm10 = vmmov %vm6792_vm13  ;;  %vm6794_vm6 = vcmp.ge.s32.totalorder %v6593_v34, 1  ;;  %vm6795_vm14 = vcmp.ge.s32.totalorder %v6595_v40, 1 }
 0x47e   : > { %v1452_v58 = vmul.f32 %v6790_v41, %v1428_v38  ;;  %v1453_v16 = vmul.f32 %v6790_v41, %v1429_v54  ;;  %v1516_v0 = vmul.f32 %v6791_v20, %v1492_v47  ;;  %v1517_v10 = vmul.f32 %v6791_v20, %v1493_v8  ;;  %v6796_v47 = vld [vmem:[#allocation33_spill] sm:$0xff] }
 0x47f   : > { %v1541_v15 = vpop.permute.xlu1 %1540  ;;  %v1908_v45 = vmax.f32 %v5547_v43, 0.0  ;;  %v5581_v56 = vadd.f32 %v6797_v50, %v2508_v13 }
 0x480   : > { %v1460_v26 = vadd.f32 %v1452_v58, %v1388_v21  ;;  %v1461_v24 = vadd.f32 %v1453_v16, %v1389_v19  ;;  %v1546_v57 = vsel %vm6792_vm13, %v5350_v11, %v1541_v15  ;;  %v1550_v22 = vsel %vm6793_vm10, %v1541_v15, %v5350_v11 }
 0x481   : > { %v1556_v41 = vsel %vm6794_vm6, %v1550_v22, 0.0  ;;  %v1557_v60 = vsel %vm6795_vm14, %v1546_v57, 0.0  ;;  %v1909_v58 = vmax.f32 %v5550_v28, 0.0  ;;  %v1716_v15 = vsel %vm6656_vm5, %v5431_v23, 0.0  ;;  %v6805_v22 = vld [vmem:[#allocation41_spill] sm:$0xff] }
 0x482   : > { %v1524_v46 = vadd.f32 %v1516_v0, %v1460_v26  ;;  %v1525_v29 = vadd.f32 %v1517_v10, %v1461_v24  ;;  %v1580_v8 = vmul.f32 %v6796_v47, %v1556_v41  ;;  %v1581_v38 = vmul.f32 %v6796_v47, %v1557_v60  ;;  %v6804_v26 = vld [vmem:[#allocation38_spill] sm:$0xff] }
 0x483   : > { %v1717_v11 = vsel %vm6747_vm8, %v5436_v42, 0.0  ;;  %v1637_v54 = vpop.permute.xlu1 %1636  ;;  %v5584_v21 = vadd.f32 %v6797_v50, %v2509_v39  ;;  %vm6798_vm13 = vcmp.lt.s32.totalorder %v3576_v37, 127  ;;  %vm6800_vm6 = vcmp.lt.s32.totalorder %v3576_v37, 34 }
 0x484   : > { %v1588_v24 = vadd.f32 %v1580_v8, %v1524_v46  ;;  %v1589_v0 = vadd.f32 %v1581_v38, %v1525_v29  ;;  %v1642_v19 = vsel %vm6798_vm13, %v5366_v12, %v1637_v54  ;;  %vm6799_vm10 = vmmov %vm6798_vm13  ;;  %v1935_v42 = vsel %vm6800_vm6, %v5310_v18, %v5492_v55  ;;  %v5614_v46 = vpop.permute.xlu0 %1338  ;;  %v6809_v38 = vld [vmem:[#allocation5_spill] sm:$0xff] }
 0x485   : > { %v1646_v23 = vsel %vm6799_vm10, %v1637_v54, %v5366_v12  ;;  %vm6801_vm14 = vmmov %vm6800_vm6  ;;  %v1652_v16 = vsel %vm6802_vm9, %v1642_v19, 0.0  ;;  %v1740_v41 = vmul.f32 %v6805_v22, %v1716_v15  ;;  %v1741_v60 = vmul.f32 %v6805_v22, %v1717_v11 }
 0x486   : > { %v1939_v39 = vsel %vm6801_vm14, %v5492_v55, %v5310_v18  ;;  %v1653_v13 = vsel %vm6803_vm2, %v1646_v23, 0.0  ;;  %v1620_v20 = vadd.f32 %v1612_v4, %v1588_v24  ;;  %v1621_v10 = vadd.f32 %v1613_v53, %v1589_v0  ;;  %v6813_v24 = vld [vmem:[#allocation43_spill] sm:$0xff]  ;;  %v6814_v23 = vld [vmem:[#allocation46_spill] sm:$0xff] }
 0x487   : > { %v1676_v12 = vmul.f32 %v6804_v26, %v1652_v16  ;;  %v1677_v57 = vmul.f32 %v6804_v26, %v1653_v13  ;;  %v1844_v18 = vsel %vm6682_vm0, %v5461_v33, 0.0  ;;  %v1845_v55 = vsel %vm6684_vm7, %v5466_v14, 0.0  ;;  %v1765_v4 = vpop.permute.xlu1 %1764 }
 0x488   : > { %vm6806_vm2 = vcmp.lt.s32.totalorder %v3576_v37, 112  ;;  %vm6808_vm13 = vnez %v6598_v36  ;;  %vm6810_vm10 = vnez %v6809_v38  ;;  %vm6811_vm6 = vcmp.lt.s32.totalorder %v6592_v48, 15 }
 0x489   : > { %v1684_v53 = vadd.f32 %v1676_v12, %v1620_v20  ;;  %v1685_v29 = vadd.f32 %v1677_v57, %v1621_v10  ;;  %v1770_v47 = vsel %vm6806_vm2, %v5388_v49, %v1765_v4  ;;  %vm6807_vm9 = vmmov %vm6806_vm2  ;;  %v1955_v33 = vsel %vm6808_vm13, %v1939_v39, 0.0  ;;  %v6817_v57 = vld [vmem:[#allocation62_spill] sm:$0xff] }
 0x48a   : > { %v1774_v8 = vsel %vm6807_vm9, %v1765_v4, %v5388_v49  ;;  %v1956_v15 = vsel %vm6810_vm10, %v1935_v42, 0.0  ;;  %v1780_v14 = vsel %vm6811_vm6, %v1770_v47, 0.0  ;;  %vm6812_vm14 = vcmp.lt.s32.totalorder %v6594_v17, 15 }
 0x48b   : > { %v1781_v11 = vsel %vm6812_vm14, %v1774_v8, 0.0  ;;  %v1748_v54 = vadd.f32 %v1740_v41, %v1684_v53  ;;  %v1749_v50 = vadd.f32 %v1741_v60, %v1685_v29  ;;  %v1804_v0 = vmul.f32 %v6813_v24, %v1780_v14  ;;  %v2004_v39 = vpop.permute.xlu1 %2003  ;;  %v5644_v60 = vpop.permute.xlu0 %1406  ;;  %v6820_v29 = vld [vmem:[#allocation63_spill] sm:$0xff] }
 0x48c   : > { %v1805_v19 = vmul.f32 %v6813_v24, %v1781_v11  ;;  %v1868_v49 = vmul.f32 %v6814_v23, %v1844_v18  ;;  %v1869_v16 = vmul.f32 %v6814_v23, %v1845_v55  ;;  %v2540_v13 = vmax.f32 %v5581_v56, 0.0 }
 0x48d   : > { %v2541_v42 = vmax.f32 %v5584_v21, 0.0  ;;  %v1812_v20 = vadd.f32 %v1804_v0, %v1748_v54  ;;  %vm6815_vm2 = vcmp.lt.s32.totalorder %v3576_v37, 32  ;;  %v1979_v22 = vmul.f32 %v6817_v57, %v1955_v33 }
 0x48e   : > { %v1813_v10 = vadd.f32 %v1805_v19, %v1749_v50  ;;  %v2010_v26 = vsel %vm6815_vm2, %v5410_v32, %v2004_v39  ;;  %vm6816_vm9 = vmmov %vm6815_vm2  ;;  %v1980_v41 = vmul.f32 %v6817_v57, %v1956_v15  ;;  %vm6818_vm6 = vcmp.ge.s32.totalorder %v6592_v48, 2  ;;  %v6825_v19 = vld [vmem:[#allocation65_spill] sm:$0xff] }
 0x48f   : > { %v2014_v12 = vsel %vm6816_vm9, %v2004_v39, %v5410_v32  ;;  %vm6819_vm14 = vcmp.ge.s32.totalorder %v6594_v17, 2  ;;  %v5650_v4 = vadd.f32 %v1868_v49, %v1812_v20  ;;  %v2073_v8 = vpop.permute.xlu1 %2072  ;;  %v2548_v33 = vadd.f32 %v2540_v13, %v1908_v45 }
 0x490   : > { %v2024_v18 = vsel %vm6818_vm6, %v2014_v12, 0.0  ;;  %v2025_v55 = vsel %vm6819_vm14, %v2010_v26, 0.0  ;;  %v5652_v53 = vadd.f32 %v1869_v16, %v1813_v10  ;;  %v2549_v15 = vadd.f32 %v2541_v42, %v1909_v58  ;;  %v5676_v16 = vpop.permute.xlu0 %1534 }
 0x491   : > { %v2048_v47 = vmul.f32 %v6820_v29, %v2024_v18  ;;  %v2049_v32 = vmul.f32 %v6820_v29, %v2025_v55  ;;  %vm6821_vm2 = vcmp.lt.s32.totalorder %v3576_v37, 30  ;;  %vm6823_vm6 = vnez %v6604_v25  ;;  %v6832_v55 = vld [vmem:[#allocation67_spill] sm:$0xff] }
 0x492   : > { %v2079_v54 = vsel %vm6821_vm2, %v5348_v7, %v2073_v8  ;;  %vm6822_vm9 = vmmov %vm6821_vm2  ;;  %vm6824_vm14 = vnez %v6607_v61  ;;  %v2556_v20 = vadd.f32 %v2549_v15, %v2548_v33  ;;  %vm6826_vm2 = vcmp.lt.s32.totalorder %v3576_v37, 2 }
 0x493   : > { %v2056_v14 = vadd.f32 %v2048_v47, %v1979_v22  ;;  %v2057_v11 = vadd.f32 %v2049_v32, %v1980_v41  ;;  %v2083_v50 = vsel %vm6822_vm9, %v2073_v8, %v5348_v7  ;;  %v2098_v0 = vsel %vm6824_vm14, %v2079_v54, 0.0  ;;  %v2146_v39 = vpop.permute.xlu1 %2145  ;;  %vm6827_vm9 = vmmov %vm6826_vm2  ;;  %v6833_v47 = vld [vmem:[#allocation69_spill] sm:$0xff] }
 0x494   : > { %v2097_v24 = vsel %vm6823_vm6, %v2083_v50, 0.0  ;;  %v2122_v49 = vmul.f32 %v6825_v19, %v2098_v0  ;;  %v2152_v7 = vsel %vm6826_vm2, %v5364_v35, %v2146_v39  ;;  %v2156_v12 = vsel %vm6827_vm9, %v2146_v39, %v5364_v35  ;;  %2557 = vadd.xlane.f32.xlu1 %v2556_v20  ;;  %v1631_v50 = vpop.permute.xlu0 %1630 }
 0x495   : > { %v2121_v23 = vmul.f32 %v6825_v19, %v2097_v24  ;;  %vm6828_vm14 = vcmp.ge.s32.totalorder %v6593_v34, 2  ;;  %vm6829_vm6 = vcmp.ge.s32.totalorder %v6595_v40, 2  ;;  %vm6830_vm10 = vcmp.lt.s32.totalorder %v3576_v37, 98  ;;  %v6840_v19 = vld [vmem:[#allocation71_spill] sm:$0xff] }
 0x496   : > { %v2130_v26 = vadd.f32 %v2122_v49, %v2057_v11  ;;  %v2166_v57 = vsel %vm6828_vm14, %v2156_v12, 0.0  ;;  %v2167_v22 = vsel %vm6829_vm6, %v2152_v7, 0.0  ;;  %v2322_v41 = vsel %vm6830_vm10, %v5454_v9, %v5526_v31  ;;  %vm6831_vm2 = vmmov %vm6830_vm10 }
 0x497   : > { %v2129_v10 = vadd.f32 %v2121_v23, %v2056_v14  ;;  %v2326_v18 = vsel %vm6831_vm2, %v5526_v31, %v5454_v9  ;;  %v2190_v29 = vmul.f32 %v6832_v55, %v2166_v57  ;;  %v2191_v35 = vmul.f32 %v6832_v55, %v2167_v22  ;;  %v2247_v9 = vpop.permute.xlu1 %2246  ;;  %v6844_v22 = vld [vmem:[#allocation76_spill] sm:$0xff] }
 0x498   : > { %v2222_v32 = vmul.f32 %v6833_v47, %v6780_v6  ;;  %v2223_v8 = vmul.f32 %v6833_v47, %v6746_v63  ;;  %vm6834_vm6 = vcmp.lt.s32.totalorder %v3576_v37, 96  ;;  %vm6836_vm14 = vcmp.lt.s32.totalorder %v3576_v37, 126 }
 0x499   : > { %v2395_v33 = vsel %vm6834_vm6, %v5482_v27, %v5564_v2  ;;  %vm6835_vm10 = vmmov %vm6834_vm6  ;;  %v2198_v15 = vadd.f32 %v2190_v29, %v2129_v10  ;;  %v2199_v14 = vadd.f32 %v2191_v35, %v2130_v26  ;;  %v2253_v6 = vsel %vm6836_vm14, %v5426_v1, %v2247_v9  ;;  %v6843_v10 = vld [vmem:[#allocation73_spill] sm:$0xff]  ;;  %v1759_v35 = vpop.permute.xlu0 %1758 }
 0x49a   : > { %v2399_v31 = vsel %vm6835_vm10, %v5564_v2, %v5482_v27  ;;  %vm6837_vm9 = vmmov %vm6836_vm14  ;;  %v2340_v11 = vsel %vm4894_vm12, %v2322_v41, 0.0  ;;  %v2341_v54 = vsel %vm4908_vm1, %v2326_v18, 0.0  ;;  %vm6838_vm2 = vcmp.lt.s32.totalorder %v6593_v34, 14 }
 0x49b   : > { %v2257_v63 = vsel %vm6837_vm9, %v2247_v9, %v5426_v1  ;;  %v2267_v27 = vsel %vm6838_vm2, %v2253_v6, 0.0  ;;  %vm6839_vm6 = vcmp.lt.s32.totalorder %v6595_v40, 14  ;;  %v2230_v24 = vadd.f32 %v2222_v32, %v2198_v15  ;;  %v1471_v20 = vpop.permute.xlu1 %1470 }
 0x49c   : > { %v2268_v2 = vsel %vm6839_vm6, %v2257_v63, 0.0  ;;  %v2231_v0 = vadd.f32 %v2223_v8, %v2199_v14  ;;  %v2291_v23 = vmul.f32 %v6840_v19, %v2267_v27  ;;  %vm6841_vm10 = vcmp.lt.s32.totalorder %v6592_v48, 14 }
 0x49d   : > { %v2292_v49 = vmul.f32 %v6840_v19, %v2268_v2  ;;  %v2409_v1 = vsel %vm6841_vm10, %v2395_v33, 0.0  ;;  %vm6842_vm14 = vcmp.lt.s32.totalorder %v6594_v17, 14  ;;  %v2364_v26 = vmul.f32 %v6843_v10, %v2340_v11 }
 0x49e   : > { %v2410_v39 = vsel %vm6842_vm14, %v2399_v31, 0.0  ;;  %v2365_v7 = vmul.f32 %v6843_v10, %v2341_v54  ;;  %v2299_v12 = vadd.f32 %v2291_v23, %v2230_v24  ;;  %v2433_v41 = vmul.f32 %v6844_v22, %v2409_v1  ;;  %v5740_v31 = vpop.permute.xlu0 %2382 }
 0x49f   : > { %v2300_v57 = vadd.f32 %v2292_v49, %v2231_v0  ;;  %v2434_v18 = vmul.f32 %v6844_v22, %v2410_v39  ;;  %v1695_v47 = vpop.permute.xlu1 %1694  ;;  %vm6845_vm9 = vcmp.lt.s32.totalorder %v3576_v37, 16  ;;  %vm6847_vm6 = vcmp.lt.s32.totalorder %v3576_v37, 17  ;;  %v6854_v22 = vld [vmem:[#allocation54_spill] sm:$0xff] }
 0x4a0   : > { %v2372_v55 = vadd.f32 %v2364_v26, %v2299_v12  ;;  %vm6846_vm2 = vmmov %vm6845_vm9  ;;  %vm6849_vm14 = vcmp.ge.s32.totalorder %v6592_v48, 1  ;;  %vm6850_vm1 = vcmp.ge.s32.totalorder %v6594_v17, 1 }
 0x4a1   : > { %v2373_v29 = vadd.f32 %v2365_v7, %v2300_v57  ;;  %vm6848_vm10 = vmmov %vm6847_vm6  ;;  %v6853_v7 = vld [vmem:[#allocation29_spill] sm:$0xff] }
 0x4a2   : > { %v5734_v32 = vadd.f32 %v2433_v41, %v2372_v55  ;;  %v1347_v15 = vpop.permute.xlu0 %1346 }
 0x4a3   : > { %v5736_v8 = vadd.f32 %v2434_v18, %v2373_v29  ;;  %v5738_v33 = vpop.permute.xlu1 %1822  ;;  %v1351_v0 = vsel %vm6847_vm6, %v5614_v46, %v1347_v15  ;;  %v1355_v19 = vsel %vm6848_vm10, %v1347_v15, %v5614_v46  ;;  %vm6859_vm10 = vcmp.lt.s32.totalorder %v3576_v37, 127 }
 0x4a4   : > { %v1362_v39 = vsel %vm6626_vm4, %v1355_v19, 0.0  ;;  %vm6855_vm4 = vcmp.ge.s32.totalorder %v6593_v34, 1 }
 0x4a5   : > { %v1390_v41 = vmul.f32 %v6854_v22, %v1362_v39 }
 0x4a6   : > { %v1415_v63 = vpop.permute.xlu0 %1414 }
 0x4a7   : > { %v5742_v9 = vpop.permute.xlu1 %1922  ;;  %v1419_v2 = vsel %vm6845_vm9, %v5644_v60, %v1415_v63  ;;  %v1423_v24 = vsel %vm6846_vm2, %v1415_v63, %v5644_v60  ;;  %v1363_v60 = vsel %vm6628_vm11, %v1351_v0, 0.0  ;;  %vm6851_vm9 = vcmp.lt.s32.totalorder %v3576_v37, 1 }
 0x4a8   : > { %v1430_v23 = vsel %vm6849_vm14, %v1423_v24, 0.0  ;;  %v1431_v49 = vsel %vm6850_vm1, %v1419_v2, 0.0  ;;  %vm6852_vm2 = vmmov %vm6851_vm9  ;;  %v1391_v44 = vmul.f32 %v6854_v22, %v1363_v60  ;;  %vm6856_vm1 = vcmp.ge.s32.totalorder %v6595_v40, 1  ;;  %v6874_v24 = vld [vmem:[#allocation39_spill] sm:$0xff] }
 0x4a9   : > { %v1454_v12 = vmul.f32 %v6853_v7, %v1430_v23  ;;  %v1455_v57 = vmul.f32 %v6853_v7, %v1431_v49  ;;  %vm6857_vm11 = vcmp.lt.s32.totalorder %v3576_v37, 15  ;;  %vm6860_vm14 = vmmov %vm6859_vm10  ;;  %v6863_v49 = vld [vmem:[#allocation15_spill] sm:$0xff] }
 0x4aa   : > { %v1543_v54 = vpop.permute.xlu0 %1542  ;;  %vm6858_vm6 = vmmov %vm6857_vm11 }
 0x4ab   : > { %v5744_v14 = vpop.permute.xlu1 %1997  ;;  %v1547_v10 = vsel %vm6851_vm9, %v5676_v16, %v1543_v54  ;;  %v1551_v46 = vsel %vm6852_vm2, %v1543_v54, %v5676_v16  ;;  %v1462_v19 = vadd.f32 %v1454_v12, %v1390_v41  ;;  %v1463_v23 = vadd.f32 %v1455_v57, %v1391_v44  ;;  %v6867_v12 = vld [vmem:[#allocation47_spill] sm:$0xff]  ;;  %v6868_v57 = vld [vmem:[#allocation18_spill] sm:$0xff]  ;;  %v6869_v44 = vld [vmem:[#allocation57_spill] sm:$0xff] }
 0x4ac   : > { %v1558_v62 = vsel %vm6855_vm4, %v1551_v46, 0.0  ;;  %v1559_v55 = vsel %vm6856_vm1, %v1547_v10, 0.0  ;;  %v6864_v10 = vld [vmem:[#allocation34_spill] sm:$0xff]  ;;  %vm6865_vm9 = vcmp.lt.s32.totalorder %v6593_v34, 15  ;;  %v1614_v41 = vmul.f32 %v6868_v57, %v6867_v12 }
 0x4ad   : > { %v1583_v46 = vmul.f32 %v6864_v10, %v1559_v55  ;;  %vm6872_vm4 = vcmp.lt.s32.totalorder %v3576_v37, 112 }
 0x4ae   : > { %v1639_v26 = vpop.permute.xlu0 %1638  ;;  %vm6873_vm1 = vmmov %vm6872_vm4 }
 0x4af   : > { %v5746_v6 = vpop.permute.xlu1 %2066  ;;  %v1643_v15 = vsel %vm6859_vm10, %v1631_v50, %v1639_v26  ;;  %v1647_v63 = vsel %vm6860_vm14, %v1639_v26, %v1631_v50  ;;  %vm6877_vm10 = vcmp.lt.s32.totalorder %v6592_v48, 15 }
 0x4b0   : > { %v1654_v50 = vsel %vm6865_vm9, %v1643_v15, 0.0  ;;  %vm6886_vm9 = vcmp.ge.s32.totalorder %v6592_v48, 2 }
 0x4b2   : > { %v1767_v7 = vpop.permute.xlu0 %1766 }
 0x4b3   : > { %v5748_v11 = vpop.permute.xlu1 %2139  ;;  %v1771_v15 = vsel %vm6872_vm4, %v1759_v35, %v1767_v7 }
 0x4b4   : > { %v1782_v30 = vsel %vm6877_vm10, %v1771_v15, 0.0  ;;  %vm6898_vm10 = vcmp.lt.s32.totalorder %v3576_v37, 98 }
 0x4b7   : > { %v5750_v27 = vpop.permute.xlu1 %2240 }
 0x4bb   : > { %v5768_v1 = vpop.permute.xlu1 %2309 }
 0x4bf   : > { %v1479_v18 = vpop.permute.xlu1 %1478 }
 0x4c0   : > { %v1483_v29 = vsel %vm6857_vm11, %v1471_v20, %v1479_v18  ;;  %v1487_v16 = vsel %vm6858_vm6, %v1479_v18, %v1471_v20  ;;  %v1582_v20 = vmul.f32 %v6864_v10, %v1558_v62  ;;  %vm6875_vm11 = vcmp.lt.s32.totalorder %v3576_v37, 111 }
 0x4c1   : > { %v1494_v2 = vsel %vm6632_vm15, %v1487_v16, 0.0  ;;  %v1495_v0 = vsel %vm6634_vm3, %v1483_v29, 0.0  ;;  %vm6866_vm15 = vcmp.lt.s32.totalorder %v6595_v40, 15  ;;  %v1615_v16 = vmul.f32 %v6868_v57, %v6869_v44  ;;  %vm6876_vm6 = vmmov %vm6875_vm11 }
 0x4c2   : > { %v1518_v39 = vmul.f32 %v6863_v49, %v1494_v2  ;;  %v1519_v60 = vmul.f32 %v6863_v49, %v1495_v0  ;;  %v1655_v26 = vsel %vm6866_vm15, %v1647_v63, 0.0  ;;  %vm6870_vm3 = vcmp.lt.s32.totalorder %v3576_v37, 113 }
 0x4c3   : > { %v1703_v22 = vpop.permute.xlu1 %1702  ;;  %vm6871_vm2 = vmmov %vm6870_vm3  ;;  %v1775_v63 = vsel %vm6873_vm1, %v1767_v7, %v1759_v35  ;;  %v1678_v0 = vmul.f32 %v6874_v24, %v1654_v50  ;;  %vm6887_vm15 = vcmp.ge.s32.totalorder %v6594_v17, 2 }
 0x4c4   : > { %v1526_v18 = vadd.f32 %v1518_v39, %v1462_v19  ;;  %v1527_v29 = vadd.f32 %v1519_v60, %v1463_v23  ;;  %v1707_v62 = vsel %vm6870_vm3, %v1695_v47, %v1703_v22  ;;  %v1711_v55 = vsel %vm6871_vm2, %v1703_v22, %v1695_v47  ;;  %v5826_v47 = vpop.permute.xlu0 %2529  ;;  %v6879_v22 = vld [vmem:[#allocation22_spill] sm:$0xff] }
 0x4c5   : > { %v1679_v19 = vmul.f32 %v6874_v24, %v1655_v26  ;;  %v1718_v23 = vsel %vm6656_vm5, %v1707_v62, 0.0  ;;  %v1719_v49 = vsel %vm6747_vm8, %v1711_v55, 0.0  ;;  %vm6878_vm5 = vcmp.lt.s32.totalorder %v6594_v17, 15 }
 0x4c6   : > { %v1590_v54 = vadd.f32 %v1582_v20, %v1526_v18  ;;  %v1591_v2 = vadd.f32 %v1583_v46, %v1527_v29  ;;  %v1783_v52 = vsel %vm6878_vm5, %v1775_v63, 0.0  ;;  %v1742_v50 = vmul.f32 %v6879_v22, %v1718_v23  ;;  %vm6899_vm5 = vmmov %vm6898_vm10 }
 0x4c7   : > { %v1831_v39 = vpop.permute.xlu1 %1830  ;;  %v1743_v26 = vmul.f32 %v6879_v22, %v1719_v49  ;;  %vm6884_vm8 = vcmp.lt.s32.totalorder %v3576_v37, 32  ;;  %vm6888_vm3 = vnez %v6809_v38  ;;  %vm6890_vm2 = vcmp.lt.s32.totalorder %v3576_v37, 30 }
 0x4c8   : > { %v1622_v60 = vadd.f32 %v1614_v41, %v1590_v54  ;;  %v1623_v10 = vadd.f32 %v1615_v16, %v1591_v2  ;;  %v1835_v35 = vsel %vm6875_vm11, %v5738_v33, %v1831_v39  ;;  %v1839_v20 = vsel %vm6876_vm6, %v1831_v39, %v5738_v33  ;;  %v6880_v33 = vld [vmem:[#allocation44_spill] sm:$0xff]  ;;  %v2249_v15 = vpop.permute.xlu0 %2248  ;;  %vm6885_vm14 = vmmov %vm6884_vm8 }
 0x4c9   : > { %v1846_v18 = vsel %vm6682_vm0, %v1835_v35, 0.0  ;;  %v1847_v29 = vsel %vm6684_vm7, %v1839_v20, 0.0  ;;  %v1806_v41 = vmul.f32 %v6880_v33, %v1782_v30  ;;  %v1807_v16 = vmul.f32 %v6880_v33, %v1783_v52  ;;  %v6881_v2 = vld [vmem:[#allocation28_spill] sm:$0xff]  ;;  %vm6891_vm4 = vmmov %vm6890_vm2 }
 0x4ca   : > { %v1686_v46 = vadd.f32 %v1678_v0, %v1622_v60  ;;  %v1687_v7 = vadd.f32 %v1679_v19, %v1623_v10  ;;  %v1870_v24 = vmul.f32 %v6881_v2, %v1846_v18  ;;  %v1871_v0 = vmul.f32 %v6881_v2, %v1847_v29  ;;  %v6896_v29 = vld [vmem:[#allocation64_spill] sm:$0xff] }
 0x4cb   : > { %v1931_v57 = vpop.permute.xlu1 %1930  ;;  %vm6882_vm0 = vcmp.lt.s32.totalorder %v3576_v37, 34  ;;  %vm6894_vm11 = vnez %v6604_v25  ;;  %vm6895_vm6 = vnez %v6607_v61 }
 0x4cc   : > { %v1750_v62 = vadd.f32 %v1742_v50, %v1686_v46  ;;  %v1751_v55 = vadd.f32 %v1743_v26, %v1687_v7  ;;  %v1936_v5 = vsel %vm6882_vm0, %v5742_v9, %v1931_v57  ;;  %vm6883_vm7 = vmmov %vm6882_vm0  ;;  %v2318_v52 = vpop.permute.xlu0 %2317  ;;  %v6889_v46 = vld [vmem:[#allocation59_spill] sm:$0xff]  ;;  %vm6900_vm0 = vcmp.lt.s32.totalorder %v3576_v37, 2 }
 0x4cd   : > { %v1940_v3 = vsel %vm6883_vm7, %v1931_v57, %v5742_v9  ;;  %v1958_v20 = vsel %vm6888_vm3, %v1936_v5, 0.0  ;;  %v2327_v25 = vsel %vm6899_vm5, %v2318_v52, %v5768_v1  ;;  %vm6901_vm7 = vmmov %vm6900_vm0  ;;  %vm6908_vm3 = vnez %v6617_v59  ;;  %v6915_v59 = vld [vmem:[#allocation6_spill] sm:$0xff] }
 0x4ce   : > { %v1814_v63 = vadd.f32 %v1806_v41, %v1750_v62  ;;  %v1815_v54 = vadd.f32 %v1807_v16, %v1751_v55  ;;  %v1957_v9 = vsel %vm6808_vm13, %v1940_v3, 0.0  ;;  %vm6892_vm13 = vcmp.lt.s32.totalorder %v3576_v37, 126  ;;  %v6897_v41 = vld [vmem:[#allocation60_spill] sm:$0xff] }
 0x4cf   : > { %v2006_v19 = vpop.permute.xlu1 %2005  ;;  %v2254_v36 = vsel %vm6892_vm13, %v5750_v27, %v2249_v15  ;;  %vm6893_vm1 = vmmov %vm6892_vm13  ;;  %v1981_v57 = vmul.f32 %v6896_v29, %v1957_v9  ;;  %v1982_v33 = vmul.f32 %v6896_v29, %v1958_v20  ;;  %v2323_v62 = vsel %vm6898_vm10, %v5768_v1, %v2318_v52  ;;  %v6906_v3 = vld [vmem:[#allocation68_spill] sm:$0xff]  ;;  %v6918_v29 = vld [vmem:[#allocation75_spill] sm:$0xff] }
 0x4d0   : > { %v5854_v23 = vadd.f32 %v1870_v24, %v1814_v63  ;;  %v5856_v49 = vadd.f32 %v1871_v0, %v1815_v54  ;;  %v2011_v39 = vsel %vm6884_vm8, %v5744_v14, %v2006_v19  ;;  %v2015_v60 = vsel %vm6885_vm14, %v2006_v19, %v5744_v14 }
 0x4d1   : > { %v2026_v10 = vsel %vm6886_vm9, %v2015_v60, 0.0  ;;  %v2027_v35 = vsel %vm6887_vm15, %v2011_v39, 0.0  ;;  %v2258_v38 = vsel %vm6893_vm1, %v2249_v15, %v5750_v27  ;;  %vm6902_vm8 = vcmp.lt.s32.totalorder %v6593_v34, 14 }
 0x4d2   : > { %v2050_v7 = vmul.f32 %v6889_v46, %v2026_v10  ;;  %v2051_v22 = vmul.f32 %v6889_v46, %v2027_v35  ;;  %v2269_v54 = vsel %vm6902_vm8, %v2254_v36, 0.0  ;;  %vm6903_vm14 = vcmp.lt.s32.totalorder %v6595_v40, 14  ;;  %v6912_v46 = vld [vmem:[#allocation72_spill] sm:$0xff] }
 0x4d3   : > { %v2075_v30 = vpop.permute.xlu1 %2074  ;;  %v2270_v2 = vsel %vm6903_vm14, %v2258_v38, 0.0  ;;  %vm6904_vm9 = vcmp.ge.s32.totalorder %v6593_v34, 2  ;;  %vm6905_vm15 = vcmp.ge.s32.totalorder %v6595_v40, 2  ;;  %v2342_v35 = vsel %vm4894_vm12, %v2323_v62, 0.0  ;;  %v6917_v38 = vld [vmem:[#allocation78_spill] sm:$0xff] }
 0x4d4   : > { %v2080_v14 = vsel %vm6890_vm2, %v5746_v6, %v2075_v30  ;;  %v2084_v50 = vsel %vm6891_vm4, %v2075_v30, %v5746_v6  ;;  %v2058_v55 = vadd.f32 %v2050_v7, %v1981_v57  ;;  %v2059_v61 = vadd.f32 %v2051_v22, %v1982_v33  ;;  %v6909_v30 = vld [vmem:[#allocation11_spill] sm:$0xff] }
 0x4d5   : > { %v2099_v26 = vsel %vm6894_vm11, %v2084_v50, 0.0  ;;  %v2100_v18 = vsel %vm6895_vm6, %v2080_v14, 0.0  ;;  %v2343_v34 = vsel %vm6908_vm3, %v2327_v25, 0.0  ;;  %vm6910_vm2 = vcmp.lt.s32.totalorder %v3576_v37, 94 }
 0x4d6   : > { %v2123_v6 = vmul.f32 %v6897_v41, %v2099_v26  ;;  %v2124_v16 = vmul.f32 %v6897_v41, %v2100_v18  ;;  %vm6911_vm4 = vmmov %vm6910_vm2  ;;  %v2293_v7 = vmul.f32 %v6912_v46, %v2269_v54  ;;  %vm6914_vm12 = vnez %v6913_v51 }
 0x4d7   : > { %v2148_v27 = vpop.permute.xlu1 %2147  ;;  %vm6916_vm13 = vnez %v6915_v59  ;;  %v2366_v57 = vmul.f32 %v6918_v29, %v2342_v35  ;;  %v2367_v33 = vmul.f32 %v6918_v29, %v2343_v34  ;;  %vm6920_vm1 = vcmp.lt.s32.totalorder %v3576_v37, 96  ;;  %vm6926_vm5 = vmmov %vm6910_vm2 }
 0x4d8   : > { %v2153_v15 = vsel %vm6900_vm0, %v5748_v11, %v2148_v27  ;;  %v2157_v63 = vsel %vm6901_vm7, %v2148_v27, %v5748_v11  ;;  %v2131_v0 = vadd.f32 %v2123_v6, %v2058_v55  ;;  %v2132_v5 = vadd.f32 %v2124_v16, %v2059_v61  ;;  %v6907_v11 = vld [vmem:[#allocation70_spill] sm:$0xff]  ;;  %v6919_v6 = vld [vmem:[#allocation49_spill] sm:$0xff]  ;;  %vm6921_vm11 = vmmov %vm6920_vm1 }
 0x4d9   : > { %v2168_v1 = vsel %vm6904_vm9, %v2157_v63, 0.0  ;;  %v2169_v24 = vsel %vm6905_vm15, %v2153_v15, 0.0  ;;  %v2224_v60 = vmul.f32 %v6907_v11, %v6867_v12  ;;  %v2225_v10 = vmul.f32 %v6907_v11, %v6869_v44  ;;  %vm6927_vm0 = vmmov %vm6910_vm2 }
 0x4da   : > { %v2192_v19 = vmul.f32 %v6906_v3, %v2168_v1  ;;  %v2193_v39 = vmul.f32 %v6906_v3, %v2169_v24  ;;  %v2294_v44 = vmul.f32 %v6912_v46, %v2270_v2  ;;  %v5942_v16 = vadd.f32 %v6919_v6, %v5650_v4  ;;  %v6922_v4 = vld [vmem:[#allocation83_spill] sm:$0xff]  ;;  %v2460_v1 = vpop.permute.xlu0 %2459 }
 0x4db   : > { %v2458_v40 = vpop.permute.xlu1 %2457  ;;  %v5946_v62 = vadd.f32 %v6919_v6, %v5652_v53  ;;  %vm6923_vm6 = vcmp.lt.s32.totalorder %v6592_v48, 14  ;;  %vm6924_vm10 = vcmp.lt.s32.totalorder %v6594_v17, 14  ;;  %v6925_v3 = vld [vmem:[#allocation79_spill] sm:$0xff]  ;;  %vm6930_vm7 = vcmask 261120  }
 0x4dc   : > { %v2200_v9 = vadd.f32 %v2192_v19, %v2131_v0  ;;  %v2201_v20 = vadd.f32 %v2193_v39, %v2132_v5  ;;  %v2464_v52 = vsel %vm6910_vm2, %v6909_v30, %v2458_v40  ;;  %v2468_v12 = vsel %vm6911_vm4, %v2458_v40, %v6909_v30  ;;  %vm6931_vm8 = vmmov %vm6930_vm7 }
 0x4dd   : > { %v2480_v22 = vsel %vm6914_vm12, %v2464_v52, 0.0  ;;  %v2481_v14 = vsel %vm6916_vm13, %v2468_v12, 0.0  ;;  %v1912_v5 = vmax.f32 %v5942_v16, 0.0  ;;  %v6929_v12 = vld [vmem:[#allocation51_spill] sm:$0xff]  ;;  %vm6932_vm14 = vmmov %vm6930_vm7 }
 0x4de   : > { %v2232_v50 = vadd.f32 %v2224_v60, %v2200_v9  ;;  %v2233_v36 = vadd.f32 %v2225_v10, %v2201_v20  ;;  %v2504_v26 = vmul.f32 %v6917_v38, %v2480_v22  ;;  %v2505_v18 = vmul.f32 %v6917_v38, %v2481_v14  ;;  %v6928_v9 = vld [vmem:[#allocation80_spill] sm:$0xff]  ;;  %vm6933_vm9 = vmmov %vm6930_vm7 }
 0x4df   : > { %v2391_v41 = vpop.permute.xlu1 %2390  ;;  %v5992_v46 = vadd.f32 %v6929_v12, %v5854_v23  ;;  %vm6935_vm15 = vmmov %vm6930_vm7 }
 0x4e0   : > { %v2512_v25 = vadd.f32 %v2504_v26, %v5734_v32  ;;  %v2513_v27 = vadd.f32 %v2505_v18, %v5736_v8  ;;  %v2301_v55 = vadd.f32 %v2293_v7, %v2232_v50  ;;  %v2302_v61 = vadd.f32 %v2294_v44, %v2233_v36  ;;  %vm6936_vm3 = vmmov %vm6930_vm7 }
 0x4e1   : > { %v2396_v15 = vsel %vm6920_vm1, %v5740_v31, %v2391_v41  ;;  %v2400_v63 = vsel %vm6921_vm11, %v2391_v41, %v5740_v31  ;;  %v1913_v31 = vmax.f32 %v5946_v62, 0.0  ;;  %v5996_v7 = vadd.f32 %v6929_v12, %v5856_v49  ;;  %vm6937_vm2 = vmmov %vm6936_vm3 }
 0x4e2   : > { %v5957_v54 = vadd.f32 %v6922_v4, %v2512_v25  ;;  %v5960_v53 = vadd.f32 %v6922_v4, %v2513_v27  ;;  %v2374_v2 = vadd.f32 %v2366_v57, %v2301_v55  ;;  %v2375_v32 = vadd.f32 %v2367_v33, %v2302_v61  ;;  %v2572_v33 = vld [vmem:[%s6129_s9] sm:$0xff]  ;;  %v2573_v25 = vld [vmem:[%s6129_s9 + $0x8] sm:$0xff]  ;;  %v2574_v27 = vld [vmem:[%s6129_s9 + $0x10] sm:$0xff] }
 0x4e3   : > { %v2411_v8 = vsel %vm6923_vm6, %v2396_v15, 0.0  ;;  %v2412_v24 = vsel %vm6924_vm10, %v2400_v63, 0.0  ;;  %v2452_v0 = vpop.permute.xlu1 %2451  ;;  %v1914_v50 = vmax.f32 %v5992_v46, 0.0  ;;  %v1915_v36 = vmax.f32 %v5996_v7, 0.0  ;;  %vm6938_vm4 = vmmov %vm6937_vm2 }
 0x4e4   : > { %v2435_v19 = vmul.f32 %v6925_v3, %v2411_v8  ;;  %v2436_v39 = vmul.f32 %v6925_v3, %v2412_v24  ;;  %v2465_v11 = vsel %vm6926_vm5, %v2452_v0, %v2460_v1  ;;  %v2469_v60 = vsel %vm6927_vm0, %v2460_v1, %v2452_v0  ;;  %vm6941_vm1 = vmmov %vm6937_vm2 }
 0x4e5   : > { %v2482_v48 = vsel %vm6914_vm12, %v2465_v11, 0.0  ;;  %v2483_v17 = vsel %vm6916_vm13, %v2469_v60, 0.0  ;;  %v2544_v10 = vmax.f32 %v5957_v54, 0.0  ;;  %v2545_v35 = vmax.f32 %v5960_v53, 0.0  ;;  %vm6939_vm12 = vmmov %vm6937_vm2 }
 0x4e6   : > { %v2443_v34 = vadd.f32 %v2435_v19, %v2374_v2  ;;  %v2444_v40 = vadd.f32 %v2436_v39, %v2375_v32  ;;  %v2506_v20 = vmul.f32 %v6928_v9, %v2482_v48  ;;  %v2507_v30 = vmul.f32 %v6928_v9, %v2483_v17  ;;  %v2575_v2 = vld [vmem:[%s6129_s9 + $0x18] sm:$0xff]  ;;  %v2593_v9 = vld [vmem:[%s6130_s10] sm:$0x1]  ;;  %vm6940_vm13 = vmmov %vm6937_vm2 }
 0x4e7   : > { %v2552_v37 = vadd.f32 %v2544_v10, %v1912_v5  ;;  %v2553_v52 = vadd.f32 %v2545_v35, %v1913_v31  ;;  %vm6942_vm11 = vmmov %vm6941_vm1 }
 0x4e8   : > { %v2514_v44 = vadd.f32 %v2506_v20, %v2443_v34  ;;  %v2515_v51 = vadd.f32 %v2507_v30, %v2444_v40  ;;  %v6934_v20 = vlaneseq }
 0x4e9   : > { %v2562_v22 = vadd.f32 %v2553_v52, %v2552_v37  ;;  %v2595_v52 = vld [vmem:[%s6131_s11] sm:$0x1] }
 0x4ea   : > { %v5999_v59 = vadd.f32 %v5826_v47, %v2514_v44  ;;  %v6002_v14 = vadd.f32 %v5826_v47, %v2515_v51  ;;  %v2607_v30 = vshrl.u32 %v6934_v20, 7 }
 0x4eb   : > { %2563 = vadd.xlane.f32.xlu0 %v2562_v22 }
 0x4ec   : > { %v2546_v23 = vmax.f32 %v5999_v59, 0.0  ;;  %v2547_v38 = vmax.f32 %v6002_v14, 0.0  ;;  %v2608_v44 = vsub.s32 0, %v2607_v30 }
 0x4ee   : > { %v2554_v49 = vadd.f32 %v2546_v23, %v1914_v50  ;;  %v2555_v47 = vadd.f32 %v2547_v38, %v1915_v36 }
 0x4f0   : > { %v2565_v26 = vadd.f32 %v2555_v47, %v2554_v49  ;;  %v2599_v49 = vld [vmem:[%s6132_s12 + $0x8] sm:$0xff]  ;;  %v2598_v47 = vld [vmem:[%s6132_s12] sm:$0xff] }
 0x4f2   : > { %2566 = vadd.xlane.f32.xlu1 %v2565_v26  ;;  %v2561_v29 = vpop.xlane.xlu0 %2560 }
 0x4f3   : > { %v2569_v41 = vmul.f32 0.00390625, %v2561_v29  ;;  %v2600_v29 = vld [vmem:[%s6132_s12 + $0x10] sm:$0xff] }
 0x4f5   : > { %v2577_v15 = vmul.f32 %v2573_v25, %v2569_v41 }
 0x4f7   : > { %v2581_v1 = vsel %vm6931_vm8, %v2577_v15, 0.0 }
 0x521   : > { %v2558_v18 = vpop.xlane.xlu1 %2557 }
 0x522   : > { %v2568_v57 = vmul.f32 0.00390625, %v2558_v18  ;;  %v2601_v18 = vld [vmem:[%s6132_s12 + $0x18] sm:$0xff] }
 0x524   : > { %v2576_v61 = vmul.f32 %v2572_v33, %v2568_v57 }
 0x526   : > { %v2580_v4 = vsel %vm6930_vm7, %v2576_v61, 0.0  ;;  %v2602_v61 = vld [vmem:[%s6132_s12 + $0x20] sm:$0xff] }
 0x527   : > { %v2582_v0 = vadd.f32 %v2581_v1, %v2580_v4  ;;  %v2604_v1 = vld [vmem:[%s6132_s12 + $0x30] sm:$0xff] }
 0x578   : > { %v2564_v6 = vpop.xlane.xlu0 %2563 }
 0x579   : > { %v2570_v55 = vmul.f32 0.00390625, %v2564_v6 }
 0x57b   : > { %v2578_v63 = vmul.f32 %v2574_v27, %v2570_v55  ;;  %v2603_v55 = vld [vmem:[%s6132_s12 + $0x28] sm:$0xff] }
 0x57d   : > { %v2583_v8 = vsel %vm6932_vm14, %v2578_v63, 0.0 }
 0x57e   : > { %v2584_v19 = vadd.f32 %v2583_v8, %v2582_v0 }
 0x57f   : > { %v2567_v32 = vpop.xlane.xlu1 %2566 }
 0x580   : > { %v2571_v24 = vmul.f32 0.00390625, %v2567_v32  ;;  %v2605_v32 = vld [vmem:[%s6132_s12 + $0x38] sm:$0xff] }
 0x582   : > { %v2579_v3 = vmul.f32 %v2575_v2, %v2571_v24 }
 0x584   : > { %v2585_v39 = vsel %vm6933_vm9, %v2579_v3, 0.0 }
 0x585   : > { %v2586_v11 = vadd.f32 %v2585_v39, %v2584_v19 }
 0x587   : > { %v2587_v60 = vrot.slane %v2586_v11, 4 }
 0x589   : > { %v2588_v48 = vadd.f32 %v2587_v60, %v2586_v11 }
 0x58b   : > { %v2589_v17 = vrot.slane %v2588_v48, 2 }
 0x58d   : > { %v2590_v34 = vadd.f32 %v2589_v17, %v2588_v48 }
 0x58f   : > { %v2591_v40 = vrot.slane %v2590_v34, 1 }
 0x591   : > { %v2592_v37 = vadd.f32 %v2591_v40, %v2590_v34 }
 0x593   : > { %v2594_v12 = vmul.f32 %v2593_v9, %v2592_v37 }
 0x595   : > { %v2596_v51 = vadd.f32 %v2595_v52, %v2594_v12 }
 0x597   : > { %v2597_v22 = vmax.f32 %v2596_v51, 0.0 }
 0x599   : > { %v2609_v26 = vrot.slane %v2597_v22, %v2608_v44 }
 0x59b   : > { %v2611_v57 = vmul.f32 %v2609_v26, %v2599_v49  ;;  %v2610_v33 = vmul.f32 %v2609_v26, %v2598_v47  ;;  %v2613_v25 = vmul.f32 %v2609_v26, %v2601_v18  ;;  %v2612_v27 = vmul.f32 %v2609_v26, %v2600_v29 }
 0x59c   : > { %v2615_v4 = vmul.f32 %v2609_v26, %v2603_v55  ;;  %v2614_v2 = vmul.f32 %v2609_v26, %v2602_v61  ;;  %v2617_v0 = vmul.f32 %v2609_v26, %v2605_v32  ;;  %v2616_v3 = vmul.f32 %v2609_v26, %v2604_v1 }
 0x59d   : > { %v2621_v41 = vsel %vm6935_vm15, %v2611_v57, 0.0  ;;  %v2618_v6 = vsel %vm6936_vm3, %v2610_v33, 0.0  ;;  %v2627_v15 = vsel %vm6937_vm2, %v2613_v25, 0.0  ;;  %v2624_v63 = vsel %vm6938_vm4, %v2612_v27, 0.0 }
 0x59e   : > { %2622 = vadd.xlane.f32.xlu1 %v2621_v41  ;;  %2619 = vadd.xlane.f32.xlu0 %v2618_v6  ;;  %v2633_v8 = vsel %vm6939_vm12, %v2615_v4, 0.0  ;;  %v2630_v24 = vsel %vm6940_vm13, %v2614_v2, 0.0  ;;  %v2639_v19 = vsel %vm6941_vm1, %v2617_v0, 0.0  ;;  %v2636_v39 = vsel %vm6942_vm11, %v2616_v3, 0.0 }
 0x5a2   : > { %2628 = vadd.xlane.f32.xlu1 %v2627_v15  ;;  %2625 = vadd.xlane.f32.xlu0 %v2624_v63 }
 0x5a6   : > { %2634 = vadd.xlane.f32.xlu1 %v2633_v8  ;;  %2631 = vadd.xlane.f32.xlu0 %v2630_v24 }
 0x5aa   : > { %2640 = vadd.xlane.f32.xlu1 %v2639_v19  ;;  %2637 = vadd.xlane.f32.xlu0 %v2636_v39 }
 0x62b   : > { %v2623_v11 = vpop.xlane.xlu1 %2622  ;;  %v2620_v60 = vpop.xlane.xlu0 %2619 }
 0x62f   : > { %v2629_v48 = vpop.xlane.xlu1 %2628  ;;  %v2626_v17 = vpop.xlane.xlu0 %2625 }
 0x633   : > { %v2635_v34 = vpop.xlane.xlu1 %2634  ;;  %v2632_v40 = vpop.xlane.xlu0 %2631 }
 0x634   : > { %v2643_v9 = vmax.f32 %v2623_v11, %v2635_v34  ;;  %v2642_v20 = vmax.f32 %v2620_v60, %v2632_v40 }
 0x636   : > { %v2647_v30 = vsub.f32 %v2623_v11, %v2643_v9  ;;  %v2659_v37 = vsub.f32 %v2635_v34, %v2643_v9  ;;  %v2646_v52 = vsub.f32 %v2620_v60, %v2642_v20  ;;  %v2658_v12 = vsub.f32 %v2632_v40, %v2642_v20  ;;  %v6943_v34 = vld [vmem:[#allocation52_spill] sm:$0xff]  ;;  %v6945_v20 = vld [vmem:[#allocation35_spill] sm:$0xff] }
 0x637   : > { %v2641_v44 = vpop.xlane.xlu1 %2640  ;;  %v2638_v51 = vpop.xlane.xlu0 %2637  ;;  %v6944_v40 = vmax.f32 %v6943_v34, 0.0 }
 0x638   : > { %v2652_v22 = vmul.f32 1.442695, %v2647_v30  ;;  %v2664_v49 = vmul.f32 1.442695, %v2659_v37  ;;  %v2650_v47 = vmul.f32 1.442695, %v2646_v52  ;;  %v2645_v26 = vmax.f32 %v2629_v48, %v2641_v44 }
 0x639   : > { %v2662_v18 = vmul.f32 1.442695, %v2658_v12  ;;  %v2644_v29 = vmax.f32 %v2626_v17, %v2638_v51  ;;  %v6946_v30 = vmax.f32 %v6945_v20, 0.0  ;;  %v6947_v52 = vld [vmem:[#allocation30_spill] sm:$0xff] }
 0x63a   : > { %3294 = vpow2.f32 %v2652_v22  ;;  %v2649_v57 = vsub.f32 %v2629_v48, %v2645_v26  ;;  %v2661_v33 = vsub.f32 %v2641_v44, %v2645_v26  ;;  %v6948_v12 = vmax.f32 %v6947_v52, 0.0 }
 0x63b   : > { %3296 = vpow2.f32 %v2664_v49  ;;  %v2648_v41 = vsub.f32 %v2626_v17, %v2644_v29  ;;  %v2660_v6 = vsub.f32 %v2638_v51, %v2644_v29  ;;  %v6949_v51 = vld [vmem:[#allocation16_spill] sm:$0xff] }
 0x63c   : > { %3298 = vpow2.f32 %v2650_v47  ;;  %v2656_v25 = vmul.f32 1.442695, %v2649_v57  ;;  %v2668_v27 = vmul.f32 1.442695, %v2661_v33  ;;  %v6950_v22 = vmax.f32 %v6949_v51, 0.0 }
 0x63d   : > { %3300 = vpow2.f32 %v2662_v18  ;;  %v2654_v55 = vmul.f32 1.442695, %v2648_v41  ;;  %v2666_v61 = vmul.f32 1.442695, %v2660_v6 }
 0x63e   : > { %3302 = vpow2.f32 %v2656_v25 }
 0x63f   : > { %3304 = vpow2.f32 %v2668_v27 }
 0x640   : > { %3306 = vpow2.f32 %v2654_v55 }
 0x641   : > { %3308 = vpow2.f32 %v2666_v61 }
 0x644   : > { %v3295_v15 = vpop.eup %3294 }
 0x645   : > { %v3297_v63 = vpop.eup %3296 }
 0x646   : > { %v3299_v4 = vpop.eup %3298  ;;  %v2671_v2 = vadd.f32 %v3297_v63, %v3295_v15 }
 0x647   : > { %v3301_v32 = vpop.eup %3300 }
 0x648   : > { %v3303_v1 = vpop.eup %3302  ;;  %3310 = vrcp.f32 %v2671_v2  ;;  %v2670_v8 = vadd.f32 %v3301_v32, %v3299_v4 }
 0x649   : > { %v3305_v24 = vpop.eup %3304 }
 0x64a   : > { %v3307_v0 = vpop.eup %3306  ;;  %3312 = vrcp.f32 %v2670_v8  ;;  %v2673_v3 = vadd.f32 %v3305_v24, %v3303_v1 }
 0x64b   : > { %v3309_v19 = vpop.eup %3308 }
 0x64c   : > { %3314 = vrcp.f32 %v2673_v3  ;;  %v2672_v39 = vadd.f32 %v3309_v19, %v3307_v0 }
 0x64e   : > { %3316 = vrcp.f32 %v2672_v39 }
 0x652   : > { %v3311_v11 = vpop.eup %3310 }
 0x653   : > { %v2683_v60 = vmul.f32 %v3311_v11, %v3295_v15  ;;  %v2695_v48 = vmul.f32 %v3311_v11, %v3297_v63 }
 0x654   : > { %v3313_v17 = vpop.eup %3312 }
 0x655   : > { %v2688_v9 = vmul.f32 %v2683_v60, %v6944_v40  ;;  %v2689_v37 = vmul.f32 %v2683_v60, %v6946_v30  ;;  %v2700_v44 = vmul.f32 %v2695_v48, %v6948_v12  ;;  %v2701_v49 = vmul.f32 %v2695_v48, %v6950_v22 }
 0x656   : > { %v3315_v47 = vpop.eup %3314  ;;  %v2682_v26 = vmul.f32 %v3313_v17, %v3299_v4  ;;  %v2694_v18 = vmul.f32 %v3313_v17, %v3301_v32 }
 0x657   : > { %v2708_v29 = vadd.f32 %v2700_v44, %v2688_v9  ;;  %v2709_v57 = vadd.f32 %v2701_v49, %v2689_v37  ;;  %v2685_v33 = vmul.f32 %v3315_v47, %v3303_v1  ;;  %v2697_v41 = vmul.f32 %v3315_v47, %v3305_v24 }
 0x658   : > { %v3317_v6 = vpop.eup %3316  ;;  %v2686_v25 = vmul.f32 %v2682_v26, %v1908_v45  ;;  %v2687_v27 = vmul.f32 %v2682_v26, %v1909_v58  ;;  %v2698_v55 = vmul.f32 %v2694_v18, %v2540_v13  ;;  %v2699_v61 = vmul.f32 %v2694_v18, %v2541_v42 }
 0x659   : > { %2716 = vst [vmem:[%s6083_s26 + $0x10] sm:$0xff] %v2708_v29  ;;  %2717 = vst [vmem:[%s6083_s26 + $0x18] sm:$0xff] %v2709_v57  ;;  %v2692_v15 = vmul.f32 %v2685_v33, %v1914_v50  ;;  %v2693_v43 = vmul.f32 %v2685_v33, %v1915_v36  ;;  %v2704_v28 = vmul.f32 %v2697_v41, %v2546_v23 }
 0x65a   : > { %v2705_v45 = vmul.f32 %v2697_v41, %v2547_v38  ;;  %v2706_v58 = vadd.f32 %v2698_v55, %v2686_v25  ;;  %v2707_v56 = vadd.f32 %v2699_v61, %v2687_v27  ;;  %v2684_v21 = vmul.f32 %v3317_v6, %v3307_v0 }
 0x65b   : > { %v2696_v13 = vmul.f32 %v3317_v6, %v3309_v19  ;;  %v2712_v42 = vadd.f32 %v2704_v28, %v2692_v15 }
 0x65c   : > { %v2713_v46 = vadd.f32 %v2705_v45, %v2693_v43  ;;  %2714 = vst [vmem:[%s6083_s26] sm:$0xff] %v2706_v58  ;;  %2715 = vst [vmem:[%s6083_s26 + $0x8] sm:$0xff] %v2707_v56  ;;  %v2690_v7 = vmul.f32 %v2684_v21, %v1912_v5  ;;  %v2691_v59 = vmul.f32 %v2684_v21, %v1913_v31 }
 0x65d   : > { %v2702_v14 = vmul.f32 %v2696_v13, %v2544_v10  ;;  %v2703_v50 = vmul.f32 %v2696_v13, %v2545_v35  ;;  %2720 = vst [vmem:[%s6083_s26 + $0x30] sm:$0xff] %v2712_v42 }
 0x65e   : > { %2721 = vst [vmem:[%s6083_s26 + $0x38] sm:$0xff] %v2713_v46 }
 0x65f   : > { %v2710_v36 = vadd.f32 %v2702_v14, %v2690_v7  ;;  %v2711_v23 = vadd.f32 %v2703_v50, %v2691_v59 }
 0x661   : > { %2718 = vst [vmem:[%s6083_s26 + $0x20] sm:$0xff] %v2710_v36  ;;  %2719 = vst [vmem:[%s6083_s26 + $0x28] sm:$0xff] %v2711_v23 }
 0x662 PF: > { %s23_s25 = sadd.s32 1, %s3328_s25  }
 0x663   : > { %p20_p4 = scmp.ge.s32.totalorder %s23_s25, 4  }
 0x665   :  { %22 = sbr.rel (!%p20_p4) target bundleno = 1 (0x1), region = 102 }

</bundles_post_ra>
